<compile_context>
chip_gen: v7x
topology: tpu7x:2x2x1
jax: 0.10.0
libtpu: 0.0.40
codegen_flags: <defaults>
</compile_context>

<pallas_src>
import jax
import jax.numpy as jnp
from jax import lax
from jax.experimental import pallas as pl
from jax.experimental.pallas import tpu as pltpu

# ----------------------- config (small, consistent with module) -------------
LATENT_DIM = 32
CHANNELS = 1
IMG_SIZE = 16
IMG_SHAPE = (CHANNELS, IMG_SIZE, IMG_SIZE)
IMG_FLAT = CHANNELS * IMG_SIZE * IMG_SIZE          # 256
BATCH = 64                                         # PyTorch-GAN default batch

BN_EPS = 0.8
LRELU_SLOPE = 0.2

# Feature widths of the five Linear layers.
DIMS = (LATENT_DIM, 128, 256, 512, 1024, IMG_FLAT)

# Packed small-parameter layout: every width is a multiple of 128, so all
# in-kernel lane slices are tile-aligned (no relayout / masked loads).
_PACK_FIELDS = (
    ("b1", 128), ("g2", 256), ("be2", 256), ("g3", 512), ("be3", 512),
    ("g4", 1024), ("be4", 1024), ("b5", IMG_FLAT),
)
_PACK_LAYOUT = {}
_off = 0
for _name, _w in _PACK_FIELDS:
    _PACK_LAYOUT[_name] = (_off, _w)
    _off += _w
PACK_WIDTH = _off          # 3968 = 31 * 128


# ----------------------------- Pallas kernel --------------------------------
def _generator_kernel(
    z_ref,                         # (B, latent)      f32  VMEM
    w1_ref, w2_ref, w3_ref,        # small weights    bf16 VMEM (auto DMA)
    p_ref,                         # (1, PACK_WIDTH)  f32  VMEM (packed params)
    w4_hbm, w5_hbm,                # big weights pinned in HBM
    out_ref,                       # (B, IMG_FLAT)    f32  VMEM
    w4_vmem, w5_vmem, sems,        # scratch: landing buffers + DMA semaphores
):
    # w4 is needed first: give it the full HBM bandwidth while layers 1-3 run.
    cp4 = pltpu.make_async_copy(w4_hbm, w4_vmem, sems.at[0])
    cp4.start()

    def psl(name):
        off, width = _PACK_LAYOUT[name]
        return p_ref[:, off:off + width]          # static, 128-aligned slice

    def matmul(x, w_bf16):
        # bf16 x bf16 on the MXU, f32 accumulation.
        return jnp.dot(x.astype(jnp.bfloat16), w_bf16,
                       preferred_element_type=jnp.float32)

    def leaky_relu(x):
        return jnp.where(x > 0, x, LRELU_SLOPE * x)

    def batch_norm(x, gamma, beta):
        # Training-mode BN: per-feature batch mean / biased variance,
        # gamma folded into the rsqrt scale (single FMA application).
        mean = jnp.mean(x, axis=0, keepdims=True)
        var = jnp.mean(jnp.square(x - mean), axis=0, keepdims=True)
        scale = gamma * lax.rsqrt(var + BN_EPS)
        return (x - mean) * scale + beta

    z = z_ref[...].astype(jnp.float32)

    # block(latent_dim, 128, normalize=False)
    h = leaky_relu(matmul(z, w1_ref[...]) + psl("b1"))
    # block(128, 256)   -- bias b2 cancelled by BN mean subtraction
    h = leaky_relu(batch_norm(matmul(h, w2_ref[...]), psl("g2"), psl("be2")))
    # block(256, 512)   -- bias b3 cancelled
    h = leaky_relu(batch_norm(matmul(h, w3_ref[...]), psl("g3"), psl("be3")))

    # block(512, 1024)  -- bias b4 cancelled.  Wait for w4 only now, then
    # launch the w5 DMA so it overlaps with the layer-4 matmul + BN.
    cp4.wait()
    cp5 = pltpu.make_async_copy(w5_hbm, w5_vmem, sems.at[1])
    cp5.start()
    h = leaky_relu(batch_norm(matmul(h, w4_vmem[...]), psl("g4"), psl("be4")))

    # Linear(1024, prod(img_shape)) + Tanh
    cp5.wait()
    out_ref[...] = jnp.tanh(matmul(h, w5_vmem[...]) + psl("b5")).astype(
        out_ref.dtype)


# ------------------------------ parameters ----------------------------------
def init_params(key):
    """f32 master parameters matching the PyTorch module's layer shapes.

    Linear weights are stored transposed as (in, out); biases / BN params are
    (1, out) so they broadcast over the batch (sublane) axis.
    """
    params = {}
    keys = jax.random.split(key, 2 * (len(DIMS) - 1))
    for i in range(len(DIMS) - 1):
        fan_in, fan_out = DIMS[i], DIMS[i + 1]
        bound = 1.0 / jnp.sqrt(jnp.float32(fan_in))
        params[f"w{i + 1}"] = jax.random.uniform(
            keys[2 * i], (fan_in, fan_out), jnp.float32, -bound, bound)
        params[f"b{i + 1}"] = jax.random.uniform(
            keys[2 * i + 1], (1, fan_out), jnp.float32, -bound, bound)
    # BatchNorm1d default init: gamma = 1, beta = 0 (layers 2, 3, 4)
    for i, f in zip((2, 3, 4), (256, 512, 1024)):
        params[f"g{i}"] = jnp.ones((1, f), jnp.float32)
        params[f"be{i}"] = jnp.zeros((1, f), jnp.float32)
    return params


def pack_kernel_params(params):
    """Kernel-side bundle: bf16 weights + one packed f32 small-param vector."""
    packed = jnp.concatenate(
        [params[name].reshape(1, -1) for name, _ in _PACK_FIELDS], axis=1)
    assert packed.shape == (1, PACK_WIDTH), packed.shape
    return {
        "w1": params["w1"].astype(jnp.bfloat16),
        "w2": params["w2"].astype(jnp.bfloat16),
        "w3": params["w3"].astype(jnp.bfloat16),
        "w4": params["w4"].astype(jnp.bfloat16),
        "w5": params["w5"].astype(jnp.bfloat16),
        "packed": packed,
    }


# ------------------------------ wrapper --------------------------------------
@jax.jit
def generator_forward(z, kp):
    vmem = pl.BlockSpec(memory_space=pltpu.MemorySpace.VMEM)
    hbm = pl.BlockSpec(memory_space=pltpu.MemorySpace.HBM)
    flat = pl.pallas_call(
        _generator_kernel,
        out_shape=jax.ShapeDtypeStruct((z.shape[0], IMG_FLAT), jnp.float32),
        in_specs=[vmem, vmem, vmem, vmem, vmem, hbm, hbm],
        out_specs=vmem,
        scratch_shapes=[
            pltpu.VMEM((DIMS[3], DIMS[4]), jnp.bfloat16),   # w4 landing buffer
            pltpu.VMEM((DIMS[4], DIMS[5]), jnp.bfloat16),   # w5 landing buffer
            pltpu.SemaphoreType.DMA((2,)),
        ],
    )(z, kp["w1"], kp["w2"], kp["w3"], kp["packed"], kp["w4"], kp["w5"])
    # img = img.view(img.size(0), *img_shape)  -> NCHW (reshape outside the
    # kernel keeps the store lane-dense at 256 lanes).
    return flat.reshape(z.shape[0], *IMG_SHAPE)


# ------------------------- pure-JAX references --------------------------------
def generator_reference(z, params, weight_dtype):
    """Faithful (un-fused) reference: includes b2/b3/b4 and the textbook BN
    formula.  weight_dtype=bf16 mirrors the kernel's cast; f32 is the true
    PyTorch-equivalent forward."""
    def mm(x, w):
        return jnp.dot(x.astype(weight_dtype), w.astype(weight_dtype),
                       preferred_element_type=jnp.float32)

    def leaky(x):
        return jnp.where(x > 0, x, LRELU_SLOPE * x)

    def bn(x, g, b):
        m = jnp.mean(x, axis=0, keepdims=True)
        v = jnp.mean(jnp.square(x - m), axis=0, keepdims=True)
        return (x - m) / jnp.sqrt(v + BN_EPS) * g + b

    h = leaky(mm(z, params["w1"]) + params["b1"])
    h = leaky(bn(mm(h, params["w2"]) + params["b2"], params["g2"], params["be2"]))
    h = leaky(bn(mm(h, params["w3"]) + params["b3"], params["g3"], params["be3"]))
    h = leaky(bn(mm(h, params["w4"]) + params["b4"], params["g4"], params["be4"]))
    h = jnp.tanh(mm(h, params["w5"]) + params["b5"])
    return h.reshape(z.shape[0], *IMG_SHAPE)


if __name__ == "__main__":
    key = jax.random.PRNGKey(0)
    k_param, k_z = jax.random.split(key)
    params = init_params(k_param)
    kp = pack_kernel_params(params)
    z = jax.random.normal(k_z, (BATCH, LATENT_DIM), jnp.float32)

    img = generator_forward(z, kp)
    jax.block_until_ready(img)
    assert img.shape == (BATCH, *IMG_SHAPE), img.shape

    # Tight check vs a reference using the same bf16 weights (isolates kernel
    # fusion / BN-bias-cancellation correctness from weight quantization).
    ref_bf16 = generator_reference(z, params, jnp.bfloat16)
    err_bf16 = float(jnp.max(jnp.abs(img - ref_bf16)))
    assert jnp.allclose(img, ref_bf16, atol=5e-3, rtol=5e-3), err_bf16

    # Loose, documented check vs the true f32 forward: the only deviation is
    # the deliberate bf16 weight cast (the kernel is weight-DMA bound).
    ref_f32 = generator_reference(z, params, jnp.float32)
    err_f32 = float(jnp.max(jnp.abs(img - ref_f32)))
    assert err_f32 < 5e-2, err_f32

    print("KERNEL_OK")
</pallas_src>

<mosaic_0001>
module attributes {stable_mosaic.version = 11 : i64} {
  func.func @_generator_kernel(%arg0: memref<64x32xf32, #tpu.memory_space<vmem>>, %arg1: memref<32x128xbf16, #tpu.memory_space<vmem>>, %arg2: memref<128x256xbf16, #tpu.memory_space<vmem>>, %arg3: memref<256x512xbf16, #tpu.memory_space<vmem>>, %arg4: memref<1x3968xf32, #tpu.memory_space<vmem>>, %arg5: memref<512x1024xbf16, #tpu.memory_space<hbm>>, %arg6: memref<1024x256xbf16, #tpu.memory_space<hbm>>, %arg7: memref<64x256xf32, #tpu.memory_space<vmem>>, %arg8: memref<512x1024xbf16, #tpu.memory_space<vmem>>, %arg9: memref<1024x256xbf16, #tpu.memory_space<vmem>>, %arg10: memref<2x!tpu.dma_semaphore, #tpu.memory_space<semaphore_mem>>) attributes {dimension_semantics = [], scalar_prefetch = 0 : i64, scratch_operands = 3 : i64, tpu.core_type = #tpu.core_type<tc>} {
    %c0_i32 = arith.constant 0 : i32
    %0 = tpu.memref_slice %arg10[%c0_i32] : memref<2x!tpu.dma_semaphore, #tpu.memory_space<semaphore_mem>> -> memref<1x!tpu.dma_semaphore, #tpu.memory_space<semaphore_mem>>
    %1 = tpu.memref_squeeze %0 : memref<1x!tpu.dma_semaphore, #tpu.memory_space<semaphore_mem>> -> memref<!tpu.dma_semaphore, #tpu.memory_space<semaphore_mem>>
    tpu.enqueue_dma source(%arg5 : memref<512x1024xbf16, #tpu.memory_space<hbm>>) target(%arg8 : memref<512x1024xbf16, #tpu.memory_space<vmem>>) target_semaphore(%1 : memref<!tpu.dma_semaphore, #tpu.memory_space<semaphore_mem>>)
    %c0 = arith.constant 0 : index
    %c0_0 = arith.constant 0 : index
    %2 = vector.load %arg0[%c0, %c0_0] : memref<64x32xf32, #tpu.memory_space<vmem>>, vector<64x32xf32>
    %c0_1 = arith.constant 0 : index
    %c0_2 = arith.constant 0 : index
    %3 = vector.load %arg1[%c0_1, %c0_2] : memref<32x128xbf16, #tpu.memory_space<vmem>>, vector<32x128xbf16>
    %4 = arith.truncf %2 : vector<64x32xf32> to vector<64x32xbf16>
    %cst = arith.constant dense<0.000000e+00> : vector<64x128xf32>
    %5 = tpu.matmul %4, %3, %cst {dimension_numbers = #tpu.dot_dimension_numbers<[1], [0], [0], [1], [0, 0, 1, 1], [], []>} : vector<64x32xbf16>, vector<32x128xbf16>, vector<64x128xf32> -> vector<64x128xf32>
    %c0_3 = arith.constant 0 : index
    %c0_4 = arith.constant 0 : index
    %6 = vector.load %arg4[%c0_3, %c0_4] : memref<1x3968xf32, #tpu.memory_space<vmem>>, vector<1x128xf32>
    %7 = vector.broadcast %6 : vector<1x128xf32> to vector<64x128xf32>
    %8 = arith.addf %5, %7 : vector<64x128xf32>
    %cst_5 = arith.constant 0.000000e+00 : f32
    %9 = vector.broadcast %cst_5 : f32 to vector<64x128xf32>
    %10 = arith.cmpf ogt, %8, %9 : vector<64x128xf32>
    %cst_6 = arith.constant 2.000000e-01 : f32
    %11 = vector.broadcast %cst_6 : f32 to vector<64x128xf32>
    %12 = arith.mulf %11, %8 : vector<64x128xf32>
    %13 = arith.select %10, %8, %12 : vector<64x128xi1>, vector<64x128xf32>
    %c0_7 = arith.constant 0 : index
    %c0_8 = arith.constant 0 : index
    %14 = vector.load %arg2[%c0_7, %c0_8] : memref<128x256xbf16, #tpu.memory_space<vmem>>, vector<128x256xbf16>
    %15 = arith.truncf %13 : vector<64x128xf32> to vector<64x128xbf16>
    %cst_9 = arith.constant dense<0.000000e+00> : vector<64x256xf32>
    %16 = tpu.matmul %15, %14, %cst_9 {dimension_numbers = #tpu.dot_dimension_numbers<[1], [0], [0], [1], [0, 0, 1, 1], [], []>} : vector<64x128xbf16>, vector<128x256xbf16>, vector<64x256xf32> -> vector<64x256xf32>
    %c0_10 = arith.constant 0 : index
    %c128 = arith.constant 128 : index
    %17 = vector.load %arg4[%c0_10, %c128] : memref<1x3968xf32, #tpu.memory_space<vmem>>, vector<1x256xf32>
    %c0_11 = arith.constant 0 : index
    %c384 = arith.constant 384 : index
    %18 = vector.load %arg4[%c0_11, %c384] : memref<1x3968xf32, #tpu.memory_space<vmem>>, vector<1x256xf32>
    %cst_12 = arith.constant dense<0.000000e+00> : vector<256xf32>
    %19 = vector.multi_reduction <add>, %16, %cst_12 [0] : vector<64x256xf32> to vector<256xf32>
    %20 = vector.shape_cast %19 : vector<256xf32> to vector<1x256xf32>
    %cst_13 = arith.constant 6.400000e+01 : f32
    %21 = vector.broadcast %cst_13 : f32 to vector<1x256xf32>
    %22 = arith.divf %20, %21 : vector<1x256xf32>
    %23 = vector.broadcast %22 : vector<1x256xf32> to vector<64x256xf32>
    %24 = arith.subf %16, %23 : vector<64x256xf32>
    %25 = arith.mulf %24, %24 : vector<64x256xf32>
    %cst_14 = arith.constant dense<0.000000e+00> : vector<256xf32>
    %26 = vector.multi_reduction <add>, %25, %cst_14 [0] : vector<64x256xf32> to vector<256xf32>
    %27 = vector.shape_cast %26 : vector<256xf32> to vector<1x256xf32>
    %cst_15 = arith.constant 6.400000e+01 : f32
    %28 = vector.broadcast %cst_15 : f32 to vector<1x256xf32>
    %29 = arith.divf %27, %28 : vector<1x256xf32>
    %cst_16 = arith.constant 8.000000e-01 : f32
    %30 = vector.broadcast %cst_16 : f32 to vector<1x256xf32>
    %31 = arith.addf %29, %30 : vector<1x256xf32>
    %32 = math.rsqrt %31 : vector<1x256xf32>
    %33 = arith.mulf %17, %32 : vector<1x256xf32>
    %34 = vector.broadcast %22 : vector<1x256xf32> to vector<64x256xf32>
    %35 = arith.subf %16, %34 : vector<64x256xf32>
    %36 = vector.broadcast %33 : vector<1x256xf32> to vector<64x256xf32>
    %37 = arith.mulf %35, %36 : vector<64x256xf32>
    %38 = vector.broadcast %18 : vector<1x256xf32> to vector<64x256xf32>
    %39 = arith.addf %37, %38 : vector<64x256xf32>
    %cst_17 = arith.constant 0.000000e+00 : f32
    %40 = vector.broadcast %cst_17 : f32 to vector<64x256xf32>
    %41 = arith.cmpf ogt, %39, %40 : vector<64x256xf32>
    %cst_18 = arith.constant 2.000000e-01 : f32
    %42 = vector.broadcast %cst_18 : f32 to vector<64x256xf32>
    %43 = arith.mulf %42, %39 : vector<64x256xf32>
    %44 = arith.select %41, %39, %43 : vector<64x256xi1>, vector<64x256xf32>
    %c0_19 = arith.constant 0 : index
    %c0_20 = arith.constant 0 : index
    %45 = vector.load %arg3[%c0_19, %c0_20] : memref<256x512xbf16, #tpu.memory_space<vmem>>, vector<256x512xbf16>
    %46 = arith.truncf %44 : vector<64x256xf32> to vector<64x256xbf16>
    %cst_21 = arith.constant dense<0.000000e+00> : vector<64x512xf32>
    %47 = tpu.matmul %46, %45, %cst_21 {dimension_numbers = #tpu.dot_dimension_numbers<[1], [0], [0], [1], [0, 0, 1, 1], [], []>} : vector<64x256xbf16>, vector<256x512xbf16>, vector<64x512xf32> -> vector<64x512xf32>
    %c0_22 = arith.constant 0 : index
    %c640 = arith.constant 640 : index
    %48 = vector.load %arg4[%c0_22, %c640] : memref<1x3968xf32, #tpu.memory_space<vmem>>, vector<1x512xf32>
    %c0_23 = arith.constant 0 : index
    %c1152 = arith.constant 1152 : index
    %49 = vector.load %arg4[%c0_23, %c1152] : memref<1x3968xf32, #tpu.memory_space<vmem>>, vector<1x512xf32>
    %cst_24 = arith.constant dense<0.000000e+00> : vector<512xf32>
    %50 = vector.multi_reduction <add>, %47, %cst_24 [0] : vector<64x512xf32> to vector<512xf32>
    %51 = vector.shape_cast %50 : vector<512xf32> to vector<1x512xf32>
    %cst_25 = arith.constant 6.400000e+01 : f32
    %52 = vector.broadcast %cst_25 : f32 to vector<1x512xf32>
    %53 = arith.divf %51, %52 : vector<1x512xf32>
    %54 = vector.broadcast %53 : vector<1x512xf32> to vector<64x512xf32>
    %55 = arith.subf %47, %54 : vector<64x512xf32>
    %56 = arith.mulf %55, %55 : vector<64x512xf32>
    %cst_26 = arith.constant dense<0.000000e+00> : vector<512xf32>
    %57 = vector.multi_reduction <add>, %56, %cst_26 [0] : vector<64x512xf32> to vector<512xf32>
    %58 = vector.shape_cast %57 : vector<512xf32> to vector<1x512xf32>
    %cst_27 = arith.constant 6.400000e+01 : f32
    %59 = vector.broadcast %cst_27 : f32 to vector<1x512xf32>
    %60 = arith.divf %58, %59 : vector<1x512xf32>
    %cst_28 = arith.constant 8.000000e-01 : f32
    %61 = vector.broadcast %cst_28 : f32 to vector<1x512xf32>
    %62 = arith.addf %60, %61 : vector<1x512xf32>
    %63 = math.rsqrt %62 : vector<1x512xf32>
    %64 = arith.mulf %48, %63 : vector<1x512xf32>
    %65 = vector.broadcast %53 : vector<1x512xf32> to vector<64x512xf32>
    %66 = arith.subf %47, %65 : vector<64x512xf32>
    %67 = vector.broadcast %64 : vector<1x512xf32> to vector<64x512xf32>
    %68 = arith.mulf %66, %67 : vector<64x512xf32>
    %69 = vector.broadcast %49 : vector<1x512xf32> to vector<64x512xf32>
    %70 = arith.addf %68, %69 : vector<64x512xf32>
    %cst_29 = arith.constant 0.000000e+00 : f32
    %71 = vector.broadcast %cst_29 : f32 to vector<64x512xf32>
    %72 = arith.cmpf ogt, %70, %71 : vector<64x512xf32>
    %cst_30 = arith.constant 2.000000e-01 : f32
    %73 = vector.broadcast %cst_30 : f32 to vector<64x512xf32>
    %74 = arith.mulf %73, %70 : vector<64x512xf32>
    %75 = arith.select %72, %70, %74 : vector<64x512xi1>, vector<64x512xf32>
    %c0_i32_31 = arith.constant 0 : i32
    %76 = tpu.memref_slice %arg10[%c0_i32_31] : memref<2x!tpu.dma_semaphore, #tpu.memory_space<semaphore_mem>> -> memref<1x!tpu.dma_semaphore, #tpu.memory_space<semaphore_mem>>
    %77 = tpu.memref_squeeze %76 : memref<1x!tpu.dma_semaphore, #tpu.memory_space<semaphore_mem>> -> memref<!tpu.dma_semaphore, #tpu.memory_space<semaphore_mem>>
    tpu.wait_dma2 semaphore(%77 : memref<!tpu.dma_semaphore, #tpu.memory_space<semaphore_mem>>) src(%arg5 : memref<512x1024xbf16, #tpu.memory_space<hbm>>) dst(%arg8 : memref<512x1024xbf16, #tpu.memory_space<vmem>>)
    %c1_i32 = arith.constant 1 : i32
    %78 = tpu.memref_slice %arg10[%c1_i32] : memref<2x!tpu.dma_semaphore, #tpu.memory_space<semaphore_mem>> -> memref<1x!tpu.dma_semaphore, #tpu.memory_space<semaphore_mem>>
    %79 = tpu.memref_squeeze %78 : memref<1x!tpu.dma_semaphore, #tpu.memory_space<semaphore_mem>> -> memref<!tpu.dma_semaphore, #tpu.memory_space<semaphore_mem>>
    tpu.enqueue_dma source(%arg6 : memref<1024x256xbf16, #tpu.memory_space<hbm>>) target(%arg9 : memref<1024x256xbf16, #tpu.memory_space<vmem>>) target_semaphore(%79 : memref<!tpu.dma_semaphore, #tpu.memory_space<semaphore_mem>>)
    %c0_32 = arith.constant 0 : index
    %c0_33 = arith.constant 0 : index
    %80 = vector.load %arg8[%c0_32, %c0_33] : memref<512x1024xbf16, #tpu.memory_space<vmem>>, vector<512x1024xbf16>
    %81 = arith.truncf %75 : vector<64x512xf32> to vector<64x512xbf16>
    %cst_34 = arith.constant dense<0.000000e+00> : vector<64x1024xf32>
    %82 = tpu.matmul %81, %80, %cst_34 {dimension_numbers = #tpu.dot_dimension_numbers<[1], [0], [0], [1], [0, 0, 1, 1], [], []>} : vector<64x512xbf16>, vector<512x1024xbf16>, vector<64x1024xf32> -> vector<64x1024xf32>
    %c0_35 = arith.constant 0 : index
    %c1664 = arith.constant 1664 : index
    %83 = vector.load %arg4[%c0_35, %c1664] : memref<1x3968xf32, #tpu.memory_space<vmem>>, vector<1x1024xf32>
    %c0_36 = arith.constant 0 : index
    %c2688 = arith.constant 2688 : index
    %84 = vector.load %arg4[%c0_36, %c2688] : memref<1x3968xf32, #tpu.memory_space<vmem>>, vector<1x1024xf32>
    %cst_37 = arith.constant dense<0.000000e+00> : vector<1024xf32>
    %85 = vector.multi_reduction <add>, %82, %cst_37 [0] : vector<64x1024xf32> to vector<1024xf32>
    %86 = vector.shape_cast %85 : vector<1024xf32> to vector<1x1024xf32>
    %cst_38 = arith.constant 6.400000e+01 : f32
    %87 = vector.broadcast %cst_38 : f32 to vector<1x1024xf32>
    %88 = arith.divf %86, %87 : vector<1x1024xf32>
    %89 = vector.broadcast %88 : vector<1x1024xf32> to vector<64x1024xf32>
    %90 = arith.subf %82, %89 : vector<64x1024xf32>
    %91 = arith.mulf %90, %90 : vector<64x1024xf32>
    %cst_39 = arith.constant dense<0.000000e+00> : vector<1024xf32>
    %92 = vector.multi_reduction <add>, %91, %cst_39 [0] : vector<64x1024xf32> to vector<1024xf32>
    %93 = vector.shape_cast %92 : vector<1024xf32> to vector<1x1024xf32>
    %cst_40 = arith.constant 6.400000e+01 : f32
    %94 = vector.broadcast %cst_40 : f32 to vector<1x1024xf32>
    %95 = arith.divf %93, %94 : vector<1x1024xf32>
    %cst_41 = arith.constant 8.000000e-01 : f32
    %96 = vector.broadcast %cst_41 : f32 to vector<1x1024xf32>
    %97 = arith.addf %95, %96 : vector<1x1024xf32>
    %98 = math.rsqrt %97 : vector<1x1024xf32>
    %99 = arith.mulf %83, %98 : vector<1x1024xf32>
    %100 = vector.broadcast %88 : vector<1x1024xf32> to vector<64x1024xf32>
    %101 = arith.subf %82, %100 : vector<64x1024xf32>
    %102 = vector.broadcast %99 : vector<1x1024xf32> to vector<64x1024xf32>
    %103 = arith.mulf %101, %102 : vector<64x1024xf32>
    %104 = vector.broadcast %84 : vector<1x1024xf32> to vector<64x1024xf32>
    %105 = arith.addf %103, %104 : vector<64x1024xf32>
    %cst_42 = arith.constant 0.000000e+00 : f32
    %106 = vector.broadcast %cst_42 : f32 to vector<64x1024xf32>
    %107 = arith.cmpf ogt, %105, %106 : vector<64x1024xf32>
    %cst_43 = arith.constant 2.000000e-01 : f32
    %108 = vector.broadcast %cst_43 : f32 to vector<64x1024xf32>
    %109 = arith.mulf %108, %105 : vector<64x1024xf32>
    %110 = arith.select %107, %105, %109 : vector<64x1024xi1>, vector<64x1024xf32>
    %c1_i32_44 = arith.constant 1 : i32
    %111 = tpu.memref_slice %arg10[%c1_i32_44] : memref<2x!tpu.dma_semaphore, #tpu.memory_space<semaphore_mem>> -> memref<1x!tpu.dma_semaphore, #tpu.memory_space<semaphore_mem>>
    %112 = tpu.memref_squeeze %111 : memref<1x!tpu.dma_semaphore, #tpu.memory_space<semaphore_mem>> -> memref<!tpu.dma_semaphore, #tpu.memory_space<semaphore_mem>>
    tpu.wait_dma2 semaphore(%112 : memref<!tpu.dma_semaphore, #tpu.memory_space<semaphore_mem>>) src(%arg6 : memref<1024x256xbf16, #tpu.memory_space<hbm>>) dst(%arg9 : memref<1024x256xbf16, #tpu.memory_space<vmem>>)
    %c0_45 = arith.constant 0 : index
    %c0_46 = arith.constant 0 : index
    %113 = vector.load %arg9[%c0_45, %c0_46] : memref<1024x256xbf16, #tpu.memory_space<vmem>>, vector<1024x256xbf16>
    %114 = arith.truncf %110 : vector<64x1024xf32> to vector<64x1024xbf16>
    %cst_47 = arith.constant dense<0.000000e+00> : vector<64x256xf32>
    %115 = tpu.matmul %114, %113, %cst_47 {dimension_numbers = #tpu.dot_dimension_numbers<[1], [0], [0], [1], [0, 0, 1, 1], [], []>} : vector<64x1024xbf16>, vector<1024x256xbf16>, vector<64x256xf32> -> vector<64x256xf32>
    %c0_48 = arith.constant 0 : index
    %c3712 = arith.constant 3712 : index
    %116 = vector.load %arg4[%c0_48, %c3712] : memref<1x3968xf32, #tpu.memory_space<vmem>>, vector<1x256xf32>
    %117 = vector.broadcast %116 : vector<1x256xf32> to vector<64x256xf32>
    %118 = arith.addf %115, %117 : vector<64x256xf32>
    %119 = math.tanh %118 : vector<64x256xf32>
    %c0_49 = arith.constant 0 : index
    %c0_50 = arith.constant 0 : index
    %120 = vector.load %arg7[%c0_49, %c0_50] : memref<64x256xf32, #tpu.memory_space<vmem>>, vector<64x256xf32>
    tpu.vector_store %arg7[%c0_49, %c0_50], %119 {strides = array<i32>} : memref<64x256xf32, #tpu.memory_space<vmem>>, vector<64x256xf32>,
    return
  }
}

</mosaic_0001>

<bundles_post_ra>
// kernel: generator_forward.1
= control target key start
LH: loop header
LB: loop body
LE: loop exit
PB: predicated region body
PF: predicated region fallthrough
CT: control target
= control target key end

     0   :  { %12 = vsyncpa [#allocation6], 0  ;;  %s6941_s0 = inlined_call_operand.vmem [shape: f32[64,32], index: 0, kind: input, shape index: {}]   ;;  %s6942_s1 = inlined_call_operand.vmem [shape: bf16[32,128], index: 1, kind: input, shape index: {}]   ;;  %s6943_s2 = inlined_call_operand.hbm [shape: bf16[128,256], index: 2, kind: input, shape index: {}]   ;;  %s6944_s3 = inlined_call_operand.hbm [shape: bf16[256,512], index: 3, kind: input, shape index: {}]   ;;  %s6945_s4 = inlined_call_operand.vmem [shape: f32[1,3968], index: 4, kind: input, shape index: {}]   ;;  %s6946_s5 = inlined_call_operand.hbm [shape: bf16[512,1024], index: 5, kind: input, shape index: {}]   ;;  %s6947_s6 = inlined_call_operand.hbm [shape: bf16[1024,256], index: 6, kind: input, shape index: {}]   ;;  %s6948_s7 = inlined_call_operand.vmem [shape: f32[64,256], index: 7, kind: output, shape index: {}]  }
   0x1   :  { %13 = vsyncpa [#allocation8], 0  ;;  %s4305_s24 = smov [#allocation5]   ;;  %s4253_s28 = scalar_lea.hbm %s6943_s2, 2048 }
   0x2   :  { %s23_s25 = sshll.u32 %s4305_s24, 4  ;;  %p4254_p0 = scmp.ne.s32.totalorder %s6943_s2, %s4253_s28  ;;  %s24_s25 = int_to_ptr.vmem [resolvable:$true] %s23_s25 }
   0x3   :  { %p4257_p1 = scmp.lt.u32.totalorder %s4253_s28, %s6943_s2 }
   0x5   :  { %p4259_p2 = pnand %p4257_p1, %p4254_p0 }
   0x7   :  { %4262 = shalt.err (!%p4259_p2)
}
   0x8   :  { %s4263_s10 = scalar_lea.vmem %s24_s25, 2048  ;;  %p4268_p4 = scmp.lt.s32.totalorder %s24_s25, %s24_s25 }
   0x9   :  { %p4264_p3 = scmp.ne.s32.totalorder %s24_s25, %s4263_s10  ;;  %p4269_p5 = scmp.lt.s32.totalorder %s4263_s10, %s4263_s10 }
   0xb   :  { %p4270_p6 = por %p4269_p5, %p4268_p4 }
   0xd   :  { %p4271_p7 = pnand %p4270_p6, %p4264_p3 }
   0xf   :  { %4274 = shalt.err (!%p4271_p7)
}
  0x10   :  { %s4306_s11 = smov 128   ;;  %s4307_s12 = smov 8  }
  0x11   :  { %29 = dma.hbm_to_vmem [thread:$0]  %s6943_s2, 2048, %s24_s25, [#allocation6], %s4306_s11, %s4306_s11, %s4307_s12  }
  0x12   :  { %s4308_s15 = smov [#allocation7]   ;;  %s4275_s19 = scalar_lea.hbm %s6944_s3, 8192 }
  0x13   :  { %s35_s16 = sshll.u32 %s4308_s15, 4  ;;  %p4276_p8 = scmp.ne.s32.totalorder %s6944_s3, %s4275_s19  ;;  %s36_s16 = int_to_ptr.vmem [resolvable:$true] %s35_s16 }
  0x14   :  { %p4279_p9 = scmp.lt.u32.totalorder %s4275_s19, %s6944_s3 }
  0x16   :  { %p4281_p10 = pnand %p4279_p9, %p4276_p8 }
  0x18   :  { %4284 = shalt.err (!%p4281_p10)
}
  0x19   :  { %s4285_s24 = scalar_lea.vmem %s36_s16, 8192  ;;  %p4290_p12 = scmp.lt.s32.totalorder %s36_s16, %s36_s16 }
  0x1a   :  { %p4286_p11 = scmp.ne.s32.totalorder %s36_s16, %s4285_s24  ;;  %p4291_p13 = scmp.lt.s32.totalorder %s4285_s24, %s4285_s24 }
  0x1c   :  { %p4292_p0 = por %p4291_p13, %p4290_p12 }
  0x1e   :  { %p4293_p1 = pnand %p4292_p0, %p4286_p11 }
  0x20   :  { %4296 = shalt.err (!%p4293_p1)
}
  0x21   :  { %s4309_s2 = smov 256   ;;  %s4310_s25 = smov 16  }
  0x22   :  { %41 = dma.hbm_to_vmem [thread:$0]  %s6944_s3, 8192, %s36_s16, [#allocation8], %s4309_s2, %s4309_s2, %s4310_s25  }
  0x23   :  { %4297 = dma.done.wait [#allocation6], 2048  }
  0x24   :  { %4298 = vsyncadd [#allocation6], 4294965248 }
  0x25   :  { %4299 = dma.done.wait [#allocation8], 8192  }
  0x26   :  { %4300 = vsyncadd [#allocation8], 4294959104  ;;  %s55_s28 = sld [smem:[#allocation0]]   ;;  %s4311_s29 = smov 1024   ;;  %vm121_vm0 = vcmask 261120   ;;  %v4319_v30 = vmov 0  }
  0x27   :  { %67 = sst [smem:[#allocation10]] %s4311_s29  ;;  %s4312_s30 = smov 64   ;;  %355 = vmatprep.mubr.bf16.mxu1 %v4319_v30 }
  0x28   :  { %69 = sst [smem:[#allocation10 + $0x1]] %s4311_s29  ;;  %s4313_s8 = smov 2  }
  0x29   :  { %71 = sst [smem:[#allocation10 + $0x2]] %s4307_s12  ;;  %s4314_s9 = smov [#allocation2]  }
  0x2a   :  { %73 = sst [smem:[#allocation10 + $0x3]] %s4312_s30  ;;  %s63_s10 = sshll.u32 %s4314_s9, 4  ;;  %s64_s10 = int_to_ptr.vmem [resolvable:$true] %s63_s10 }
  0x2b   :  { %75 = sst [smem:[#allocation10 + $0x4]] %s4306_s11  ;;  %s4315_s13 = smov 512  }
  0x2c   :  { %77 = sst [smem:[#allocation10 + $0x5]] %s4313_s8  ;;  %s3813_s3 = sshll.u32 %s55_s28, 26 }
  0x2d   :  { %79 = sst [smem:[#allocation10 + $0x6]] %s4315_s13  ;;  %s4395_s14 = sadd.s32 134217728, %s3813_s3 }
  0x2e   :  { %81 = sst [smem:[#allocation10 + $0x7]] %s4312_s30  ;;  %s4316_s15 = smov 4  }
  0x2f   :  { %83 = sst [smem:[#allocation10 + $0x8]] %s4316_s15  ;;  %s4317_s12 = smov [#allocation4]  }
  0x30   :  { %s4318_s16 = smov [#allocation9]  }
  0x31   :  { %85 = dma.general %s6946_s5, 32768, %s64_s10, %s4317_s12, %s4318_s16, [#allocation10], %s4395_s14, 0  }
  0x32   :  { %v4071_v0 = vld [vmem:[%s6942_s1] sm:$0xff]   ;;  %v4072_v1 = vld [vmem:[%s6942_s1 + $0x8] sm:$0xff]   ;;  %v88_v5 = vld [vmem:[%s6941_s0 + $0x10] sm:$0xff] }
  0x33   :  { %3912 = vmatprep.subr.bf16.mxu0 %v4071_v0  ;;  %v86_v2 = vld [vmem:[%s6941_s0] sm:$0xff]  ;;  %v87_v3 = vld [vmem:[%s6941_s0 + $0x8] sm:$0xff]  ;;  %v89_v6 = vld [vmem:[%s6941_s0 + $0x18] sm:$0xff] }
  0x34   :  { %3913 = vmatpush3.bf16.msra.mxu0 %v4071_v0  ;;  %v98_v4 = vpack.c.bf16 %v87_v3, %v86_v2  ;;  %v90_v7 = vld [vmem:[%s6941_s0 + $0x20] sm:$0xff]  ;;  %v91_v8 = vld [vmem:[%s6941_s0 + $0x28] sm:$0xff]  ;;  %v99_v11 = vpack.c.bf16 %v89_v6, %v88_v5  ;;  %v4076_v12 = vld [vmem:[#allocation5 + $0x14] ss:$8 sps:$4 sm:$0xff]  }
  0x35   :  { %3914 = vmatprep.subr.bf16.mxu0 %v4072_v1  ;;  %v4073_v9 = vld [vmem:[#allocation5 + $0x4] ss:$8 sps:$4 sm:$0xff]   ;;  %v4075_v10 = vld [vmem:[#allocation5] ss:$8 sps:$4 sm:$0xff]   ;;  %v100_v13 = vpack.c.bf16 %v91_v8, %v90_v7  ;;  %v4078_v14 = vld [vmem:[#allocation5 + $0x10] ss:$8 sps:$4 sm:$0xff]  }
  0x36   :  { %3916 = vmatprep.mubr.msk.bf16.mxu0 %vm121_vm0, %v98_v4  ;;  %323 = vmatprep.subr.bf16.mxu1 %v4073_v9  ;;  %v92_v15 = vld [vmem:[%s6941_s0 + $0x30] sm:$0xff]  ;;  %v4079_v16 = vld [vmem:[#allocation5 + $0x24] ss:$8 sps:$4 sm:$0xff]   ;;  %v93_v17 = vld [vmem:[%s6941_s0 + $0x38] sm:$0xff] }
  0x37   :  { %324 = vmatpush1.bf16.msra.mxu1 %v4075_v10  ;;  %v4081_v18 = vld [vmem:[#allocation5 + $0x20] ss:$8 sps:$4 sm:$0xff]   ;;  %v4082_v19 = vld [vmem:[#allocation5 + $0x34] ss:$8 sps:$4 sm:$0xff]   ;;  %v101_v20 = vpack.c.bf16 %v93_v17, %v92_v15  ;;  %v4084_v21 = vld [vmem:[#allocation5 + $0x30] ss:$8 sps:$4 sm:$0xff]  }
  0x38   :  { %3915 = vmatpush3.bf16.msra.mxu0 %v4072_v1  ;;  %325 = vmatprep.subr.bf16.mxu1 %v4076_v12  ;;  %v4085_v22 = vld [vmem:[#allocation5 + $0x44] ss:$8 sps:$4 sm:$0xff]   ;;  %v4087_v23 = vld [vmem:[#allocation5 + $0x40] ss:$8 sps:$4 sm:$0xff]   ;;  %v4088_v24 = vld [vmem:[#allocation5 + $0x54] ss:$8 sps:$4 sm:$0xff]  }
  0x39   :  { %v4090_v25 = vld [vmem:[#allocation5 + $0x50] ss:$8 sps:$4 sm:$0xff]   ;;  %v4091_v26 = vld [vmem:[#allocation5 + $0x64] ss:$8 sps:$4 sm:$0xff]   ;;  %v4093_v27 = vld [vmem:[#allocation5 + $0x60] ss:$8 sps:$4 sm:$0xff]  }
  0x3a   :  { %v4094_v28 = vld [vmem:[#allocation5 + $0x74] ss:$8 sps:$4 sm:$0xff]   ;;  %v4096_v29 = vld [vmem:[#allocation5 + $0x70] ss:$8 sps:$4 sm:$0xff]   ;;  %v3815_v31 = vld [vmem:[%s6945_s4] ss:$0 sm:$0xff] }
  0x3b   :  { %3917 = vmatmul.mubr.msk.bf16.vlgmr.msra.gmra.mrb[0].mxu0 %vm121_vm0, %v99_v11  ;;  %326 = vmatpush1.bf16.msra.mxu1 %v4078_v14  ;;  %v4099_v4 = vld [vmem:[#allocation7 + $0x4] ss:$16 sps:$4 sm:$0xff]   ;;  %v4097_v5 = vld [vmem:[#allocation7] ss:$16 sps:$4 sm:$0xff]  }
  0x3c   :  { %3920 = vmatprep.mubr.msk.bf16.mxu0 %vm121_vm0, %v100_v13  ;;  %327 = vmatprep.subr.bf16.mxu1 %v4079_v16  ;;  %v4102_v6 = vld [vmem:[#allocation7 + $0x24] ss:$16 sps:$4 sm:$0xff]   ;;  %v4100_v7 = vld [vmem:[#allocation7 + $0x20] ss:$16 sps:$4 sm:$0xff]  }
  0x3d   :  { %v4105_v8 = vld [vmem:[#allocation7 + $0x44] ss:$16 sps:$4 sm:$0xff]   ;;  %v4103_v9 = vld [vmem:[#allocation7 + $0x40] ss:$16 sps:$4 sm:$0xff]  }
  0x3e   :  { %v4108_v10 = vld [vmem:[#allocation7 + $0x64] ss:$16 sps:$4 sm:$0xff]   ;;  %v4106_v11 = vld [vmem:[#allocation7 + $0x60] ss:$16 sps:$4 sm:$0xff]  }
  0x3f   :  { %328 = vmatpush1.bf16.msra.mxu1 %v4081_v18  ;;  %v4111_v12 = vld [vmem:[#allocation7 + $0x84] ss:$16 sps:$4 sm:$0xff]   ;;  %v4109_v13 = vld [vmem:[#allocation7 + $0x80] ss:$16 sps:$4 sm:$0xff]  }
  0x40   :  { %329 = vmatprep.subr.bf16.mxu1 %v4082_v19  ;;  %v4114_v14 = vld [vmem:[#allocation7 + $0xa4] ss:$16 sps:$4 sm:$0xff]   ;;  %v4112_v15 = vld [vmem:[#allocation7 + $0xa0] ss:$16 sps:$4 sm:$0xff]  }
  0x41   :  { %v4117_v16 = vld [vmem:[#allocation7 + $0xc4] ss:$16 sps:$4 sm:$0xff]   ;;  %v4115_v17 = vld [vmem:[#allocation7 + $0xc0] ss:$16 sps:$4 sm:$0xff]  }
  0x42   :  { %v4120_v18 = vld [vmem:[#allocation7 + $0xe4] ss:$16 sps:$4 sm:$0xff]   ;;  %v4118_v19 = vld [vmem:[#allocation7 + $0xe0] ss:$16 sps:$4 sm:$0xff]  }
  0x43   :  { %3921 = vmatmul.mubr.msk.bf16.gmra.mrb[4].mxu0 %vm121_vm0, %v101_v20  ;;  %330 = vmatpush1.bf16.msra.mxu1 %v4084_v21  ;;  %v4123_v20 = vld [vmem:[#allocation7 + $0x104] ss:$16 sps:$4 sm:$0xff]   ;;  %v4121_v21 = vld [vmem:[#allocation7 + $0x100] ss:$16 sps:$4 sm:$0xff]  }
  0x44   :  { %331 = vmatprep.subr.bf16.mxu1 %v4085_v22  ;;  %v4126_v22 = vld [vmem:[#allocation7 + $0x124] ss:$16 sps:$4 sm:$0xff]  }
  0x47   :  { %332 = vmatpush1.bf16.msra.mxu1 %v4087_v23  ;;  %v4124_v23 = vld [vmem:[#allocation7 + $0x120] ss:$16 sps:$4 sm:$0xff]  }
  0x48   :  { %333 = vmatprep.subr.bf16.mxu1 %v4088_v24  ;;  %v4129_v24 = vld [vmem:[#allocation7 + $0x144] ss:$16 sps:$4 sm:$0xff]  }
  0x4b   :  { %334 = vmatpush1.bf16.msra.mxu1 %v4090_v25  ;;  %v4127_v25 = vld [vmem:[#allocation7 + $0x140] ss:$16 sps:$4 sm:$0xff]  }
  0x4c   :  { %335 = vmatprep.subr.bf16.mxu1 %v4091_v26  ;;  %v4132_v26 = vld [vmem:[#allocation7 + $0x164] ss:$16 sps:$4 sm:$0xff]  }
  0x4f   :  { %336 = vmatpush1.bf16.msra.mxu1 %v4093_v27  ;;  %v4130_v27 = vld [vmem:[#allocation7 + $0x160] ss:$16 sps:$4 sm:$0xff]  }
  0x50   :  { %337 = vmatprep.subr.bf16.mxu1 %v4094_v28  ;;  %v4135_v28 = vld [vmem:[#allocation7 + $0x184] ss:$16 sps:$4 sm:$0xff]  }
  0x53   :  { %338 = vmatpush1.bf16.msra.mxu1 %v4096_v29  ;;  %v4133_v29 = vld [vmem:[#allocation7 + $0x180] ss:$16 sps:$4 sm:$0xff]  }
  0x54   :  { %1004 = vmatprep.subr.bf16.mxu1 %v4099_v4 }
 0x10e   :  { %v3918_v32 = vpop.f32.mrb[0].mxu0 }
 0x10f   :  { %v177_v33 = vadd.f32 %v3918_v32, %v3815_v31  ;;  %v168_v34 = vpop.f32.mrb[1].mxu0  ;;  %v4141_v32 = vld [vmem:[#allocation7 + $0x1c4] ss:$16 sps:$4 sm:$0xff]  }
 0x110   :  { %v169_v35 = vadd.f32 %v3815_v31, %v168_v34  ;;  %v3919_v36 = vpop.f32.mrb[2].mxu0  ;;  %v4144_v34 = vld [vmem:[#allocation7 + $0x1e4] ss:$16 sps:$4 sm:$0xff]  }
 0x111   :  { %v209_v37 = vmul.f32 0.2, %v177_v33  ;;  %v180_v38 = vadd.f32 %v3919_v36, %v3815_v31  ;;  %v171_v39 = vpop.f32.mrb[3].mxu0  ;;  %vm201_vm1 = vcmp.gt.f32.partialorder %v177_v33, 0.0  ;;  %v4147_v36 = vld [vmem:[#allocation7 + $0xc] ss:$16 sps:$4 sm:$0xff]  }
 0x112   :  { %v207_v40 = vmul.f32 0.2, %v169_v35  ;;  %v172_v41 = vadd.f32 %v3815_v31, %v171_v39  ;;  %vm199_vm2 = vcmp.gt.f32.partialorder %v169_v35, 0.0 }
 0x113   :  { %vm202_vm3 = vcmp.gt.f32.partialorder %v180_v38, 0.0  ;;  %v210_v42 = vmul.f32 0.2, %v180_v38  ;;  %v217_v44 = vsel %vm201_vm1, %v177_v33, %v209_v37  ;;  %v4139_v33 = vld [vmem:[#allocation7 + $0x1c0] ss:$16 sps:$4 sm:$0xff]  }
 0x114   :  { %vm200_vm4 = vcmp.gt.f32.partialorder %v172_v41, 0.0  ;;  %v208_v43 = vmul.f32 0.2, %v172_v41  ;;  %v215_v47 = vsel %vm199_vm2, %v169_v35, %v207_v40  ;;  %v4142_v35 = vld [vmem:[#allocation7 + $0x1e0] ss:$16 sps:$4 sm:$0xff]  }
 0x115   :  { %v218_v45 = vsel %vm202_vm3, %v180_v38, %v210_v42 }
 0x116   :  { %v3922_v46 = vpop.f32.mrb[4].mxu0  ;;  %v216_v48 = vsel %vm200_vm4, %v172_v41, %v208_v43  ;;  %v240_v49 = vpack.c.bf16 %v218_v45, %v217_v44 }
 0x117   :  { %v193_v50 = vadd.f32 %v3922_v46, %v3815_v31  ;;  %v239_v51 = vpack.c.bf16 %v216_v48, %v215_v47  ;;  %v184_v52 = vpop.f32.mrb[5].mxu0 }
 0x118   :  { %v185_v53 = vadd.f32 %v3815_v31, %v184_v52  ;;  %v3923_v54 = vpop.f32.mrb[6].mxu0 }
 0x119   :  { %vm205_vm5 = vcmp.gt.f32.partialorder %v193_v50, 0.0  ;;  %v213_v55 = vmul.f32 0.2, %v193_v50  ;;  %356 = vmatmul.mubr.bf16.vlgmr.msra.gmra.mrb[0].mxu1 %v239_v51  ;;  %v196_v56 = vadd.f32 %v3923_v54, %v3815_v31  ;;  %v187_v57 = vpop.f32.mrb[7].mxu0 }
 0x11a   :  { %vm203_vm6 = vcmp.gt.f32.partialorder %v185_v53, 0.0  ;;  %v211_v58 = vmul.f32 0.2, %v185_v53  ;;  %v188_v59 = vadd.f32 %v3815_v31, %v187_v57  ;;  %365 = vmatprep.mubr.bf16.mxu1 %v4319_v30  ;;  %1005 = vmatpush1.bf16.msra.mxu1 %v4097_v5  ;;  %v4136_v31 = vld [vmem:[#allocation7 + $0x1a0] ss:$16 sps:$4 sm:$0xff]  }
 0x11b   :  { %vm206_vm7 = vcmp.gt.f32.partialorder %v196_v56, 0.0  ;;  %v214_v60 = vmul.f32 0.2, %v196_v56  ;;  %v221_v61 = vsel %vm205_vm5, %v193_v50, %v213_v55  ;;  %1006 = vmatprep.subr.bf16.mxu1 %v4102_v6 }
 0x11c   :  { %vm204_vm8 = vcmp.gt.f32.partialorder %v188_v59, 0.0  ;;  %v212_v62 = vmul.f32 0.2, %v188_v59  ;;  %v219_v63 = vsel %vm203_vm6, %v185_v53, %v211_v58 }
 0x11d   :  { %v222_v0 = vsel %vm206_vm7, %v196_v56, %v214_v60 }
 0x11e   :  { %v220_v1 = vsel %vm204_vm8, %v188_v59, %v212_v62  ;;  %v242_v2 = vpack.c.bf16 %v222_v0, %v221_v61  ;;  %1007 = vmatpush1.bf16.msra.mxu1 %v4100_v7 }
 0x11f   :  { %v241_v3 = vpack.c.bf16 %v220_v1, %v219_v63  ;;  %1008 = vmatprep.subr.bf16.mxu1 %v4105_v8 }
 0x121   :  { %366 = vmatmul.mubr.bf16.gmra.mrb[4].mxu1 %v240_v49 }
 0x122   :  { %375 = vmatprep.mubr.bf16.mxu1 %v4319_v30  ;;  %1009 = vmatpush1.bf16.msra.mxu1 %v4103_v9 }
 0x123   :  { %1010 = vmatprep.subr.bf16.mxu1 %v4108_v10 }
 0x126   :  { %1011 = vmatpush1.bf16.msra.mxu1 %v4106_v11 }
 0x127   :  { %1012 = vmatprep.subr.bf16.mxu1 %v4111_v12 }
 0x129   :  { %376 = vmatmul.mubr.bf16.gmra.mrb[8].mxu1 %v241_v3 }
 0x12a   :  { %385 = vmatprep.mubr.bf16.mxu1 %v4319_v30  ;;  %1013 = vmatpush1.bf16.msra.mxu1 %v4109_v13  ;;  %v4138_v30 = vld [vmem:[#allocation7 + $0x1a4] ss:$16 sps:$4 sm:$0xff]  }
 0x12b   :  { %1014 = vmatprep.subr.bf16.mxu1 %v4114_v14 }
 0x12e   :  { %1015 = vmatpush1.bf16.msra.mxu1 %v4112_v15 }
 0x12f   :  { %1016 = vmatprep.subr.bf16.mxu1 %v4117_v16 }
 0x131   :  { %386 = vmatmul.mubr.bf16.gmra.mrb[12].mxu1 %v242_v2 }
 0x132   :  { %1017 = vmatpush1.bf16.msra.mxu1 %v4115_v17 }
 0x133   :  { %1018 = vmatprep.subr.bf16.mxu1 %v4120_v18 }
 0x136   :  { %1019 = vmatpush1.bf16.msra.mxu1 %v4118_v19 }
 0x137   :  { %1020 = vmatprep.subr.bf16.mxu1 %v4123_v20 }
 0x13a   :  { %1021 = vmatpush1.bf16.msra.mxu1 %v4121_v21 }
 0x13b   :  { %1022 = vmatprep.subr.bf16.mxu1 %v4126_v22 }
 0x13e   :  { %1023 = vmatpush1.bf16.msra.mxu1 %v4124_v23 }
 0x13f   :  { %1024 = vmatprep.subr.bf16.mxu1 %v4129_v24 }
 0x142   :  { %1025 = vmatpush1.bf16.msra.mxu1 %v4127_v25 }
 0x143   :  { %1026 = vmatprep.subr.bf16.mxu1 %v4132_v26 }
 0x146   :  { %1027 = vmatpush1.bf16.msra.mxu1 %v4130_v27 }
 0x147   :  { %1028 = vmatprep.subr.bf16.mxu1 %v4135_v28 }
 0x14a   :  { %1029 = vmatpush1.bf16.msra.mxu1 %v4133_v29 }
 0x14b   :  { %1030 = vmatprep.subr.bf16.mxu1 %v4138_v30 }
 0x14e   :  { %1031 = vmatpush1.bf16.msra.mxu1 %v4136_v31 }
 0x14f   :  { %1032 = vmatprep.subr.bf16.mxu1 %v4141_v32 }
 0x152   :  { %1033 = vmatpush1.bf16.msra.mxu1 %v4139_v33 }
 0x153   :  { %1034 = vmatprep.subr.bf16.mxu1 %v4144_v34 }
 0x156   :  { %1035 = vmatpush1.bf16.msra.mxu1 %v4142_v35 }
 0x157   :  { %1077 = vmatprep.subr.bf16.mxu1 %v4147_v36 }
 0x1ec   :  { %v357_v37 = vpop.f32.mrb[0].mxu1 }
 0x1ed   :  { %v359_v38 = vpop.f32.mrb[1].mxu1 }
 0x1ee   :  { %v361_v39 = vpop.f32.mrb[2].mxu1 }
 0x1ef   :  { %v398_v40 = vadd.f32 %v361_v39, %v357_v37  ;;  %v363_v41 = vpop.f32.mrb[3].mxu1 }
 0x1f0   :  { %v411_v42 = vadd.f32 %v363_v41, %v359_v38 }
 0x1f4   :  { %v367_v43 = vpop.f32.mrb[4].mxu1 }
 0x1f5   :  { %v399_v44 = vadd.f32 %v398_v40, %v367_v43  ;;  %v369_v45 = vpop.f32.mrb[5].mxu1 }
 0x1f6   :  { %v412_v46 = vadd.f32 %v411_v42, %v369_v45  ;;  %v371_v47 = vpop.f32.mrb[6].mxu1 }
 0x1f7   :  { %v400_v48 = vadd.f32 %v399_v44, %v371_v47  ;;  %v373_v49 = vpop.f32.mrb[7].mxu1 }
 0x1f8   :  { %v413_v50 = vadd.f32 %v412_v46, %v373_v49 }
 0x1fc   :  { %v377_v51 = vpop.f32.mrb[8].mxu1 }
 0x1fd   :  { %v401_v52 = vadd.f32 %v400_v48, %v377_v51  ;;  %v379_v53 = vpop.f32.mrb[9].mxu1 }
 0x1fe   :  { %v414_v54 = vadd.f32 %v413_v50, %v379_v53  ;;  %v381_v55 = vpop.f32.mrb[10].mxu1 }
 0x1ff   :  { %v402_v56 = vadd.f32 %v401_v52, %v381_v55  ;;  %v383_v57 = vpop.f32.mrb[11].mxu1 }
 0x200   :  { %v415_v58 = vadd.f32 %v414_v54, %v383_v57 }
 0x204   :  { %v387_v59 = vpop.f32.mrb[12].mxu1 }
 0x205   :  { %v403_v60 = vadd.f32 %v402_v56, %v387_v59  ;;  %v389_v61 = vpop.f32.mrb[13].mxu1 }
 0x206   :  { %v416_v62 = vadd.f32 %v415_v58, %v389_v61  ;;  %v391_v63 = vpop.f32.mrb[14].mxu1 }
 0x207   :  { %v404_v0 = vadd.f32 %v403_v60, %v391_v63  ;;  %v393_v1 = vpop.f32.mrb[15].mxu1 }
 0x208   :  { %v417_v2 = vadd.f32 %v416_v62, %v393_v1 }
 0x209   :  { %v405_v3 = vrot.slane %v404_v0, 4 }
 0x20a   :  { %v418_v4 = vrot.slane %v417_v2, 4 }
 0x20b   :  { %v406_v5 = vadd.f32 %v405_v3, %v404_v0 }
 0x20c   :  { %v419_v6 = vadd.f32 %v418_v4, %v417_v2 }
 0x20d   :  { %v407_v7 = vrot.slane %v406_v5, 2 }
 0x20e   :  { %v420_v8 = vrot.slane %v419_v6, 2 }
 0x20f   :  { %v408_v9 = vadd.f32 %v407_v7, %v406_v5 }
 0x210   :  { %v421_v10 = vadd.f32 %v420_v8, %v419_v6 }
 0x211   :  { %v409_v11 = vrot.slane %v408_v9, 1 }
 0x212   :  { %v422_v12 = vrot.slane %v421_v10, 1 }
 0x213   :  { %v410_v13 = vadd.f32 %v409_v11, %v408_v9 }
 0x214   :  { %v423_v14 = vadd.f32 %v422_v12, %v421_v10 }
 0x215   :  { %v425_v15 = vmul.f32 0.015625, %v410_v13 }
 0x216   :  { %v426_v16 = vmul.f32 0.015625, %v423_v14 }
 0x217   :  { %v4440_v17 = vsub.f32 %v357_v37, %v425_v15  ;;  %v4442_v18 = vsub.f32 %v361_v39, %v425_v15  ;;  %v4444_v19 = vsub.f32 %v367_v43, %v425_v15  ;;  %v4446_v20 = vsub.f32 %v371_v47, %v425_v15 }
 0x218   :  { %v4448_v21 = vsub.f32 %v377_v51, %v425_v15  ;;  %v4450_v22 = vsub.f32 %v381_v55, %v425_v15  ;;  %v4452_v23 = vsub.f32 %v387_v59, %v425_v15  ;;  %v4454_v24 = vsub.f32 %v391_v63, %v425_v15 }
 0x219   :  { %v443_v25 = vmul.f32 %v4440_v17, %v4440_v17  ;;  %v445_v26 = vmul.f32 %v4442_v18, %v4442_v18  ;;  %v447_v27 = vmul.f32 %v4444_v19, %v4444_v19  ;;  %v449_v28 = vmul.f32 %v4446_v20, %v4446_v20 }
 0x21a   :  { %v4464_v30 = vsub.f32 %v359_v38, %v426_v16  ;;  %v4466_v31 = vsub.f32 %v363_v41, %v426_v16  ;;  %v4468_v32 = vsub.f32 %v369_v45, %v426_v16  ;;  %v4470_v33 = vsub.f32 %v373_v49, %v426_v16 }
 0x21b   :  { %v459_v29 = vadd.f32 %v445_v26, %v443_v25  ;;  %v4472_v34 = vsub.f32 %v379_v53, %v426_v16  ;;  %v4474_v35 = vsub.f32 %v383_v57, %v426_v16  ;;  %v4476_v36 = vsub.f32 %v389_v61, %v426_v16 }
 0x21c   :  { %v4478_v39 = vsub.f32 %v393_v1, %v426_v16  ;;  %v444_v40 = vmul.f32 %v4464_v30, %v4464_v30  ;;  %v446_v38 = vmul.f32 %v4466_v31, %v4466_v31  ;;  %v451_v41 = vmul.f32 %v4448_v21, %v4448_v21 }
 0x21d   :  { %v460_v37 = vadd.f32 %v459_v29, %v447_v27  ;;  %v448_v43 = vmul.f32 %v4468_v32, %v4468_v32  ;;  %v453_v45 = vmul.f32 %v4450_v22, %v4450_v22  ;;  %v450_v47 = vmul.f32 %v4470_v33, %v4470_v33 }
 0x21e   :  { %v472_v44 = vadd.f32 %v446_v38, %v444_v40  ;;  %v455_v49 = vmul.f32 %v4452_v23, %v4452_v23  ;;  %v452_v51 = vmul.f32 %v4472_v34, %v4472_v34  ;;  %v457_v53 = vmul.f32 %v4454_v24, %v4454_v24 }
 0x21f   :  { %v461_v42 = vadd.f32 %v460_v37, %v449_v28  ;;  %v454_v55 = vmul.f32 %v4474_v35, %v4474_v35  ;;  %v456_v58 = vmul.f32 %v4476_v36, %v4476_v36  ;;  %v458_v61 = vmul.f32 %v4478_v39, %v4478_v39 }
 0x220   :  { %v473_v48 = vadd.f32 %v472_v44, %v448_v43  ;;  %v4320_v15 = vmov 1966171168   ;;  %v497_v25 = vlaneseq }
 0x221   :  { %v462_v46 = vadd.f32 %v461_v42, %v451_v41  ;;  %v495_v16 = vunpack.c.l.s4 %v4320_v15  ;;  %v396_v41 = vld [vmem:[%s6945_s4 + $0x1] sm:$0x3] }
 0x222   :  { %v474_v52 = vadd.f32 %v473_v48, %v450_v47  ;;  %v4504_v27 = vshrl.u32 %v497_v25, 7  ;;  %v4148_v25 = vld [vmem:[#allocation7 + $0x28] ss:$16 sps:$4 sm:$0xff]  }
 0x223   :  { %v463_v50 = vadd.f32 %v462_v46, %v453_v45  ;;  %v496_v26 = vunpack.c.0.s8 %v495_v16  ;;  %v397_v45 = vld [vmem:[%s6945_s4 + $0x3] sm:$0x3] }
 0x224   :  { %v475_v56 = vadd.f32 %v474_v52, %v452_v51  ;;  %v4515_v43 = vsub.s32 0, %v4504_v27  ;;  %v4518_v44 = vsub.s32 1, %v4504_v27 }
 0x225   :  { %v464_v54 = vadd.f32 %v463_v50, %v455_v49  ;;  %v4507_v29 = vsub.s32 %v496_v26, %v4504_v27 }
 0x226   :  { %v476_v59 = vadd.f32 %v475_v56, %v454_v55  ;;  %7023 = vst [vmem:[#allocation17_spill] sm:$0xff] %v4515_v43  ;;  %7024 = vst [vmem:[#allocation18_spill] sm:$0xff] %v4518_v44  ;;  %v4528_v49 = vrot.slane %v397_v45, %v4515_v43  ;;  %v4531_v50 = vrot.slane %v397_v45, %v4518_v44  ;;  %v4151_v45 = vld [vmem:[#allocation7 + $0x48] ss:$16 sps:$4 sm:$0xff]  }
 0x227   :  { %v465_v57 = vadd.f32 %v464_v54, %v457_v53 }
 0x228   :  { %v477_v62 = vadd.f32 %v476_v59, %v456_v58 }
 0x229   :  { %v466_v60 = vrot.slane %v465_v57, 4 }
 0x22a   :  { %v478_v0 = vadd.f32 %v477_v62, %v458_v61 }
 0x22b   :  { %v467_v63 = vadd.f32 %v466_v60, %v465_v57 }
 0x22c   :  { %v479_v2 = vrot.slane %v478_v0, 4 }
 0x22d   :  { %v468_v1 = vrot.slane %v467_v63, 2 }
 0x22e   :  { %v480_v4 = vadd.f32 %v479_v2, %v478_v0  ;;  %v4145_v2 = vld [vmem:[#allocation7 + $0x8] ss:$16 sps:$4 sm:$0xff]  }
 0x22f   :  { %v469_v3 = vadd.f32 %v468_v1, %v467_v63 }
 0x230   :  { %v481_v6 = vrot.slane %v480_v4, 2 }
 0x231   :  { %v470_v5 = vrot.slane %v469_v3, 1 }
 0x232   :  { %v482_v8 = vadd.f32 %v481_v6, %v480_v4 }
 0x233   :  { %v471_v7 = vadd.f32 %v470_v5, %v469_v3 }
 0x234   :  { %v483_v10 = vrot.slane %v482_v8, 1 }
 0x235   :  { %v485_v9 = vmul.f32 0.015625, %v471_v7  ;;  %v4150_v7 = vld [vmem:[#allocation7 + $0x2c] ss:$16 sps:$4 sm:$0xff]  }
 0x236   :  { %v484_v12 = vadd.f32 %v483_v10, %v482_v8 }
 0x237   :  { %v487_v11 = vadd.f32 0.8, %v485_v9 }
 0x238   :  { %v486_v13 = vmul.f32 0.015625, %v484_v12 }
 0x239   :  { %4193 = vrsqrt.f32 %v487_v11 }
 0x23a   :  { %v488_v14 = vadd.f32 0.8, %v486_v13 }
 0x23c   :  { %4195 = vrsqrt.f32 %v488_v14 }
 0x243   :  { %v4194_v28 = vpop.eup %4193 }
 0x246   :  { %v4196_v37 = vpop.eup %4195 }
 0x247   :  { %v493_v40 = vcombine.low %v4194_v28, %v4196_v37 }
 0x249   :  { %v500_v38 = vrot.slane %v493_v40, %v4507_v29 }
 0x24b   :  { %v507_v42 = vrot.slane %v500_v38, %v4507_v29 }
 0x24d   :  { %v509_v46 = vmul.f32 %v507_v42, %v396_v41 }
 0x24f   :  { %v4524_v47 = vrot.slane %v509_v46, %v4515_v43  ;;  %v518_v48 = vrot.slane %v509_v46, %v4518_v44 }
 0x251   :  { %v536_v51 = vmul.f32 %v518_v48, %v4478_v39  ;;  %v522_v52 = vmul.f32 %v518_v48, %v4464_v30  ;;  %v524_v53 = vmul.f32 %v518_v48, %v4466_v31  ;;  %v521_v54 = vmul.f32 %v4524_v47, %v4440_v17 }
 0x252   :  { %v523_v55 = vmul.f32 %v4524_v47, %v4442_v18  ;;  %v526_v56 = vmul.f32 %v518_v48, %v4468_v32  ;;  %v528_v57 = vmul.f32 %v518_v48, %v4470_v33  ;;  %v525_v58 = vmul.f32 %v4524_v47, %v4444_v19 }
 0x253   :  { %v4545_v59 = vadd.f32 %v4531_v50, %v536_v51  ;;  %v549_v30 = vadd.f32 %v4531_v50, %v522_v52  ;;  %v551_v31 = vadd.f32 %v4531_v50, %v524_v53  ;;  %v548_v39 = vadd.f32 %v4528_v49, %v521_v54 }
 0x254   :  { %v550_v17 = vadd.f32 %v4528_v49, %v523_v55  ;;  %v553_v18 = vadd.f32 %v4531_v50, %v526_v56  ;;  %v555_v32 = vadd.f32 %v4531_v50, %v528_v57  ;;  %v527_v33 = vmul.f32 %v4524_v47, %v4446_v20 }
 0x255   :  { %vm565_vm9 = vcmp.gt.f32.partialorder %v549_v30, 0.0  ;;  %vm567_vm10 = vcmp.gt.f32.partialorder %v551_v31, 0.0  ;;  %v581_v19 = vmul.f32 0.2, %v549_v30  ;;  %v583_v60 = vmul.f32 0.2, %v551_v31 }
 0x256   :  { %vm564_vm11 = vcmp.gt.f32.partialorder %v548_v39, 0.0  ;;  %vm566_vm12 = vcmp.gt.f32.partialorder %v550_v17, 0.0  ;;  %v580_v61 = vmul.f32 0.2, %v548_v39  ;;  %v582_v62 = vmul.f32 0.2, %v550_v17 }
 0x257   :  { %v597_v63 = vsel %vm565_vm9, %v549_v30, %v581_v19  ;;  %v599_v0 = vsel %vm567_vm10, %v551_v31, %v583_v60  ;;  %vm569_vm13 = vcmp.gt.f32.partialorder %v553_v18, 0.0  ;;  %vm571_vm14 = vcmp.gt.f32.partialorder %v555_v32, 0.0  ;;  %v4159_v19 = vld [vmem:[#allocation7 + $0x8c] ss:$16 sps:$4 sm:$0xff]  }
 0x258   :  { %v4555_v1 = vpack.c.bf16 %v599_v0, %v597_v63  ;;  %v596_v3 = vsel %vm564_vm11, %v548_v39, %v580_v61  ;;  %v598_v4 = vsel %vm566_vm12, %v550_v17, %v582_v62  ;;  %v585_v5 = vmul.f32 0.2, %v553_v18  ;;  %v4162_v62 = vld [vmem:[#allocation7 + $0xac] ss:$16 sps:$4 sm:$0xff]   ;;  %v4160_v63 = vld [vmem:[#allocation7 + $0xa8] ss:$16 sps:$4 sm:$0xff]  }
 0x259   :  { %v4557_v6 = vpack.c.bf16 %v598_v4, %v596_v3  ;;  %v587_v20 = vmul.f32 0.2, %v555_v32  ;;  %v552_v8 = vadd.f32 %v4528_v49, %v525_v58  ;;  %v554_v9 = vadd.f32 %v4528_v49, %v527_v33  ;;  %v4165_v0 = vld [vmem:[#allocation7 + $0xcc] ss:$16 sps:$4 sm:$0xff]  }
 0x25a   :  { %1036 = vmatprep.mubr.bf16.mxu1 %v4555_v1  ;;  %v601_v10 = vsel %vm569_vm13, %v553_v18, %v585_v5  ;;  %v530_v11 = vmul.f32 %v518_v48, %v4472_v34  ;;  %v532_v12 = vmul.f32 %v518_v48, %v4474_v35  ;;  %v529_v13 = vmul.f32 %v4524_v47, %v4448_v21  ;;  %v4153_v35 = vld [vmem:[#allocation7 + $0x4c] ss:$16 sps:$4 sm:$0xff]   ;;  %v4154_v18 = vld [vmem:[#allocation7 + $0x68] ss:$16 sps:$4 sm:$0xff]  }
 0x25b   :  { %1037 = vmatmul.mubr.bf16.vlgmr.msra.gmra.mrb[16].mxu1 %v4557_v6  ;;  %v603_v14 = vsel %vm571_vm14, %v555_v32, %v587_v20  ;;  %vm568_vm15 = vcmp.gt.f32.partialorder %v552_v8, 0.0  ;;  %vm570_vm0 = vcmp.gt.f32.partialorder %v554_v9, 0.0  ;;  %v584_v15 = vmul.f32 0.2, %v552_v8  ;;  %v4168_v5 = vld [vmem:[#allocation7 + $0xec] ss:$16 sps:$4 sm:$0xff]  }
 0x25c   :  { %1078 = vmatpush1.bf16.msra.mxu1 %v4145_v2  ;;  %v4568_v16 = vpack.c.bf16 %v603_v14, %v601_v10  ;;  %v586_v26 = vmul.f32 0.2, %v554_v9  ;;  %v557_v28 = vadd.f32 %v4531_v50, %v530_v11  ;;  %v559_v34 = vadd.f32 %v4531_v50, %v532_v12  ;;  %v4166_v20 = vld [vmem:[#allocation7 + $0xe8] ss:$16 sps:$4 sm:$0xff]   ;;  %v4177_v11 = vld [vmem:[#allocation7 + $0x14c] ss:$16 sps:$4 sm:$0xff]  }
 0x25d   :  { %1079 = vmatprep.subr.bf16.mxu1 %v4150_v7  ;;  %v600_v37 = vsel %vm568_vm15, %v552_v8, %v584_v15  ;;  %v531_v21 = vmul.f32 %v4524_v47, %v4450_v22  ;;  %v556_v40 = vadd.f32 %v4528_v49, %v529_v13  ;;  %v534_v38 = vmul.f32 %v518_v48, %v4476_v36  ;;  %v4156_v22 = vld [vmem:[#allocation7 + $0x6c] ss:$16 sps:$4 sm:$0xff]   ;;  %v4169_v8 = vld [vmem:[#allocation7 + $0x108] ss:$16 sps:$4 sm:$0xff]  }
 0x25e   :  { %1046 = vmatprep.mubr.bf16.mxu1 %v4568_v16  ;;  %v602_v41 = vsel %vm570_vm0, %v554_v9, %v586_v26  ;;  %vm573_vm1 = vcmp.gt.f32.partialorder %v557_v28, 0.0  ;;  %vm575_vm2 = vcmp.gt.f32.partialorder %v559_v34, 0.0  ;;  %v589_v42 = vmul.f32 0.2, %v557_v28  ;;  %v4171_v7 = vld [vmem:[#allocation7 + $0x10c] ss:$16 sps:$4 sm:$0xff]  }
 0x25f   :  { %v4577_v46 = vpack.c.bf16 %v602_v41, %v600_v37  ;;  %v591_v51 = vmul.f32 0.2, %v559_v34  ;;  %v558_v52 = vadd.f32 %v4528_v49, %v531_v21  ;;  %vm572_vm3 = vcmp.gt.f32.partialorder %v556_v40, 0.0  ;;  %v4174_v9 = vld [vmem:[#allocation7 + $0x12c] ss:$16 sps:$4 sm:$0xff]  }
 0x260   :  { %1080 = vmatpush1.bf16.msra.mxu1 %v4148_v25  ;;  %v605_v53 = vsel %vm573_vm1, %v557_v28, %v589_v42  ;;  %v588_v54 = vmul.f32 0.2, %v556_v40  ;;  %v561_v55 = vadd.f32 %v4531_v50, %v534_v38  ;;  %vm579_vm4 = vcmp.gt.f32.partialorder %v4545_v59, 0.0  ;;  %v4172_v10 = vld [vmem:[#allocation7 + $0x128] ss:$16 sps:$4 sm:$0xff]  }
 0x261   :  { %1081 = vmatprep.subr.bf16.mxu1 %v4153_v35  ;;  %v607_v36 = vsel %vm575_vm2, %v559_v34, %v591_v51  ;;  %vm574_vm5 = vcmp.gt.f32.partialorder %v558_v52, 0.0  ;;  %v590_v48 = vmul.f32 0.2, %v558_v52  ;;  %v595_v56 = vmul.f32 0.2, %v4545_v59 }
 0x262   :  { %v4583_v57 = vpack.c.bf16 %v607_v36, %v605_v53  ;;  %v604_v58 = vsel %vm572_vm3, %v556_v40, %v588_v54  ;;  %vm577_vm6 = vcmp.gt.f32.partialorder %v561_v55, 0.0  ;;  %v593_v30 = vmul.f32 0.2, %v561_v55  ;;  %v4175_v12 = vld [vmem:[#allocation7 + $0x148] ss:$16 sps:$4 sm:$0xff]  }
 0x263   :  { %1047 = vmatmul.mubr.bf16.gmra.mrb[20].mxu1 %v4577_v46  ;;  %v606_v31 = vsel %vm574_vm5, %v558_v52, %v590_v48  ;;  %v611_v39 = vsel %vm579_vm4, %v4545_v59, %v595_v56  ;;  %v533_v50 = vmul.f32 %v4524_v47, %v4452_v23  ;;  %v535_v17 = vmul.f32 %v4524_v47, %v4454_v24  ;;  %v4157_v23 = vld [vmem:[#allocation7 + $0x88] ss:$16 sps:$4 sm:$0xff]   ;;  %v4180_v13 = vld [vmem:[#allocation7 + $0x16c] ss:$16 sps:$4 sm:$0xff]  }
 0x264   :  { %1082 = vmatpush1.bf16.msra.mxu1 %v4151_v45  ;;  %1056 = vmatprep.mubr.bf16.mxu1 %v4583_v57  ;;  %v4592_v32 = vpack.c.bf16 %v606_v31, %v604_v58  ;;  %v609_v33 = vsel %vm577_vm6, %v561_v55, %v593_v30  ;;  %v4178_v14 = vld [vmem:[#allocation7 + $0x168] ss:$16 sps:$4 sm:$0xff]   ;;  %v4183_v15 = vld [vmem:[#allocation7 + $0x18c] ss:$16 sps:$4 sm:$0xff]  }
 0x265   :  { %1083 = vmatprep.subr.bf16.mxu1 %v4156_v22  ;;  %v4594_v60 = vpack.c.bf16 %v611_v39, %v609_v33  ;;  %v560_v61 = vadd.f32 %v4528_v49, %v533_v50  ;;  %v562_v59 = vadd.f32 %v4528_v49, %v535_v17  ;;  %v4163_v49 = vld [vmem:[#allocation7 + $0xc8] ss:$16 sps:$4 sm:$0xff]   ;;  %v4186_v25 = vld [vmem:[#allocation7 + $0x1ac] ss:$16 sps:$4 sm:$0xff]  }
 0x266   :  { %v4184_v26 = vld [vmem:[#allocation7 + $0x1a8] ss:$16 sps:$4 sm:$0xff]   ;;  %v4189_v28 = vld [vmem:[#allocation7 + $0x1cc] ss:$16 sps:$4 sm:$0xff]  }
 0x267   :  { %v592_v24 = vmul.f32 0.2, %v560_v61  ;;  %v594_v47 = vmul.f32 0.2, %v562_v59  ;;  %vm576_vm7 = vcmp.gt.f32.partialorder %v560_v61, 0.0  ;;  %vm578_vm8 = vcmp.gt.f32.partialorder %v562_v59, 0.0 }
 0x268   :  { %1084 = vmatpush1.bf16.msra.mxu1 %v4154_v18  ;;  %v4187_v34 = vld [vmem:[#allocation7 + $0x1c8] ss:$16 sps:$4 sm:$0xff]   ;;  %v4192_v35 = vld [vmem:[#allocation7 + $0x1ec] ss:$16 sps:$4 sm:$0xff]  }
 0x269   :  { %1085 = vmatprep.subr.bf16.mxu1 %v4159_v19  ;;  %v608_v2 = vsel %vm576_vm7, %v560_v61, %v592_v24  ;;  %v610_v3 = vsel %vm578_vm8, %v562_v59, %v594_v47  ;;  %v4190_v37 = vld [vmem:[#allocation7 + $0x1e8] ss:$16 sps:$4 sm:$0xff]  }
 0x26a   :  { %v682_v4 = vpack.c.bf16 %v610_v3, %v608_v2 }
 0x26b   :  { %1057 = vmatmul.mubr.bf16.gmra.mrb[24].mxu1 %v4592_v32 }
 0x26c   :  { %1086 = vmatpush1.bf16.msra.mxu1 %v4157_v23  ;;  %1066 = vmatprep.mubr.bf16.mxu1 %v4594_v60 }
 0x26d   :  { %1087 = vmatprep.subr.bf16.mxu1 %v4162_v62 }
 0x270   :  { %1088 = vmatpush1.bf16.msra.mxu1 %v4160_v63 }
 0x271   :  { %1089 = vmatprep.subr.bf16.mxu1 %v4165_v0 }
 0x273   :  { %1067 = vmatmul.mubr.bf16.gmra.mrb[28].mxu1 %v682_v4 }
 0x274   :  { %1090 = vmatpush1.bf16.msra.mxu1 %v4163_v49  ;;  %1109 = vmatprep.mubr.bf16.mxu1 %v4555_v1  ;;  %v4181_v1 = vld [vmem:[#allocation7 + $0x188] ss:$16 sps:$4 sm:$0xff]  }
 0x275   :  { %1091 = vmatprep.subr.bf16.mxu1 %v4168_v5 }
 0x278   :  { %1092 = vmatpush1.bf16.msra.mxu1 %v4166_v20 }
 0x279   :  { %1093 = vmatprep.subr.bf16.mxu1 %v4171_v7 }
 0x27c   :  { %1094 = vmatpush1.bf16.msra.mxu1 %v4169_v8 }
 0x27d   :  { %1095 = vmatprep.subr.bf16.mxu1 %v4174_v9 }
 0x280   :  { %1096 = vmatpush1.bf16.msra.mxu1 %v4172_v10 }
 0x281   :  { %1097 = vmatprep.subr.bf16.mxu1 %v4177_v11 }
 0x284   :  { %1098 = vmatpush1.bf16.msra.mxu1 %v4175_v12 }
 0x285   :  { %1099 = vmatprep.subr.bf16.mxu1 %v4180_v13 }
 0x288   :  { %1100 = vmatpush1.bf16.msra.mxu1 %v4178_v14 }
 0x289   :  { %1101 = vmatprep.subr.bf16.mxu1 %v4183_v15 }
 0x28c   :  { %1102 = vmatpush1.bf16.msra.mxu1 %v4181_v1 }
 0x28d   :  { %1103 = vmatprep.subr.bf16.mxu1 %v4186_v25 }
 0x290   :  { %1104 = vmatpush1.bf16.msra.mxu1 %v4184_v26 }
 0x291   :  { %1105 = vmatprep.subr.bf16.mxu1 %v4189_v28 }
 0x294   :  { %1106 = vmatpush1.bf16.msra.mxu1 %v4187_v34 }
 0x295   :  { %1107 = vmatprep.subr.bf16.mxu1 %v4192_v35 }
 0x298   :  { %1108 = vmatpush1.bf16.msra.mxu1 %v4190_v37 }
 0x29b   :  { %1110 = vmatmul.mubr.bf16.vlgmr.msra.gmra.mrb[32].mxu1 %v4557_v6 }
 0x29c   :  { %1119 = vmatprep.mubr.bf16.mxu1 %v4568_v16 }
 0x2a3   :  { %1120 = vmatmul.mubr.bf16.gmra.mrb[36].mxu1 %v4577_v46 }
 0x2a4   :  { %1129 = vmatprep.mubr.bf16.mxu1 %v4583_v57 }
 0x2ab   :  { %1130 = vmatmul.mubr.bf16.gmra.mrb[40].mxu1 %v4592_v32 }
 0x2ac   :  { %1139 = vmatprep.mubr.bf16.mxu1 %v4594_v60 }
 0x2b3   :  { %1140 = vmatmul.mubr.bf16.gmra.mrb[44].mxu1 %v682_v4 }
 0x32e   :  { %v1038_v21 = vpop.f32.mrb[16].mxu1 }
 0x32f   :  { %v1040_v40 = vpop.f32.mrb[17].mxu1 }
 0x330   :  { %v1042_v38 = vpop.f32.mrb[18].mxu1 }
 0x331   :  { %v1152_v41 = vadd.f32 %v1042_v38, %v1038_v21  ;;  %v1044_v42 = vpop.f32.mrb[19].mxu1 }
 0x332   :  { %v1165_v45 = vadd.f32 %v1044_v42, %v1040_v40 }
 0x336   :  { %v1048_v51 = vpop.f32.mrb[20].mxu1 }
 0x337   :  { %v1153_v52 = vadd.f32 %v1152_v41, %v1048_v51  ;;  %v1050_v6 = vpop.f32.mrb[21].mxu1 }
 0x338   :  { %v1166_v53 = vadd.f32 %v1165_v45, %v1050_v6  ;;  %v1052_v16 = vpop.f32.mrb[22].mxu1 }
 0x339   :  { %v1154_v22 = vadd.f32 %v1153_v52, %v1052_v16  ;;  %v1054_v46 = vpop.f32.mrb[23].mxu1 }
 0x33a   :  { %v1167_v54 = vadd.f32 %v1166_v53, %v1054_v46 }
 0x33e   :  { %v1058_v55 = vpop.f32.mrb[24].mxu1 }
 0x33f   :  { %v1155_v36 = vadd.f32 %v1154_v22, %v1058_v55  ;;  %v1060_v48 = vpop.f32.mrb[25].mxu1 }
 0x340   :  { %v1168_v56 = vadd.f32 %v1167_v54, %v1060_v48  ;;  %v1062_v57 = vpop.f32.mrb[26].mxu1 }
 0x341   :  { %v1156_v58 = vadd.f32 %v1155_v36, %v1062_v57  ;;  %v1064_v30 = vpop.f32.mrb[27].mxu1 }
 0x342   :  { %v1169_v31 = vadd.f32 %v1168_v56, %v1064_v30 }
 0x346   :  { %v1068_v39 = vpop.f32.mrb[28].mxu1 }
 0x347   :  { %v1157_v50 = vadd.f32 %v1156_v58, %v1068_v39  ;;  %v1070_v17 = vpop.f32.mrb[29].mxu1 }
 0x348   :  { %v1170_v18 = vadd.f32 %v1169_v31, %v1070_v17  ;;  %v1072_v32 = vpop.f32.mrb[30].mxu1 }
 0x349   :  { %v1158_v33 = vadd.f32 %v1157_v50, %v1072_v32  ;;  %v1074_v19 = vpop.f32.mrb[31].mxu1 }
 0x34a   :  { %v1171_v60 = vadd.f32 %v1170_v18, %v1074_v19 }
 0x34b   :  { %v1159_v61 = vrot.slane %v1158_v33, 4 }
 0x34c   :  { %v1172_v59 = vrot.slane %v1171_v60, 4 }
 0x34d   :  { %v1160_v23 = vadd.f32 %v1159_v61, %v1158_v33 }
 0x34e   :  { %v1173_v62 = vadd.f32 %v1172_v59, %v1171_v60 }
 0x34f   :  { %v1161_v24 = vrot.slane %v1160_v23, 2 }
 0x350   :  { %v1174_v47 = vrot.slane %v1173_v62, 2 }
 0x351   :  { %v1162_v63 = vadd.f32 %v1161_v24, %v1160_v23 }
 0x352   :  { %v1175_v0 = vadd.f32 %v1174_v47, %v1173_v62 }
 0x353   :  { %v1163_v2 = vrot.slane %v1162_v63, 1 }
 0x354   :  { %v1176_v3 = vrot.slane %v1175_v0, 1 }
 0x355   :  { %v1164_v49 = vadd.f32 %v1163_v2, %v1162_v63 }
 0x356   :  { %v1177_v4 = vadd.f32 %v1176_v3, %v1175_v0 }
 0x357   :  { %v1204_v5 = vmul.f32 0.015625, %v1164_v49 }
 0x358   :  { %v1205_v20 = vmul.f32 0.015625, %v1177_v4 }
 0x359   :  { %v4607_v7 = vsub.f32 %v1038_v21, %v1204_v5  ;;  %v4609_v8 = vsub.f32 %v1042_v38, %v1204_v5  ;;  %v4611_v9 = vsub.f32 %v1048_v51, %v1204_v5  ;;  %v4613_v10 = vsub.f32 %v1052_v16, %v1204_v5 }
 0x35a   :  { %v4615_v11 = vsub.f32 %v1058_v55, %v1204_v5  ;;  %v4617_v12 = vsub.f32 %v1062_v57, %v1204_v5  ;;  %v4619_v13 = vsub.f32 %v1068_v39, %v1204_v5  ;;  %v4621_v14 = vsub.f32 %v1072_v32, %v1204_v5 }
 0x35b   :  { %v1240_v15 = vmul.f32 %v4607_v7, %v4607_v7  ;;  %v1244_v1 = vmul.f32 %v4609_v8, %v4609_v8  ;;  %v1248_v25 = vmul.f32 %v4611_v9, %v4611_v9  ;;  %v1252_v26 = vmul.f32 %v4613_v10, %v4613_v10 }
 0x35c   :  { %v4631_v34 = vsub.f32 %v1040_v40, %v1205_v20  ;;  %v4633_v35 = vsub.f32 %v1044_v42, %v1205_v20  ;;  %v4635_v37 = vsub.f32 %v1050_v6, %v1205_v20  ;;  %v4637_v21 = vsub.f32 %v1054_v46, %v1205_v20 }
 0x35d   :  { %v1272_v28 = vadd.f32 %v1244_v1, %v1240_v15  ;;  %v4639_v38 = vsub.f32 %v1060_v48, %v1205_v20  ;;  %v4641_v41 = vsub.f32 %v1064_v30, %v1205_v20  ;;  %v4643_v45 = vsub.f32 %v1070_v17, %v1205_v20 }
 0x35e   :  { %v4645_v52 = vsub.f32 %v1074_v19, %v1205_v20  ;;  %v1241_v53 = vmul.f32 %v4631_v34, %v4631_v34  ;;  %v1245_v40 = vmul.f32 %v4633_v35, %v4633_v35  ;;  %v1256_v42 = vmul.f32 %v4615_v11, %v4615_v11 }
 0x35f   :  { %v1273_v51 = vadd.f32 %v1272_v28, %v1248_v25  ;;  %v1249_v16 = vmul.f32 %v4635_v37, %v4635_v37  ;;  %v1260_v46 = vmul.f32 %v4617_v12, %v4617_v12  ;;  %v1253_v55 = vmul.f32 %v4637_v21, %v4637_v21 }
 0x360   :  { %v1285_v22 = vadd.f32 %v1245_v40, %v1241_v53  ;;  %v1264_v48 = vmul.f32 %v4619_v13, %v4619_v13  ;;  %v1257_v57 = vmul.f32 %v4639_v38, %v4639_v38  ;;  %v1268_v30 = vmul.f32 %v4621_v14, %v4621_v14 }
 0x361   :  { %v1274_v6 = vadd.f32 %v1273_v51, %v1252_v26  ;;  %v1261_v39 = vmul.f32 %v4641_v41, %v4641_v41  ;;  %v1265_v18 = vmul.f32 %v4643_v45, %v4643_v45  ;;  %v1269_v19 = vmul.f32 %v4645_v52, %v4645_v52 }
 0x362   :  { %v1286_v36 = vadd.f32 %v1285_v22, %v1249_v16 }
 0x363   :  { %v1275_v54 = vadd.f32 %v1274_v6, %v1256_v42 }
 0x364   :  { %v1287_v58 = vadd.f32 %v1286_v36, %v1253_v55 }
 0x365   :  { %v1276_v56 = vadd.f32 %v1275_v54, %v1260_v46 }
 0x366   :  { %v1288_v50 = vadd.f32 %v1287_v58, %v1257_v57 }
 0x367   :  { %v1277_v31 = vadd.f32 %v1276_v56, %v1264_v48 }
 0x368   :  { %v1289_v32 = vadd.f32 %v1288_v50, %v1261_v39 }
 0x369   :  { %v1278_v17 = vadd.f32 %v1277_v31, %v1268_v30 }
 0x36a   :  { %v1290_v60 = vadd.f32 %v1289_v32, %v1265_v18 }
 0x36b   :  { %v1279_v33 = vrot.slane %v1278_v17, 4 }
 0x36c   :  { %v1291_v59 = vadd.f32 %v1290_v60, %v1269_v19 }
 0x36d   :  { %v1280_v61 = vadd.f32 %v1279_v33, %v1278_v17 }
 0x36e   :  { %v4671_v23 = vpop.f32.mrb[32].mxu1  ;;  %v1292_v24 = vrot.slane %v1291_v59, 4 }
 0x36f   :  { %v1281_v62 = vrot.slane %v1280_v61, 2  ;;  %v4673_v47 = vpop.f32.mrb[33].mxu1 }
 0x370   :  { %v1115_v63 = vpop.f32.mrb[34].mxu1  ;;  %v1293_v2 = vadd.f32 %v1292_v24, %v1291_v59 }
 0x371   :  { %v1282_v0 = vadd.f32 %v1281_v62, %v1280_v61  ;;  %v1178_v3 = vadd.f32 %v1115_v63, %v4671_v23  ;;  %v4676_v49 = vpop.f32.mrb[35].mxu1 }
 0x372   :  { %v1191_v4 = vadd.f32 %v4676_v49, %v4673_v47  ;;  %v1294_v20 = vrot.slane %v1293_v2, 2 }
 0x373   :  { %v1283_v5 = vrot.slane %v1282_v0, 1 }
 0x374   :  { %v1295_v1 = vadd.f32 %v1294_v20, %v1293_v2 }
 0x375   :  { %v1284_v15 = vadd.f32 %v1283_v5, %v1282_v0 }
 0x376   :  { %v1121_v25 = vpop.f32.mrb[36].mxu1  ;;  %v1296_v28 = vrot.slane %v1295_v1, 1 }
 0x377   :  { %v1324_v26 = vmul.f32 0.015625, %v1284_v15  ;;  %v1179_v51 = vadd.f32 %v1178_v3, %v1121_v25  ;;  %v1123_v53 = vpop.f32.mrb[37].mxu1 }
 0x378   :  { %v1192_v40 = vadd.f32 %v1191_v4, %v1123_v53  ;;  %v1125_v42 = vpop.f32.mrb[38].mxu1  ;;  %v1297_v16 = vadd.f32 %v1296_v28, %v1295_v1 }
 0x379   :  { %v1328_v6 = vadd.f32 0.8, %v1324_v26  ;;  %v1180_v22 = vadd.f32 %v1179_v51, %v1125_v42  ;;  %v1127_v46 = vpop.f32.mrb[39].mxu1 }
 0x37a   :  { %v1193_v54 = vadd.f32 %v1192_v40, %v1127_v46  ;;  %v1325_v55 = vmul.f32 0.015625, %v1297_v16 }
 0x37b   :  { %4197 = vrsqrt.f32 %v1328_v6 }
 0x37c   :  { %v1329_v36 = vadd.f32 0.8, %v1325_v55 }
 0x37e   :  { %v1131_v48 = vpop.f32.mrb[40].mxu1  ;;  %4199 = vrsqrt.f32 %v1329_v36 }
 0x37f   :  { %v1181_v56 = vadd.f32 %v1180_v22, %v1131_v48  ;;  %v1133_v57 = vpop.f32.mrb[41].mxu1 }
 0x380   :  { %v1194_v58 = vadd.f32 %v1193_v54, %v1133_v57  ;;  %v1135_v30 = vpop.f32.mrb[42].mxu1 }
 0x381   :  { %v1182_v31 = vadd.f32 %v1181_v56, %v1135_v30  ;;  %v1137_v39 = vpop.f32.mrb[43].mxu1 }
 0x382   :  { %v1195_v50 = vadd.f32 %v1194_v58, %v1137_v39 }
 0x385   :  { %v4680_v18 = vpop.eup %4197 }
 0x386   :  { %v1141_v17 = vpop.f32.mrb[44].mxu1 }
 0x387   :  { %v1183_v32 = vadd.f32 %v1182_v31, %v1141_v17  ;;  %v1143_v33 = vpop.f32.mrb[45].mxu1 }
 0x388   :  { %v1196_v19 = vadd.f32 %v1195_v50, %v1143_v33  ;;  %v1145_v60 = vpop.f32.mrb[46].mxu1  ;;  %v4682_v61 = vpop.eup %4199 }
 0x389   :  { %v1184_v59 = vadd.f32 %v1183_v32, %v1145_v60  ;;  %v1147_v62 = vpop.f32.mrb[47].mxu1  ;;  %v1340_v24 = vcombine.low %v4680_v18, %v4682_v61 }
 0x38a   :  { %v1197_v0 = vadd.f32 %v1196_v19, %v1147_v62 }
 0x38b   :  { %v1185_v2 = vrot.slane %v1184_v59, 4 }
 0x38c   :  { %v1198_v3 = vrot.slane %v1197_v0, 4 }
 0x38d   :  { %v1186_v4 = vadd.f32 %v1185_v2, %v1184_v59 }
 0x38e   :  { %v1199_v5 = vadd.f32 %v1198_v3, %v1197_v0 }
 0x38f   :  { %v1187_v20 = vrot.slane %v1186_v4, 2 }
 0x390   :  { %v1200_v15 = vrot.slane %v1199_v5, 2 }
 0x391   :  { %v1188_v1 = vadd.f32 %v1187_v20, %v1186_v4 }
 0x392   :  { %v1201_v26 = vadd.f32 %v1200_v15, %v1199_v5 }
 0x393   :  { %v1189_v28 = vrot.slane %v1188_v1, 1 }
 0x394   :  { %v1202_v51 = vrot.slane %v1201_v26, 1 }
 0x395   :  { %v1190_v40 = vadd.f32 %v1189_v28, %v1188_v1 }
 0x396   :  { %v1203_v6 = vadd.f32 %v1202_v51, %v1201_v26 }
 0x397   :  { %v1206_v16 = vmul.f32 0.015625, %v1190_v40 }
 0x398   :  { %v1207_v22 = vmul.f32 0.015625, %v1203_v6 }
 0x399   :  { %v4687_v54 = vsub.f32 %v4671_v23, %v1206_v16  ;;  %v4689_v55 = vsub.f32 %v1115_v63, %v1206_v16  ;;  %v4691_v36 = vsub.f32 %v1121_v25, %v1206_v16  ;;  %v4693_v56 = vsub.f32 %v1125_v42, %v1206_v16 }
 0x39a   :  { %v4695_v58 = vsub.f32 %v1131_v48, %v1206_v16  ;;  %v4697_v31 = vsub.f32 %v1135_v30, %v1206_v16  ;;  %v4699_v50 = vsub.f32 %v1141_v17, %v1206_v16  ;;  %v4701_v32 = vsub.f32 %v1145_v60, %v1206_v16 }
 0x39b   :  { %v1242_v19 = vmul.f32 %v4687_v54, %v4687_v54  ;;  %v1246_v23 = vmul.f32 %v4689_v55, %v4689_v55  ;;  %v1250_v63 = vmul.f32 %v4691_v36, %v4691_v36  ;;  %v1254_v25 = vmul.f32 %v4693_v56, %v4693_v56 }
 0x39c   :  { %v4712_v48 = vsub.f32 %v4673_v47, %v1207_v22  ;;  %v4715_v30 = vsub.f32 %v4676_v49, %v1207_v22  ;;  %v4717_v17 = vsub.f32 %v1123_v53, %v1207_v22  ;;  %v4719_v60 = vsub.f32 %v1127_v46, %v1207_v22 }
 0x39d   :  { %v1298_v42 = vadd.f32 %v1246_v23, %v1242_v19  ;;  %v4721_v59 = vsub.f32 %v1133_v57, %v1207_v22  ;;  %v4723_v0 = vsub.f32 %v1137_v39, %v1207_v22  ;;  %v4725_v2 = vsub.f32 %v1143_v33, %v1207_v22 }
 0x39e   :  { %v4727_v4 = vsub.f32 %v1147_v62, %v1207_v22  ;;  %v1243_v47 = vmul.f32 %v4712_v48, %v4712_v48  ;;  %v1247_v49 = vmul.f32 %v4715_v30, %v4715_v30  ;;  %v1258_v53 = vmul.f32 %v4695_v58, %v4695_v58 }
 0x39f   :  { %v1299_v3 = vadd.f32 %v1298_v42, %v1250_v63  ;;  %v1251_v57 = vmul.f32 %v4717_v17, %v4717_v17  ;;  %v1262_v33 = vmul.f32 %v4697_v31, %v4697_v31  ;;  %v1255_v62 = vmul.f32 %v4719_v60, %v4719_v60 }
 0x3a0   :  { %v1311_v39 = vadd.f32 %v1247_v49, %v1243_v47  ;;  %v1266_v15 = vmul.f32 %v4699_v50, %v4699_v50  ;;  %v1259_v26 = vmul.f32 %v4721_v59, %v4721_v59  ;;  %v1270_v51 = vmul.f32 %v4701_v32, %v4701_v32 }
 0x3a1   :  { %v1300_v46 = vadd.f32 %v1299_v3, %v1254_v25  ;;  %v1263_v6 = vmul.f32 %v4723_v0, %v4723_v0  ;;  %v1267_v19 = vmul.f32 %v4725_v2, %v4725_v2  ;;  %v1271_v25 = vmul.f32 %v4727_v4, %v4727_v4 }
 0x3a2   :  { %v1312_v20 = vadd.f32 %v1311_v39, %v1251_v57 }
 0x3a3   :  { %v1301_v5 = vadd.f32 %v1300_v46, %v1258_v53 }
 0x3a4   :  { %v1313_v28 = vadd.f32 %v1312_v20, %v1255_v62 }
 0x3a5   :  { %v1302_v1 = vadd.f32 %v1301_v5, %v1262_v33 }
 0x3a6   :  { %v1314_v16 = vadd.f32 %v1313_v28, %v1259_v26 }
 0x3a7   :  { %v1303_v40 = vadd.f32 %v1302_v1, %v1266_v15 }
 0x3a8   :  { %v1315_v23 = vadd.f32 %v1314_v16, %v1263_v6 }
 0x3a9   :  { %v1304_v22 = vadd.f32 %v1303_v40, %v1270_v51 }
 0x3aa   :  { %v1316_v42 = vadd.f32 %v1315_v23, %v1267_v19 }
 0x3ab   :  { %v1305_v63 = vrot.slane %v1304_v22, 4 }
 0x3ac   :  { %v1317_v47 = vadd.f32 %v1316_v42, %v1271_v25  ;;  %v4763_v42 = vsub.s32 2, %v4504_v27 }
 0x3ad   :  { %v1306_v3 = vadd.f32 %v1305_v63, %v1304_v22  ;;  %v1348_v22 = vrot.slane %v1340_v24, %v4507_v29  ;;  %v1150_v63 = vld [vmem:[%s6945_s4 + $0x5] sm:$0xf] }
 0x3ae   :  { %v1318_v53 = vrot.slane %v1317_v47, 4  ;;  %7025 = vst [vmem:[#allocation19_spill] sm:$0xff] %v4763_v42 }
 0x3af   :  { %v1307_v49 = vrot.slane %v1306_v3, 2 }
 0x3b0   :  { %v1319_v57 = vadd.f32 %v1318_v53, %v1317_v47 }
 0x3b1   :  { %v1308_v46 = vadd.f32 %v1307_v49, %v1306_v3  ;;  %v4766_v3 = vsub.s32 3, %v4504_v27 }
 0x3b2   :  { %v1320_v33 = vrot.slane %v1319_v57, 2 }
 0x3b3   :  { %v1309_v39 = vrot.slane %v1308_v46, 1  ;;  %7026 = vst [vmem:[#allocation20_spill] sm:$0xff] %v4766_v3 }
 0x3b4   :  { %v1321_v62 = vadd.f32 %v1320_v33, %v1319_v57 }
 0x3b5   :  { %v1310_v5 = vadd.f32 %v1309_v39, %v1308_v46 }
 0x3b6   :  { %v1322_v15 = vrot.slane %v1321_v62, 1 }
 0x3b7   :  { %v1326_v20 = vmul.f32 0.015625, %v1310_v5 }
 0x3b8   :  { %v1323_v26 = vadd.f32 %v1322_v15, %v1321_v62 }
 0x3b9   :  { %v1330_v1 = vadd.f32 0.8, %v1326_v20 }
 0x3ba   :  { %v1327_v28 = vmul.f32 0.015625, %v1323_v26 }
 0x3bb   :  { %4201 = vrsqrt.f32 %v1330_v1 }
 0x3bc   :  { %v1331_v51 = vadd.f32 0.8, %v1327_v28 }
 0x3be   :  { %4203 = vrsqrt.f32 %v1331_v51 }
 0x3c5   :  { %v4202_v40 = vpop.eup %4201 }
 0x3c8   :  { %v4204_v6 = vpop.eup %4203 }
 0x3c9   :  { %v1341_v16 = vcombine.low %v4202_v40, %v4204_v6 }
 0x3cb   :  { %v1355_v19 = vrot.slane %v1341_v16, %v4507_v29 }
 0x3cd   :  { %v1356_v23 = vcombine.low %v1348_v22, %v1355_v19 }
 0x3cf   :  { %v1363_v25 = vrot.slane %v1356_v23, %v4507_v29 }
 0x3d1   :  { %v1365_v47 = vmul.f32 %v1363_v25, %v1150_v63 }
 0x3d3   :  { %v1370_v49 = vrot.slane %v1365_v47, %v4515_v43  ;;  %v1374_v18 = vrot.slane %v1365_v47, %v4518_v44  ;;  %v1378_v61 = vrot.slane %v1365_v47, %v4763_v42  ;;  %v1382_v24 = vrot.slane %v1365_v47, %v4766_v3 }
 0x3d5   :  { %v1387_v53 = vmul.f32 %v1370_v49, %v4607_v7  ;;  %v1388_v46 = vmul.f32 %v1374_v18, %v4631_v34  ;;  %v1389_v57 = vmul.f32 %v1378_v61, %v4687_v54  ;;  %v1390_v39 = vmul.f32 %v1382_v24, %v4712_v48 }
 0x3d6   :  { %v1391_v33 = vmul.f32 %v1370_v49, %v4609_v8  ;;  %v1392_v5 = vmul.f32 %v1374_v18, %v4633_v35  ;;  %v1393_v62 = vmul.f32 %v1378_v61, %v4689_v55  ;;  %v1394_v20 = vmul.f32 %v1382_v24, %v4715_v30 }
 0x3d7   :  { %v1395_v15 = vmul.f32 %v1370_v49, %v4611_v9  ;;  %v1396_v1 = vmul.f32 %v1374_v18, %v4635_v37  ;;  %v1397_v7 = vmul.f32 %v1378_v61, %v4691_v36  ;;  %v1398_v34 = vmul.f32 %v1382_v24, %v4717_v17 }
 0x3d8   :  { %v1399_v54 = vmul.f32 %v1370_v49, %v4613_v10  ;;  %v1400_v48 = vmul.f32 %v1374_v18, %v4637_v21  ;;  %v1401_v8 = vmul.f32 %v1378_v61, %v4693_v56  ;;  %v1402_v35 = vmul.f32 %v1382_v24, %v4719_v60 }
 0x3d9   :  { %v1403_v55 = vmul.f32 %v1370_v49, %v4615_v11  ;;  %v1404_v30 = vmul.f32 %v1374_v18, %v4639_v38  ;;  %v1405_v9 = vmul.f32 %v1378_v61, %v4695_v58  ;;  %v1406_v37 = vmul.f32 %v1382_v24, %v4721_v59  ;;  %v1151_v58 = vld [vmem:[%s6945_s4 + $0x9] sm:$0xf] }
 0x3da   :  { %v1407_v36 = vmul.f32 %v1370_v49, %v4617_v12  ;;  %v1408_v17 = vmul.f32 %v1374_v18, %v4641_v41  ;;  %v1409_v10 = vmul.f32 %v1378_v61, %v4697_v31  ;;  %v1410_v21 = vmul.f32 %v1382_v24, %v4723_v0 }
 0x3db   :  { %v1411_v56 = vmul.f32 %v1370_v49, %v4619_v13  ;;  %v1412_v60 = vmul.f32 %v1374_v18, %v4643_v45  ;;  %v1413_v11 = vmul.f32 %v1378_v61, %v4699_v50  ;;  %v1414_v38 = vmul.f32 %v1382_v24, %v4725_v2 }
 0x3dc   :  { %v1415_v12 = vmul.f32 %v1370_v49, %v4621_v14  ;;  %v1416_v41 = vmul.f32 %v1374_v18, %v4645_v52  ;;  %v1417_v31 = vmul.f32 %v1378_v61, %v4701_v32  ;;  %v1418_v59 = vmul.f32 %v1382_v24, %v4727_v4 }
 0x3dd   :  { %v1423_v13 = vrot.slane %v1151_v58, %v4515_v43  ;;  %v1427_v45 = vrot.slane %v1151_v58, %v4518_v44  ;;  %v1431_v50 = vrot.slane %v1151_v58, %v4763_v42  ;;  %v1435_v0 = vrot.slane %v1151_v58, %v4766_v3 }
 0x3df   :  { %v4811_v2 = vadd.f32 %v1423_v13, %v1387_v53  ;;  %v4813_v26 = vadd.f32 %v1427_v45, %v1388_v46  ;;  %v4815_v28 = vadd.f32 %v1431_v50, %v1389_v57  ;;  %v4817_v14 = vadd.f32 %v1435_v0, %v1390_v39 }
 0x3e0   :  { %v4819_v52 = vadd.f32 %v1423_v13, %v1391_v33  ;;  %v4821_v32 = vadd.f32 %v1427_v45, %v1392_v5  ;;  %v4823_v4 = vadd.f32 %v1431_v50, %v1393_v62  ;;  %v4825_v51 = vadd.f32 %v1435_v0, %v1394_v20 }
 0x3e1   :  { %v4827_v40 = vadd.f32 %v1423_v13, %v1395_v15  ;;  %v4829_v6 = vadd.f32 %v1427_v45, %v1396_v1  ;;  %v4831_v16 = vadd.f32 %v1431_v50, %v1397_v7  ;;  %v4833_v22 = vadd.f32 %v1435_v0, %v1398_v34 }
 0x3e2   :  { %v4835_v19 = vadd.f32 %v1423_v13, %v1399_v54  ;;  %v4837_v23 = vadd.f32 %v1427_v45, %v1400_v48  ;;  %v4839_v63 = vadd.f32 %v1431_v50, %v1401_v8  ;;  %v4841_v25 = vadd.f32 %v1435_v0, %v1402_v35 }
 0x3e3   :  { %v4843_v47 = vadd.f32 %v1423_v13, %v1403_v55  ;;  %v4845_v49 = vadd.f32 %v1427_v45, %v1404_v30  ;;  %v4847_v18 = vadd.f32 %v1431_v50, %v1405_v9  ;;  %v4849_v61 = vadd.f32 %v1435_v0, %v1406_v37 }
 0x3e4   :  { %v4851_v24 = vadd.f32 %v1423_v13, %v1407_v36  ;;  %v4853_v53 = vadd.f32 %v1427_v45, %v1408_v17  ;;  %v4855_v46 = vadd.f32 %v1431_v50, %v1409_v10  ;;  %v4857_v57 = vadd.f32 %v1435_v0, %v1410_v21 }
 0x3e5   :  { %v4859_v39 = vadd.f32 %v1423_v13, %v1411_v56  ;;  %v4861_v33 = vadd.f32 %v1427_v45, %v1412_v60  ;;  %v4863_v5 = vadd.f32 %v1431_v50, %v1413_v11  ;;  %v4865_v62 = vadd.f32 %v1435_v0, %v1414_v38 }
 0x3e6   :  { %v4867_v20 = vadd.f32 %v1423_v13, %v1415_v12  ;;  %v4869_v15 = vadd.f32 %v1427_v45, %v1416_v41  ;;  %vm1472_vm9 = vcmp.gt.f32.partialorder %v4811_v2, 0.0  ;;  %vm1473_vm10 = vcmp.gt.f32.partialorder %v4813_v26, 0.0 }
 0x3e7   :  { %vm1474_vm11 = vcmp.gt.f32.partialorder %v4815_v28, 0.0  ;;  %vm1475_vm12 = vcmp.gt.f32.partialorder %v4817_v14, 0.0  ;;  %vm1476_vm13 = vcmp.gt.f32.partialorder %v4819_v52, 0.0  ;;  %vm1477_vm14 = vcmp.gt.f32.partialorder %v4821_v32, 0.0 }
 0x3e8   :  { %vm1478_vm15 = vcmp.gt.f32.partialorder %v4823_v4, 0.0  ;;  %vm1479_vm0 = vcmp.gt.f32.partialorder %v4825_v51, 0.0  ;;  %vm1480_vm1 = vcmp.gt.f32.partialorder %v4827_v40, 0.0  ;;  %v4881_v1 = vadd.f32 %v1431_v50, %v1417_v31 }
 0x3e9   :  { %v1504_v7 = vmul.f32 0.2, %v4811_v2  ;;  %v1505_v34 = vmul.f32 0.2, %v4813_v26  ;;  %v1506_v54 = vmul.f32 0.2, %v4815_v28  ;;  %v4890_v48 = vadd.f32 %v1435_v0, %v1418_v59 }
 0x3ea   :  { %vm1487_vm8 = vcmp.gt.f32.partialorder %v4841_v25, 0.0  ;;  %vm1488_vm3 = vcmp.gt.f32.partialorder %v4843_v47, 0.0  ;;  %v1507_v8 = vmul.f32 0.2, %v4817_v14  ;;  %v1508_v35 = vmul.f32 0.2, %v4819_v52 }
 0x3eb   :  { %v1509_v55 = vmul.f32 0.2, %v4821_v32  ;;  %vm1493_vm7 = vcmp.gt.f32.partialorder %v4853_v53, 0.0  ;;  %v1510_v30 = vmul.f32 0.2, %v4823_v4  ;;  %v4909_v36 = vsel %vm1472_vm9, %v4811_v2, %v1504_v7 }
 0x3ec   :  { %v1511_v9 = vmul.f32 0.2, %v4825_v51  ;;  %v1512_v37 = vmul.f32 0.2, %v4827_v40  ;;  %vm1497_vm2 = vcmp.gt.f32.partialorder %v4861_v33, 0.0  ;;  %v1537_v56 = vsel %vm1473_vm10, %v4813_v26, %v1505_v34 }
 0x3ed   :  { %v1513_v17 = vmul.f32 0.2, %v4829_v6  ;;  %v1514_v10 = vmul.f32 0.2, %v4831_v16  ;;  %v1515_v21 = vmul.f32 0.2, %v4833_v22  ;;  %v4931_v58 = vsel %vm1474_vm11, %v4815_v28, %v1506_v54 }
 0x3ee   :  { %vm1499_vm4 = vcmp.gt.f32.partialorder %v4865_v62, 0.0  ;;  %vm1500_vm6 = vcmp.gt.f32.partialorder %v4867_v20, 0.0  ;;  %vm1501_vm5 = vcmp.gt.f32.partialorder %v4869_v15, 0.0  ;;  %v1516_v60 = vmul.f32 0.2, %v4835_v19 }
 0x3ef   :  { %v1517_v11 = vmul.f32 0.2, %v4837_v23  ;;  %v1518_v38 = vmul.f32 0.2, %v4839_v63  ;;  %vm1502_vm10 = vcmp.gt.f32.partialorder %v4881_v1, 0.0  ;;  %vm1503_vm9 = vcmp.gt.f32.partialorder %v4890_v48, 0.0 }
 0x3f0   :  { %v1519_v12 = vmul.f32 0.2, %v4841_v25  ;;  %v1520_v41 = vmul.f32 0.2, %v4843_v47  ;;  %v1521_v31 = vmul.f32 0.2, %v4845_v49  ;;  %v1539_v59 = vsel %vm1475_vm12, %v4817_v14, %v1507_v8 }
 0x3f1   :  { %v1522_v13 = vmul.f32 0.2, %v4847_v18  ;;  %v1523_v45 = vmul.f32 0.2, %v4849_v61  ;;  %v1524_v50 = vmul.f32 0.2, %v4851_v24  ;;  %v4947_v0 = vsel %vm1476_vm13, %v4819_v52, %v1508_v35 }
 0x3f2   :  { %v1525_v2 = vmul.f32 0.2, %v4853_v53  ;;  %v1526_v26 = vmul.f32 0.2, %v4855_v46  ;;  %v1527_v28 = vmul.f32 0.2, %v4857_v57  ;;  %v1541_v14 = vsel %vm1477_vm14, %v4821_v32, %v1509_v55 }
 0x3f3   :  { %v1528_v7 = vmul.f32 0.2, %v4859_v39  ;;  %v1529_v34 = vmul.f32 0.2, %v4861_v33  ;;  %v1530_v54 = vmul.f32 0.2, %v4863_v5  ;;  %v4961_v52 = vsel %vm1478_vm15, %v4823_v4, %v1510_v30 }
 0x3f4   :  { %v1531_v8 = vmul.f32 0.2, %v4865_v62  ;;  %v1532_v35 = vmul.f32 0.2, %v4867_v20  ;;  %v1533_v3 = vmul.f32 0.2, %v4869_v15  ;;  %v1543_v32 = vsel %vm1479_vm0, %v4825_v51, %v1511_v9 }
 0x3f5   :  { %v1534_v55 = vmul.f32 0.2, %v4881_v1  ;;  %v1535_v42 = vmul.f32 0.2, %v4890_v48  ;;  %v4974_v44 = vsel %vm1480_vm1, %v4827_v40, %v1512_v37  ;;  %vm7027_vm11 = vcmp.gt.f32.partialorder %v4829_v6, 0.0 }
 0x3f6   :  { %v4979_v4 = vsel %vm7027_vm11, %v4829_v6, %v1513_v17  ;;  %vm7028_vm12 = vcmp.gt.f32.partialorder %v4831_v16, 0.0  ;;  %vm7029_vm13 = vcmp.gt.f32.partialorder %v4833_v22, 0.0  ;;  %vm7030_vm14 = vcmp.gt.f32.partialorder %v4835_v19, 0.0 }
 0x3f7   :  { %v4984_v30 = vsel %vm7028_vm12, %v4831_v16, %v1514_v10  ;;  %v4989_v51 = vsel %vm7029_vm13, %v4833_v22, %v1515_v21  ;;  %v4994_v40 = vsel %vm7030_vm14, %v4835_v19, %v1516_v60  ;;  %vm7031_vm15 = vcmp.gt.f32.partialorder %v4837_v23, 0.0 }
 0x3f8   :  { %v4999_v6 = vsel %vm7031_vm15, %v4837_v23, %v1517_v11  ;;  %vm7032_vm0 = vcmp.gt.f32.partialorder %v4839_v63, 0.0  ;;  %v5009_v22 = vsel %vm1487_vm8, %v4841_v25, %v1519_v12  ;;  %v5014_v19 = vsel %vm1488_vm3, %v4843_v47, %v1520_v41 }
 0x3f9   :  { %v5004_v16 = vsel %vm7032_vm0, %v4839_v63, %v1518_v38  ;;  %vm7033_vm1 = vcmp.gt.f32.partialorder %v4845_v49, 0.0  ;;  %vm7034_vm11 = vcmp.gt.f32.partialorder %v4847_v18, 0.0  ;;  %vm7035_vm12 = vcmp.gt.f32.partialorder %v4849_v61, 0.0 }
 0x3fa   :  { %v5019_v23 = vsel %vm7033_vm1, %v4845_v49, %v1521_v31  ;;  %v5024_v63 = vsel %vm7034_vm11, %v4847_v18, %v1522_v13  ;;  %v5029_v25 = vsel %vm7035_vm12, %v4849_v61, %v1523_v45  ;;  %vm7036_vm8 = vcmp.gt.f32.partialorder %v4851_v24, 0.0 }
 0x3fb   :  { %v5034_v47 = vsel %vm7036_vm8, %v4851_v24, %v1524_v50  ;;  %v5039_v49 = vsel %vm1493_vm7, %v4853_v53, %v1525_v2  ;;  %vm7037_vm3 = vcmp.gt.f32.partialorder %v4855_v46, 0.0  ;;  %vm7038_vm13 = vcmp.gt.f32.partialorder %v4857_v57, 0.0 }
 0x3fc   :  { %v5044_v18 = vsel %vm7037_vm3, %v4855_v46, %v1526_v26  ;;  %v5049_v61 = vsel %vm7038_vm13, %v4857_v57, %v1527_v28  ;;  %vm7039_vm14 = vcmp.gt.f32.partialorder %v4859_v39, 0.0  ;;  %v5059_v53 = vsel %vm1497_vm2, %v4861_v33, %v1529_v34 }
 0x3fd   :  { %v5054_v24 = vsel %vm7039_vm14, %v4859_v39, %v1528_v7  ;;  %vm7040_vm7 = vcmp.gt.f32.partialorder %v4863_v5, 0.0  ;;  %v5069_v57 = vsel %vm1499_vm4, %v4865_v62, %v1531_v8  ;;  %v5074_v39 = vsel %vm1500_vm6, %v4867_v20, %v1532_v35 }
 0x3fe   :  { %v5064_v46 = vsel %vm7040_vm7, %v4863_v5, %v1530_v54  ;;  %v5079_v33 = vsel %vm1501_vm5, %v4869_v15, %v1533_v3  ;;  %v5084_v5 = vsel %vm1502_vm10, %v4881_v1, %v1534_v55  ;;  %v5089_v62 = vsel %vm1503_vm9, %v4890_v48, %v1535_v42 }
 0x3ff   :  { %4301 = dma.done.wait [#allocation4], 32768 }
 0x400   :  { %4302 = vsyncadd [#allocation4], 4294934528  ;;  %v5091_v9 = vpack.c.bf16 %v1541_v14, %v1537_v56  ;;  %v5093_v20 = vpack.c.bf16 %v1543_v32, %v1539_v59  ;;  %1588 = sst [smem:[#allocation12]] %s4309_s2  ;;  %s4321_s5 = smov [#allocation3]  }
 0x401   :  { %1590 = sst [smem:[#allocation12 + $0x1]] %s4309_s2  ;;  %s1584_s27 = sshll.u32 %s4321_s5, 4  ;;  %s1585_s27 = int_to_ptr.vmem [resolvable:$true] %s1584_s27 }
 0x402   :  { %1911 = vmatprep.mubr.bf16.mxu1 %v5091_v9  ;;  %1984 = vmatprep.mubr.bf16.mxu0 %v5093_v20  ;;  %1592 = sst [smem:[#allocation12 + $0x2]] %s4313_s8  ;;  %s4322_s2 = smov [#allocation4 + $0x1]  }
 0x403   :  { %1594 = sst [smem:[#allocation12 + $0x3]] %s4312_s30  ;;  %s4323_s28 = smov [#allocation11]  }
 0x404   :  { %1596 = sst [smem:[#allocation12 + $0x4]] %s4306_s11 }
 0x405   :  { %1598 = sst [smem:[#allocation12 + $0x5]] %s4313_s8 }
 0x406   :  { %1600 = sst [smem:[#allocation12 + $0x6]] %s4306_s11 }
 0x407   :  { %1602 = sst [smem:[#allocation12 + $0x7]] %s4312_s30 }
 0x408   :  { %1604 = sst [smem:[#allocation12 + $0x8]] %s4316_s15 }
 0x409   :  { %1606 = dma.general %s6947_s6, 16384, %s1585_s27, %s4322_s2, %s4323_s28, [#allocation12], %s4395_s14, 0  }
 0x40a   :  { %v1608_v42 = vld [vmem:[#allocation2 + $0x8] sm:$0xff]  ;;  %v1607_v15 = vld [vmem:[#allocation2] sm:$0xff] }
 0x40b   :  { %v1736_v3 = vld [vmem:[#allocation2 + $0x408] sm:$0xff]  ;;  %1879 = vmatprep.subr.bf16.mxu1 %v1608_v42  ;;  %v1735_v1 = vld [vmem:[#allocation2 + $0x400] sm:$0xff] }
 0x40c   :  { %1952 = vmatprep.subr.bf16.mxu0 %v1736_v3  ;;  %v1616_v48 = vld [vmem:[#allocation2 + $0x48] sm:$0xff]  ;;  %1880 = vmatpush1.bf16.msra.mxu1 %v1607_v15  ;;  %v1615_v17 = vld [vmem:[#allocation2 + $0x40] sm:$0xff] }
 0x40d   :  { %v1744_v37 = vld [vmem:[#allocation2 + $0x448] sm:$0xff]  ;;  %1953 = vmatpush1.bf16.msra.mxu0 %v1735_v1  ;;  %1881 = vmatprep.subr.bf16.mxu1 %v1616_v48  ;;  %v1743_v10 = vld [vmem:[#allocation2 + $0x440] sm:$0xff] }
 0x40e   :  { %1954 = vmatprep.subr.bf16.mxu0 %v1744_v37  ;;  %v1624_v21 = vld [vmem:[#allocation2 + $0x88] sm:$0xff]  ;;  %v1623_v60 = vld [vmem:[#allocation2 + $0x80] sm:$0xff] }
 0x40f   :  { %v1752_v56 = vld [vmem:[#allocation2 + $0x488] sm:$0xff]  ;;  %v1751_v11 = vld [vmem:[#allocation2 + $0x480] sm:$0xff] }
 0x410   :  { %1882 = vmatpush1.bf16.msra.mxu1 %v1615_v17  ;;  %v1632_v38 = vld [vmem:[#allocation2 + $0xc8] sm:$0xff]  ;;  %v1631_v41 = vld [vmem:[#allocation2 + $0xc0] sm:$0xff] }
 0x411   :  { %1955 = vmatpush1.bf16.msra.mxu0 %v1743_v10  ;;  %1883 = vmatprep.subr.bf16.mxu1 %v1624_v21  ;;  %v1760_v12 = vld [vmem:[#allocation2 + $0x4c8] sm:$0xff]  ;;  %v1759_v31 = vld [vmem:[#allocation2 + $0x4c0] sm:$0xff] }
 0x412   :  { %1956 = vmatprep.subr.bf16.mxu0 %v1752_v56  ;;  %v1640_v59 = vld [vmem:[#allocation2 + $0x108] sm:$0xff]  ;;  %v1639_v45 = vld [vmem:[#allocation2 + $0x100] sm:$0xff] }
 0x413   :  { %v1768_v13 = vld [vmem:[#allocation2 + $0x508] sm:$0xff]  ;;  %v1767_v50 = vld [vmem:[#allocation2 + $0x500] sm:$0xff] }
 0x414   :  { %1884 = vmatpush1.bf16.msra.mxu1 %v1623_v60  ;;  %v1648_v2 = vld [vmem:[#allocation2 + $0x148] sm:$0xff]  ;;  %v1647_v28 = vld [vmem:[#allocation2 + $0x140] sm:$0xff] }
 0x415   :  { %1957 = vmatpush1.bf16.msra.mxu0 %v1751_v11  ;;  %1885 = vmatprep.subr.bf16.mxu1 %v1632_v38  ;;  %v1776_v26 = vld [vmem:[#allocation2 + $0x548] sm:$0xff]  ;;  %v1775_v14 = vld [vmem:[#allocation2 + $0x540] sm:$0xff] }
 0x416   :  { %1958 = vmatprep.subr.bf16.mxu0 %v1760_v12  ;;  %v1656_v7 = vld [vmem:[#allocation2 + $0x188] sm:$0xff]  ;;  %v1655_v54 = vld [vmem:[#allocation2 + $0x180] sm:$0xff] }
 0x417   :  { %v1784_v34 = vld [vmem:[#allocation2 + $0x588] sm:$0xff]  ;;  %v1783_v8 = vld [vmem:[#allocation2 + $0x580] sm:$0xff] }
 0x418   :  { %1886 = vmatpush1.bf16.msra.mxu1 %v1631_v41  ;;  %v1664_v35 = vld [vmem:[#allocation2 + $0x1c8] sm:$0xff]  ;;  %v1663_v55 = vld [vmem:[#allocation2 + $0x1c0] sm:$0xff] }
 0x419   :  { %1959 = vmatpush1.bf16.msra.mxu0 %v1759_v31  ;;  %1887 = vmatprep.subr.bf16.mxu1 %v1640_v59  ;;  %v1792_v32 = vld [vmem:[#allocation2 + $0x5c8] sm:$0xff]  ;;  %v1791_v42 = vld [vmem:[#allocation2 + $0x5c0] sm:$0xff] }
 0x41a   :  { %1960 = vmatprep.subr.bf16.mxu0 %v1768_v13  ;;  %v1672_v3 = vld [vmem:[#allocation2 + $0x208] sm:$0xff]  ;;  %v1671_v1 = vld [vmem:[#allocation2 + $0x200] sm:$0xff] }
 0x41b   :  { %v1800_v15 = vld [vmem:[#allocation2 + $0x608] sm:$0xff]  ;;  %v1799_v48 = vld [vmem:[#allocation2 + $0x600] sm:$0xff] }
 0x41c   :  { %1888 = vmatpush1.bf16.msra.mxu1 %v1639_v45  ;;  %v1680_v37 = vld [vmem:[#allocation2 + $0x248] sm:$0xff]  ;;  %v1679_v10 = vld [vmem:[#allocation2 + $0x240] sm:$0xff] }
 0x41d   :  { %1961 = vmatpush1.bf16.msra.mxu0 %v1767_v50  ;;  %1889 = vmatprep.subr.bf16.mxu1 %v1648_v2  ;;  %v1808_v17 = vld [vmem:[#allocation2 + $0x648] sm:$0xff]  ;;  %v1807_v21 = vld [vmem:[#allocation2 + $0x640] sm:$0xff] }
 0x41e   :  { %1962 = vmatprep.subr.bf16.mxu0 %v1776_v26  ;;  %v1688_v56 = vld [vmem:[#allocation2 + $0x288] sm:$0xff]  ;;  %v1687_v11 = vld [vmem:[#allocation2 + $0x280] sm:$0xff] }
 0x41f   :  { %v1816_v60 = vld [vmem:[#allocation2 + $0x688] sm:$0xff]  ;;  %v1815_v38 = vld [vmem:[#allocation2 + $0x680] sm:$0xff] }
 0x420   :  { %1890 = vmatpush1.bf16.msra.mxu1 %v1647_v28  ;;  %v1696_v12 = vld [vmem:[#allocation2 + $0x2c8] sm:$0xff]  ;;  %v1695_v31 = vld [vmem:[#allocation2 + $0x2c0] sm:$0xff] }
 0x421   :  { %1963 = vmatpush1.bf16.msra.mxu0 %v1775_v14  ;;  %1891 = vmatprep.subr.bf16.mxu1 %v1656_v7  ;;  %v1824_v41 = vld [vmem:[#allocation2 + $0x6c8] sm:$0xff]  ;;  %v1823_v59 = vld [vmem:[#allocation2 + $0x6c0] sm:$0xff] }
 0x422   :  { %1964 = vmatprep.subr.bf16.mxu0 %v1784_v34  ;;  %v1704_v13 = vld [vmem:[#allocation2 + $0x308] sm:$0xff]  ;;  %v1703_v50 = vld [vmem:[#allocation2 + $0x300] sm:$0xff] }
 0x423   :  { %v1832_v45 = vld [vmem:[#allocation2 + $0x708] sm:$0xff]  ;;  %v1831_v2 = vld [vmem:[#allocation2 + $0x700] sm:$0xff] }
 0x424   :  { %1892 = vmatpush1.bf16.msra.mxu1 %v1655_v54  ;;  %v1712_v26 = vld [vmem:[#allocation2 + $0x348] sm:$0xff]  ;;  %v1711_v14 = vld [vmem:[#allocation2 + $0x340] sm:$0xff] }
 0x425   :  { %1965 = vmatpush1.bf16.msra.mxu0 %v1783_v8  ;;  %1893 = vmatprep.subr.bf16.mxu1 %v1664_v35  ;;  %v1840_v28 = vld [vmem:[#allocation2 + $0x748] sm:$0xff]  ;;  %v1839_v7 = vld [vmem:[#allocation2 + $0x740] sm:$0xff] }
 0x426   :  { %1966 = vmatprep.subr.bf16.mxu0 %v1792_v32  ;;  %v1720_v34 = vld [vmem:[#allocation2 + $0x388] sm:$0xff]  ;;  %v1719_v8 = vld [vmem:[#allocation2 + $0x380] sm:$0xff] }
 0x427   :  { %v1848_v54 = vld [vmem:[#allocation2 + $0x788] sm:$0xff]  ;;  %v1847_v35 = vld [vmem:[#allocation2 + $0x780] sm:$0xff] }
 0x428   :  { %1894 = vmatpush1.bf16.msra.mxu1 %v1663_v55  ;;  %v1728_v32 = vld [vmem:[#allocation2 + $0x3c8] sm:$0xff] }
 0x429   :  { %1967 = vmatpush1.bf16.msra.mxu0 %v1791_v42  ;;  %1895 = vmatprep.subr.bf16.mxu1 %v1672_v3  ;;  %v1856_v55 = vld [vmem:[#allocation2 + $0x7c8] sm:$0xff]  ;;  %v1727_v42 = vld [vmem:[#allocation2 + $0x3c0] sm:$0xff] }
 0x42a   :  { %1968 = vmatprep.subr.bf16.mxu0 %v1800_v15  ;;  %v1855_v3 = vld [vmem:[#allocation2 + $0x7c0] sm:$0xff]  ;;  %v1610_v15 = vld [vmem:[#allocation2 + $0x18] sm:$0xff] }
 0x42c   :  { %1896 = vmatpush1.bf16.msra.mxu1 %v1671_v1  ;;  %v1612_v1 = vld [vmem:[#allocation2 + $0x28] sm:$0xff] }
 0x42d   :  { %1969 = vmatpush1.bf16.msra.mxu0 %v1799_v48  ;;  %1897 = vmatprep.subr.bf16.mxu1 %v1680_v37  ;;  %v5112_v48 = vpack.c.bf16 %v4947_v0, %v4909_v36  ;;  %v5116_v37 = vpack.c.bf16 %v4961_v52, %v4931_v58  ;;  %v1611_v36 = vld [vmem:[#allocation2 + $0x20] sm:$0xff]  ;;  %v1620_v58 = vld [vmem:[#allocation2 + $0x68] sm:$0xff]  ;;  %v1617_v0 = vld [vmem:[#allocation2 + $0x50] sm:$0xff] }
 0x42e   :  { %1970 = vmatprep.subr.bf16.mxu0 %v1808_v17  ;;  %v5120_v17 = vpack.c.bf16 %v4999_v6, %v4979_v4  ;;  %v1626_v52 = vld [vmem:[#allocation2 + $0x98] sm:$0xff]  ;;  %v5132_v4 = vpack.c.bf16 %v4994_v40, %v4974_v44  ;;  %v1619_v6 = vld [vmem:[#allocation2 + $0x60] sm:$0xff]  ;;  %v1628_v44 = vld [vmem:[#allocation2 + $0xa8] sm:$0xff] }
 0x42f   :  { %v1633_v40 = vld [vmem:[#allocation2 + $0xd0] sm:$0xff] }
 0x430   :  { %1898 = vmatpush1.bf16.msra.mxu1 %v1679_v10  ;;  %v1609_v10 = vld [vmem:[#allocation2 + $0x10] sm:$0xff] }
 0x431   :  { %1971 = vmatpush1.bf16.msra.mxu0 %v1807_v21  ;;  %1899 = vmatprep.subr.bf16.mxu1 %v1688_v56  ;;  %v5124_v21 = vpack.c.bf16 %v5009_v22, %v4989_v51  ;;  %v1618_v56 = vld [vmem:[#allocation2 + $0x58] sm:$0xff]  ;;  %v5136_v51 = vpack.c.bf16 %v5004_v16, %v4984_v30  ;;  %v5140_v22 = vpack.c.bf16 %v5039_v49, %v5019_v23  ;;  %v1627_v30 = vld [vmem:[#allocation2 + $0xa0] sm:$0xff]  ;;  %v1636_v16 = vld [vmem:[#allocation2 + $0xe8] sm:$0xff] }
 0x432   :  { %1972 = vmatprep.subr.bf16.mxu0 %v1816_v60  ;;  %v1625_v60 = vld [vmem:[#allocation2 + $0x90] sm:$0xff]  ;;  %v1642_v23 = vld [vmem:[#allocation2 + $0x118] sm:$0xff]  ;;  %v5156_v49 = vpack.c.bf16 %v5044_v18, %v5024_v63  ;;  %v1644_v63 = vld [vmem:[#allocation2 + $0x128] sm:$0xff] }
 0x433   :  { %v1658_v18 = vld [vmem:[#allocation2 + $0x198] sm:$0xff] }
 0x434   :  { %1900 = vmatpush1.bf16.msra.mxu1 %v1687_v11  ;;  %v5144_v11 = vpack.c.bf16 %v5049_v61, %v5029_v25  ;;  %v5152_v25 = vpack.c.bf16 %v5034_v47, %v5014_v19  ;;  %v5160_v61 = vpack.c.bf16 %v5079_v33, %v5059_v53  ;;  %v1635_v19 = vld [vmem:[#allocation2 + $0xe0] sm:$0xff]  ;;  %v1649_v47 = vld [vmem:[#allocation2 + $0x150] sm:$0xff]  ;;  %v5172_v53 = vpack.c.bf16 %v5074_v39, %v5054_v24  ;;  %v1660_v24 = vld [vmem:[#allocation2 + $0x1a8] sm:$0xff] }
 0x435   :  { %1973 = vmatpush1.bf16.msra.mxu0 %v1815_v38  ;;  %1901 = vmatprep.subr.bf16.mxu1 %v1696_v12  ;;  %v1634_v38 = vld [vmem:[#allocation2 + $0xd8] sm:$0xff]  ;;  %v1641_v12 = vld [vmem:[#allocation2 + $0x110] sm:$0xff]  ;;  %v1643_v33 = vld [vmem:[#allocation2 + $0x120] sm:$0xff] }
 0x436   :  { %1974 = vmatprep.subr.bf16.mxu0 %v1824_v41  ;;  %v5164_v41 = vpack.c.bf16 %v5089_v62, %v5069_v57  ;;  %v5176_v57 = vpack.c.bf16 %v5084_v5, %v5064_v46  ;;  %v1657_v62 = vld [vmem:[#allocation2 + $0x190] sm:$0xff]  ;;  %v1674_v46 = vld [vmem:[#allocation2 + $0x218] sm:$0xff]  ;;  %v1659_v5 = vld [vmem:[#allocation2 + $0x1a0] sm:$0xff] }
 0x437   :  { %v1665_v39 = vld [vmem:[#allocation2 + $0x1d0] sm:$0xff] }
 0x438   :  { %1902 = vmatpush1.bf16.msra.mxu1 %v1695_v31  ;;  %v1650_v31 = vld [vmem:[#allocation2 + $0x158] sm:$0xff] }
 0x439   :  { %1975 = vmatpush1.bf16.msra.mxu0 %v1823_v59  ;;  %1903 = vmatprep.subr.bf16.mxu1 %v1704_v13  ;;  %v1652_v59 = vld [vmem:[#allocation2 + $0x168] sm:$0xff]  ;;  %v1666_v13 = vld [vmem:[#allocation2 + $0x1d8] sm:$0xff] }
 0x43a   :  { %1976 = vmatprep.subr.bf16.mxu0 %v1832_v45  ;;  %v1651_v45 = vld [vmem:[#allocation2 + $0x160] sm:$0xff] }
 0x43c   :  { %1904 = vmatpush1.bf16.msra.mxu1 %v1703_v50  ;;  %v1668_v50 = vld [vmem:[#allocation2 + $0x1e8] sm:$0xff] }
 0x43d   :  { %1977 = vmatpush1.bf16.msra.mxu0 %v1831_v2  ;;  %1905 = vmatprep.subr.bf16.mxu1 %v1712_v26  ;;  %v1673_v2 = vld [vmem:[#allocation2 + $0x210] sm:$0xff]  ;;  %v1682_v26 = vld [vmem:[#allocation2 + $0x258] sm:$0xff] }
 0x43e   :  { %1978 = vmatprep.subr.bf16.mxu0 %v1840_v28  ;;  %v1667_v28 = vld [vmem:[#allocation2 + $0x1e0] sm:$0xff] }
 0x440   :  { %1906 = vmatpush1.bf16.msra.mxu1 %v1711_v14  ;;  %v1676_v14 = vld [vmem:[#allocation2 + $0x228] sm:$0xff] }
 0x441   :  { %1979 = vmatpush1.bf16.msra.mxu0 %v1839_v7  ;;  %1907 = vmatprep.subr.bf16.mxu1 %v1720_v34  ;;  %v1681_v7 = vld [vmem:[#allocation2 + $0x250] sm:$0xff]  ;;  %v1690_v34 = vld [vmem:[#allocation2 + $0x298] sm:$0xff] }
 0x442   :  { %1980 = vmatprep.subr.bf16.mxu0 %v1848_v54  ;;  %v1675_v54 = vld [vmem:[#allocation2 + $0x220] sm:$0xff] }
 0x444   :  { %1908 = vmatpush1.bf16.msra.mxu1 %v1719_v8  ;;  %v1684_v8 = vld [vmem:[#allocation2 + $0x268] sm:$0xff] }
 0x445   :  { %1981 = vmatpush1.bf16.msra.mxu0 %v1847_v35  ;;  %1909 = vmatprep.subr.bf16.mxu1 %v1728_v32  ;;  %v1689_v35 = vld [vmem:[#allocation2 + $0x290] sm:$0xff]  ;;  %v1698_v32 = vld [vmem:[#allocation2 + $0x2d8] sm:$0xff] }
 0x446   :  { %1982 = vmatprep.subr.bf16.mxu0 %v1856_v55  ;;  %v1683_v55 = vld [vmem:[#allocation2 + $0x260] sm:$0xff] }
 0x448   :  { %1910 = vmatpush1.bf16.msra.mxu1 %v1727_v42  ;;  %v1692_v42 = vld [vmem:[#allocation2 + $0x2a8] sm:$0xff] }
 0x449   :  { %1983 = vmatpush1.bf16.msra.mxu0 %v1855_v3  ;;  %2025 = vmatprep.subr.bf16.mxu1 %v1610_v15  ;;  %v1697_v3 = vld [vmem:[#allocation2 + $0x2d0] sm:$0xff]  ;;  %v1706_v15 = vld [vmem:[#allocation2 + $0x318] sm:$0xff] }
 0x44a   :  { %2171 = vmatprep.subr.bf16.mxu0 %v1612_v1  ;;  %v1691_v1 = vld [vmem:[#allocation2 + $0x2a0] sm:$0xff] }
 0x44b   :  { %1912 = vmatmul.mubr.bf16.vlgmr.msra.gmra.mrb[48].mxu1 %v5112_v48 }
 0x44c   :  { %1985 = vmatmul.mubr.bf16.vlgmr.msra.gmra.mrb[8].mxu0 %v5116_v37  ;;  %2026 = vmatpush1.bf16.msra.mxu1 %v1609_v10  ;;  %v1700_v10 = vld [vmem:[#allocation2 + $0x2e8] sm:$0xff] }
 0x44d   :  { %1921 = vmatprep.mubr.bf16.mxu1 %v5120_v17  ;;  %2027 = vmatprep.subr.bf16.mxu1 %v1618_v56  ;;  %v1705_v56 = vld [vmem:[#allocation2 + $0x310] sm:$0xff] }
 0x44e   :  { %1994 = vmatprep.mubr.bf16.mxu0 %v5124_v21  ;;  %2172 = vmatpush1.bf16.msra.mxu0 %v1611_v36  ;;  %v1714_v36 = vld [vmem:[#allocation2 + $0x358] sm:$0xff] }
 0x44f   :  { %2173 = vmatprep.subr.bf16.mxu0 %v1620_v58  ;;  %v1699_v58 = vld [vmem:[#allocation2 + $0x2e0] sm:$0xff] }
 0x450   :  { %2028 = vmatpush1.bf16.msra.mxu1 %v1617_v0  ;;  %v1708_v0 = vld [vmem:[#allocation2 + $0x328] sm:$0xff] }
 0x451   :  { %2029 = vmatprep.subr.bf16.mxu1 %v1626_v52  ;;  %v1713_v52 = vld [vmem:[#allocation2 + $0x350] sm:$0xff] }
 0x452   :  { %2174 = vmatpush1.bf16.msra.mxu0 %v1619_v6  ;;  %v1722_v6 = vld [vmem:[#allocation2 + $0x398] sm:$0xff] }
 0x453   :  { %1922 = vmatmul.mubr.bf16.gmra.mrb[52].mxu1 %v5132_v4  ;;  %2175 = vmatprep.subr.bf16.mxu0 %v1628_v44  ;;  %v1721_v44 = vld [vmem:[#allocation2 + $0x390] sm:$0xff] }
 0x454   :  { %1995 = vmatmul.mubr.bf16.gmra.mrb[12].mxu0 %v5136_v51  ;;  %2030 = vmatpush1.bf16.msra.mxu1 %v1625_v60  ;;  %v1707_v60 = vld [vmem:[#allocation2 + $0x320] sm:$0xff] }
 0x455   :  { %1931 = vmatprep.mubr.bf16.mxu1 %v5140_v22  ;;  %2031 = vmatprep.subr.bf16.mxu1 %v1634_v38  ;;  %v1716_v38 = vld [vmem:[#allocation2 + $0x368] sm:$0xff] }
 0x456   :  { %2004 = vmatprep.mubr.bf16.mxu0 %v5144_v11  ;;  %2176 = vmatpush1.bf16.msra.mxu0 %v1627_v30  ;;  %v1730_v30 = vld [vmem:[#allocation2 + $0x3d8] sm:$0xff] }
 0x457   :  { %2177 = vmatprep.subr.bf16.mxu0 %v1636_v16  ;;  %v1724_v16 = vld [vmem:[#allocation2 + $0x3a8] sm:$0xff] }
 0x458   :  { %2032 = vmatpush1.bf16.msra.mxu1 %v1633_v40  ;;  %v1715_v40 = vld [vmem:[#allocation2 + $0x360] sm:$0xff] }
 0x459   :  { %2033 = vmatprep.subr.bf16.mxu1 %v1642_v23  ;;  %v1729_v23 = vld [vmem:[#allocation2 + $0x3d0] sm:$0xff] }
 0x45a   :  { %2178 = vmatpush1.bf16.msra.mxu0 %v1635_v19  ;;  %v1732_v19 = vld [vmem:[#allocation2 + $0x3e8] sm:$0xff] }
 0x45b   :  { %1932 = vmatmul.mubr.bf16.gmra.mrb[56].mxu1 %v5152_v25  ;;  %2179 = vmatprep.subr.bf16.mxu0 %v1644_v63  ;;  %v1737_v63 = vld [vmem:[#allocation2 + $0x410] sm:$0xff] }
 0x45c   :  { %2005 = vmatmul.mubr.bf16.gmra.mrb[16].mxu0 %v5156_v49  ;;  %2034 = vmatpush1.bf16.msra.mxu1 %v1641_v12  ;;  %v1738_v12 = vld [vmem:[#allocation2 + $0x418] sm:$0xff] }
 0x45d   :  { %1941 = vmatprep.mubr.bf16.mxu1 %v5160_v61  ;;  %2035 = vmatprep.subr.bf16.mxu1 %v1650_v31  ;;  %v1723_v31 = vld [vmem:[#allocation2 + $0x3a0] sm:$0xff] }
 0x45e   :  { %2014 = vmatprep.mubr.bf16.mxu0 %v5164_v41  ;;  %2180 = vmatpush1.bf16.msra.mxu0 %v1643_v33  ;;  %v1740_v33 = vld [vmem:[#allocation2 + $0x428] sm:$0xff] }
 0x45f   :  { %2181 = vmatprep.subr.bf16.mxu0 %v1652_v59  ;;  %v1754_v59 = vld [vmem:[#allocation2 + $0x498] sm:$0xff] }
 0x460   :  { %2036 = vmatpush1.bf16.msra.mxu1 %v1649_v47  ;;  %v1746_v47 = vld [vmem:[#allocation2 + $0x458] sm:$0xff] }
 0x461   :  { %2037 = vmatprep.subr.bf16.mxu1 %v1658_v18  ;;  %v1731_v18 = vld [vmem:[#allocation2 + $0x3e0] sm:$0xff] }
 0x462   :  { %2182 = vmatpush1.bf16.msra.mxu0 %v1651_v45  ;;  %v1748_v45 = vld [vmem:[#allocation2 + $0x468] sm:$0xff] }
 0x463   :  { %1942 = vmatmul.mubr.bf16.gmra.mrb[60].mxu1 %v5172_v53  ;;  %2183 = vmatprep.subr.bf16.mxu0 %v1660_v24  ;;  %v1753_v24 = vld [vmem:[#allocation2 + $0x490] sm:$0xff] }
 0x464   :  { %2015 = vmatmul.mubr.bf16.gmra.mrb[20].mxu0 %v5176_v57  ;;  %2038 = vmatpush1.bf16.msra.mxu1 %v1657_v62  ;;  %v1745_v62 = vld [vmem:[#allocation2 + $0x450] sm:$0xff] }
 0x465   :  { %2039 = vmatprep.subr.bf16.mxu1 %v1666_v13  ;;  %2057 = vmatprep.mubr.bf16.mxu1 %v5091_v9  ;;  %v1739_v13 = vld [vmem:[#allocation2 + $0x420] sm:$0xff] }
 0x466   :  { %2203 = vmatprep.mubr.bf16.mxu0 %v5091_v9  ;;  %2184 = vmatpush1.bf16.msra.mxu0 %v1659_v5  ;;  %v1756_v5 = vld [vmem:[#allocation2 + $0x4a8] sm:$0xff] }
 0x467   :  { %2185 = vmatprep.subr.bf16.mxu0 %v1668_v50  ;;  %v1761_v50 = vld [vmem:[#allocation2 + $0x4d0] sm:$0xff] }
 0x468   :  { %2040 = vmatpush1.bf16.msra.mxu1 %v1665_v39  ;;  %v1762_v39 = vld [vmem:[#allocation2 + $0x4d8] sm:$0xff] }
 0x469   :  { %2041 = vmatprep.subr.bf16.mxu1 %v1674_v46  ;;  %v1747_v46 = vld [vmem:[#allocation2 + $0x460] sm:$0xff] }
 0x46a   :  { %2186 = vmatpush1.bf16.msra.mxu0 %v1667_v28  ;;  %v1764_v28 = vld [vmem:[#allocation2 + $0x4e8] sm:$0xff] }
 0x46b   :  { %2187 = vmatprep.subr.bf16.mxu0 %v1676_v14  ;;  %v1769_v14 = vld [vmem:[#allocation2 + $0x510] sm:$0xff] }
 0x46c   :  { %2042 = vmatpush1.bf16.msra.mxu1 %v1673_v2  ;;  %v1770_v2 = vld [vmem:[#allocation2 + $0x518] sm:$0xff] }
 0x46d   :  { %2043 = vmatprep.subr.bf16.mxu1 %v1682_v26  ;;  %v1755_v26 = vld [vmem:[#allocation2 + $0x4a0] sm:$0xff] }
 0x46e   :  { %2188 = vmatpush1.bf16.msra.mxu0 %v1675_v54  ;;  %v1772_v54 = vld [vmem:[#allocation2 + $0x528] sm:$0xff] }
 0x46f   :  { %2189 = vmatprep.subr.bf16.mxu0 %v1684_v8  ;;  %v1777_v8 = vld [vmem:[#allocation2 + $0x550] sm:$0xff] }
 0x470   :  { %2044 = vmatpush1.bf16.msra.mxu1 %v1681_v7  ;;  %v1778_v7 = vld [vmem:[#allocation2 + $0x558] sm:$0xff] }
 0x471   :  { %2045 = vmatprep.subr.bf16.mxu1 %v1690_v34  ;;  %v1763_v34 = vld [vmem:[#allocation2 + $0x4e0] sm:$0xff] }
 0x472   :  { %2190 = vmatpush1.bf16.msra.mxu0 %v1683_v55  ;;  %v1780_v55 = vld [vmem:[#allocation2 + $0x568] sm:$0xff] }
 0x473   :  { %2191 = vmatprep.subr.bf16.mxu0 %v1692_v42  ;;  %v1785_v42 = vld [vmem:[#allocation2 + $0x590] sm:$0xff] }
 0x474   :  { %2046 = vmatpush1.bf16.msra.mxu1 %v1689_v35  ;;  %v1786_v35 = vld [vmem:[#allocation2 + $0x598] sm:$0xff] }
 0x475   :  { %2047 = vmatprep.subr.bf16.mxu1 %v1698_v32  ;;  %v1771_v32 = vld [vmem:[#allocation2 + $0x520] sm:$0xff] }
 0x476   :  { %2192 = vmatpush1.bf16.msra.mxu0 %v1691_v1  ;;  %v1788_v1 = vld [vmem:[#allocation2 + $0x5a8] sm:$0xff] }
 0x477   :  { %2193 = vmatprep.subr.bf16.mxu0 %v1700_v10  ;;  %v1793_v10 = vld [vmem:[#allocation2 + $0x5d0] sm:$0xff] }
 0x478   :  { %2048 = vmatpush1.bf16.msra.mxu1 %v1697_v3  ;;  %v1794_v3 = vld [vmem:[#allocation2 + $0x5d8] sm:$0xff] }
 0x479   :  { %2049 = vmatprep.subr.bf16.mxu1 %v1706_v15  ;;  %v1779_v15 = vld [vmem:[#allocation2 + $0x560] sm:$0xff] }
 0x47a   :  { %2194 = vmatpush1.bf16.msra.mxu0 %v1699_v58  ;;  %v1796_v58 = vld [vmem:[#allocation2 + $0x5e8] sm:$0xff] }
 0x47b   :  { %2195 = vmatprep.subr.bf16.mxu0 %v1708_v0  ;;  %v1801_v0 = vld [vmem:[#allocation2 + $0x610] sm:$0xff] }
 0x47c   :  { %2050 = vmatpush1.bf16.msra.mxu1 %v1705_v56  ;;  %v1802_v56 = vld [vmem:[#allocation2 + $0x618] sm:$0xff] }
 0x47d   :  { %2051 = vmatprep.subr.bf16.mxu1 %v1714_v36  ;;  %v1787_v36 = vld [vmem:[#allocation2 + $0x5a0] sm:$0xff] }
 0x47e   :  { %2196 = vmatpush1.bf16.msra.mxu0 %v1707_v60  ;;  %v1804_v60 = vld [vmem:[#allocation2 + $0x628] sm:$0xff] }
 0x47f   :  { %2197 = vmatprep.subr.bf16.mxu0 %v1716_v38  ;;  %v1809_v38 = vld [vmem:[#allocation2 + $0x650] sm:$0xff] }
 0x480   :  { %2052 = vmatpush1.bf16.msra.mxu1 %v1713_v52  ;;  %v1810_v52 = vld [vmem:[#allocation2 + $0x658] sm:$0xff] }
 0x481   :  { %2053 = vmatprep.subr.bf16.mxu1 %v1722_v6  ;;  %v1795_v6 = vld [vmem:[#allocation2 + $0x5e0] sm:$0xff] }
 0x482   :  { %2198 = vmatpush1.bf16.msra.mxu0 %v1715_v40  ;;  %v1812_v40 = vld [vmem:[#allocation2 + $0x668] sm:$0xff] }
 0x483   :  { %2199 = vmatprep.subr.bf16.mxu0 %v1724_v16  ;;  %v1817_v16 = vld [vmem:[#allocation2 + $0x690] sm:$0xff] }
 0x484   :  { %2054 = vmatpush1.bf16.msra.mxu1 %v1721_v44  ;;  %v1818_v44 = vld [vmem:[#allocation2 + $0x698] sm:$0xff] }
 0x485   :  { %2055 = vmatprep.subr.bf16.mxu1 %v1730_v30  ;;  %v1803_v30 = vld [vmem:[#allocation2 + $0x620] sm:$0xff] }
 0x486   :  { %2200 = vmatpush1.bf16.msra.mxu0 %v1723_v31  ;;  %v1820_v31 = vld [vmem:[#allocation2 + $0x6a8] sm:$0xff] }
 0x487   :  { %2201 = vmatprep.subr.bf16.mxu0 %v1732_v19  ;;  %v1825_v19 = vld [vmem:[#allocation2 + $0x6d0] sm:$0xff] }
 0x488   :  { %2056 = vmatpush1.bf16.msra.mxu1 %v1729_v23  ;;  %v1826_v23 = vld [vmem:[#allocation2 + $0x6d8] sm:$0xff] }
 0x489   :  { %2098 = vmatprep.subr.bf16.mxu1 %v1738_v12  ;;  %v1811_v12 = vld [vmem:[#allocation2 + $0x660] sm:$0xff] }
 0x48a   :  { %2202 = vmatpush1.bf16.msra.mxu0 %v1731_v18  ;;  %v1828_v18 = vld [vmem:[#allocation2 + $0x6e8] sm:$0xff] }
 0x48b   :  { %2058 = vmatmul.mubr.bf16.vlgmr.msra.gmra.mrb[64].mxu1 %v5112_v48  ;;  %2244 = vmatprep.subr.bf16.mxu0 %v1740_v33  ;;  %v1833_v33 = vld [vmem:[#allocation2 + $0x710] sm:$0xff] }
 0x48c   :  { %2099 = vmatpush1.bf16.msra.mxu1 %v1737_v63  ;;  %2067 = vmatprep.mubr.bf16.mxu1 %v5120_v17  ;;  %v1834_v63 = vld [vmem:[#allocation2 + $0x718] sm:$0xff] }
 0x48d   :  { %2100 = vmatprep.subr.bf16.mxu1 %v1746_v47  ;;  %2204 = vmatmul.mubr.bf16.vlgmr.msra.gmra.mrb[24].mxu0 %v5112_v48  ;;  %v1819_v47 = vld [vmem:[#allocation2 + $0x6a0] sm:$0xff] }
 0x48e   :  { %2245 = vmatpush1.bf16.msra.mxu0 %v1739_v13  ;;  %2213 = vmatprep.mubr.bf16.mxu0 %v5120_v17  ;;  %v1836_v13 = vld [vmem:[#allocation2 + $0x728] sm:$0xff] }
 0x48f   :  { %2246 = vmatprep.subr.bf16.mxu0 %v1748_v45  ;;  %v1841_v45 = vld [vmem:[#allocation2 + $0x750] sm:$0xff] }
 0x490   :  { %2101 = vmatpush1.bf16.msra.mxu1 %v1745_v62  ;;  %v1842_v62 = vld [vmem:[#allocation2 + $0x758] sm:$0xff] }
 0x491   :  { %2102 = vmatprep.subr.bf16.mxu1 %v1754_v59  ;;  %v1827_v59 = vld [vmem:[#allocation2 + $0x6e0] sm:$0xff] }
 0x492   :  { %2247 = vmatpush1.bf16.msra.mxu0 %v1747_v46  ;;  %v1844_v46 = vld [vmem:[#allocation2 + $0x768] sm:$0xff] }
 0x493   :  { %2068 = vmatmul.mubr.bf16.gmra.mrb[68].mxu1 %v5132_v4  ;;  %2248 = vmatprep.subr.bf16.mxu0 %v1756_v5  ;;  %v1849_v5 = vld [vmem:[#allocation2 + $0x790] sm:$0xff] }
 0x494   :  { %2103 = vmatpush1.bf16.msra.mxu1 %v1753_v24  ;;  %2077 = vmatprep.mubr.bf16.mxu1 %v5140_v22  ;;  %v1850_v24 = vld [vmem:[#allocation2 + $0x798] sm:$0xff] }
 0x495   :  { %2104 = vmatprep.subr.bf16.mxu1 %v1762_v39  ;;  %2214 = vmatmul.mubr.bf16.gmra.mrb[28].mxu0 %v5132_v4  ;;  %v1835_v39 = vld [vmem:[#allocation2 + $0x720] sm:$0xff] }
 0x496   :  { %2249 = vmatpush1.bf16.msra.mxu0 %v1755_v26  ;;  %2223 = vmatprep.mubr.bf16.mxu0 %v5140_v22  ;;  %v1852_v26 = vld [vmem:[#allocation2 + $0x7a8] sm:$0xff] }
 0x497   :  { %2250 = vmatprep.subr.bf16.mxu0 %v1764_v28  ;;  %v1857_v28 = vld [vmem:[#allocation2 + $0x7d0] sm:$0xff] }
 0x498   :  { %2105 = vmatpush1.bf16.msra.mxu1 %v1761_v50  ;;  %v1858_v50 = vld [vmem:[#allocation2 + $0x7d8] sm:$0xff] }
 0x499   :  { %2106 = vmatprep.subr.bf16.mxu1 %v1770_v2  ;;  %v1843_v2 = vld [vmem:[#allocation2 + $0x760] sm:$0xff] }
 0x49a   :  { %2251 = vmatpush1.bf16.msra.mxu0 %v1763_v34  ;;  %v1860_v34 = vld [vmem:[#allocation2 + $0x7e8] sm:$0xff] }
 0x49b   :  { %2078 = vmatmul.mubr.bf16.gmra.mrb[72].mxu1 %v5152_v25  ;;  %2252 = vmatprep.subr.bf16.mxu0 %v1772_v54  ;;  %v1613_v54 = vld [vmem:[#allocation2 + $0x30] sm:$0xff] }
 0x49c   :  { %2107 = vmatpush1.bf16.msra.mxu1 %v1769_v14  ;;  %2087 = vmatprep.mubr.bf16.mxu1 %v5160_v61  ;;  %v1614_v14 = vld [vmem:[#allocation2 + $0x38] sm:$0xff] }
 0x49d   :  { %2108 = vmatprep.subr.bf16.mxu1 %v1778_v7  ;;  %2224 = vmatmul.mubr.bf16.gmra.mrb[32].mxu0 %v5152_v25  ;;  %v1851_v7 = vld [vmem:[#allocation2 + $0x7a0] sm:$0xff] }
 0x49e   :  { %2253 = vmatpush1.bf16.msra.mxu0 %v1771_v32  ;;  %2233 = vmatprep.mubr.bf16.mxu0 %v5160_v61  ;;  %v1621_v32 = vld [vmem:[#allocation2 + $0x70] sm:$0xff] }
 0x49f   :  { %2254 = vmatprep.subr.bf16.mxu0 %v1780_v55  ;;  %v1630_v55 = vld [vmem:[#allocation2 + $0xb8] sm:$0xff] }
 0x4a0   :  { %2109 = vmatpush1.bf16.msra.mxu1 %v1777_v8  ;;  %v1622_v8 = vld [vmem:[#allocation2 + $0x78] sm:$0xff] }
 0x4a1   :  { %2110 = vmatprep.subr.bf16.mxu1 %v1786_v35  ;;  %v1859_v35 = vld [vmem:[#allocation2 + $0x7e0] sm:$0xff] }
 0x4a2   :  { %2255 = vmatpush1.bf16.msra.mxu0 %v1779_v15  ;;  %v1637_v15 = vld [vmem:[#allocation2 + $0xf0] sm:$0xff] }
 0x4a3   :  { %2088 = vmatmul.mubr.bf16.gmra.mrb[76].mxu1 %v5172_v53  ;;  %2256 = vmatprep.subr.bf16.mxu0 %v1788_v1  ;;  %v1646_v1 = vld [vmem:[#allocation2 + $0x138] sm:$0xff] }
 0x4a4   :  { %2111 = vmatpush1.bf16.msra.mxu1 %v1785_v42  ;;  %2130 = vmatprep.mubr.bf16.mxu1 %v5093_v20  ;;  %v1629_v42 = vld [vmem:[#allocation2 + $0xb0] sm:$0xff] }
 0x4a5   :  { %2112 = vmatprep.subr.bf16.mxu1 %v1794_v3  ;;  %2234 = vmatmul.mubr.bf16.gmra.mrb[36].mxu0 %v5172_v53  ;;  %v1638_v3 = vld [vmem:[#allocation2 + $0xf8] sm:$0xff] }
 0x4a6   :  { %2257 = vmatpush1.bf16.msra.mxu0 %v1787_v36  ;;  %2276 = vmatprep.mubr.bf16.mxu0 %v5093_v20  ;;  %v1653_v36 = vld [vmem:[#allocation2 + $0x170] sm:$0xff] }
 0x4a7   :  { %2258 = vmatprep.subr.bf16.mxu0 %v1796_v58  ;;  %v1662_v58 = vld [vmem:[#allocation2 + $0x1b8] sm:$0xff] }
 0x4a8   :  { %2113 = vmatpush1.bf16.msra.mxu1 %v1793_v10  ;;  %v1645_v10 = vld [vmem:[#allocation2 + $0x130] sm:$0xff] }
 0x4a9   :  { %2114 = vmatprep.subr.bf16.mxu1 %v1802_v56  ;;  %v1654_v56 = vld [vmem:[#allocation2 + $0x178] sm:$0xff] }
 0x4aa   :  { %2259 = vmatpush1.bf16.msra.mxu0 %v1795_v6  ;;  %v1669_v6 = vld [vmem:[#allocation2 + $0x1f0] sm:$0xff] }
 0x4ab   :  { %2260 = vmatprep.subr.bf16.mxu0 %v1804_v60  ;;  %v1678_v60 = vld [vmem:[#allocation2 + $0x238] sm:$0xff] }
 0x4ac   :  { %2115 = vmatpush1.bf16.msra.mxu1 %v1801_v0  ;;  %v1661_v0 = vld [vmem:[#allocation2 + $0x1b0] sm:$0xff] }
 0x4ad   :  { %2116 = vmatprep.subr.bf16.mxu1 %v1810_v52  ;;  %v1670_v52 = vld [vmem:[#allocation2 + $0x1f8] sm:$0xff] }
 0x4ae   :  { %2261 = vmatpush1.bf16.msra.mxu0 %v1803_v30  ;;  %v1685_v30 = vld [vmem:[#allocation2 + $0x270] sm:$0xff] }
 0x4af   :  { %2262 = vmatprep.subr.bf16.mxu0 %v1812_v40  ;;  %v1694_v40 = vld [vmem:[#allocation2 + $0x2b8] sm:$0xff] }
 0x4b0   :  { %2117 = vmatpush1.bf16.msra.mxu1 %v1809_v38  ;;  %v1677_v38 = vld [vmem:[#allocation2 + $0x230] sm:$0xff] }
 0x4b1   :  { %2118 = vmatprep.subr.bf16.mxu1 %v1818_v44  ;;  %v1686_v44 = vld [vmem:[#allocation2 + $0x278] sm:$0xff] }
 0x4b2   :  { %2263 = vmatpush1.bf16.msra.mxu0 %v1811_v12  ;;  %v1710_v12 = vld [vmem:[#allocation2 + $0x338] sm:$0xff] }
 0x4b3   :  { %2264 = vmatprep.subr.bf16.mxu0 %v1820_v31  ;;  %v1709_v31 = vld [vmem:[#allocation2 + $0x330] sm:$0xff] }
 0x4b4   :  { %2119 = vmatpush1.bf16.msra.mxu1 %v1817_v16  ;;  %v1693_v16 = vld [vmem:[#allocation2 + $0x2b0] sm:$0xff] }
 0x4b5   :  { %2120 = vmatprep.subr.bf16.mxu1 %v1826_v23  ;;  %v1702_v23 = vld [vmem:[#allocation2 + $0x2f8] sm:$0xff] }
 0x4b6   :  { %2265 = vmatpush1.bf16.msra.mxu0 %v1819_v47  ;;  %v1726_v47 = vld [vmem:[#allocation2 + $0x3b8] sm:$0xff] }
 0x4b7   :  { %2266 = vmatprep.subr.bf16.mxu0 %v1828_v18  ;;  %v1725_v18 = vld [vmem:[#allocation2 + $0x3b0] sm:$0xff] }
 0x4b8   :  { %2121 = vmatpush1.bf16.msra.mxu1 %v1825_v19  ;;  %v1718_v19 = vld [vmem:[#allocation2 + $0x378] sm:$0xff] }
 0x4b9   :  { %2122 = vmatprep.subr.bf16.mxu1 %v1834_v63  ;;  %v1717_v63 = vld [vmem:[#allocation2 + $0x370] sm:$0xff] }
 0x4ba   :  { %2267 = vmatpush1.bf16.msra.mxu0 %v1827_v59  ;;  %v1742_v59 = vld [vmem:[#allocation2 + $0x438] sm:$0xff] }
 0x4bb   :  { %2268 = vmatprep.subr.bf16.mxu0 %v1836_v13  ;;  %v1741_v13 = vld [vmem:[#allocation2 + $0x430] sm:$0xff] }
 0x4bc   :  { %2123 = vmatpush1.bf16.msra.mxu1 %v1833_v33  ;;  %v1734_v33 = vld [vmem:[#allocation2 + $0x3f8] sm:$0xff] }
 0x4bd   :  { %2124 = vmatprep.subr.bf16.mxu1 %v1842_v62  ;;  %v1733_v62 = vld [vmem:[#allocation2 + $0x3f0] sm:$0xff] }
 0x4be   :  { %2269 = vmatpush1.bf16.msra.mxu0 %v1835_v39  ;;  %v1758_v39 = vld [vmem:[#allocation2 + $0x4b8] sm:$0xff] }
 0x4bf   :  { %2270 = vmatprep.subr.bf16.mxu0 %v1844_v46  ;;  %v1757_v46 = vld [vmem:[#allocation2 + $0x4b0] sm:$0xff] }
 0x4c0   :  { %2125 = vmatpush1.bf16.msra.mxu1 %v1841_v45  ;;  %v1750_v45 = vld [vmem:[#allocation2 + $0x478] sm:$0xff] }
 0x4c1   :  { %2126 = vmatprep.subr.bf16.mxu1 %v1850_v24  ;;  %v1749_v24 = vld [vmem:[#allocation2 + $0x470] sm:$0xff] }
 0x4c2   :  { %2271 = vmatpush1.bf16.msra.mxu0 %v1843_v2  ;;  %v1774_v2 = vld [vmem:[#allocation2 + $0x538] sm:$0xff] }
 0x4c3   :  { %2272 = vmatprep.subr.bf16.mxu0 %v1852_v26  ;;  %v1782_v26 = vld [vmem:[#allocation2 + $0x578] sm:$0xff] }
 0x4c4   :  { %2127 = vmatpush1.bf16.msra.mxu1 %v1849_v5  ;;  %v1766_v5 = vld [vmem:[#allocation2 + $0x4f8] sm:$0xff] }
 0x4c5   :  { %2128 = vmatprep.subr.bf16.mxu1 %v1858_v50  ;;  %v1765_v50 = vld [vmem:[#allocation2 + $0x4f0] sm:$0xff] }
 0x4c6   :  { %2273 = vmatpush1.bf16.msra.mxu0 %v1851_v7 }
 0x4c7   :  { %2274 = vmatprep.subr.bf16.mxu0 %v1860_v34 }
 0x4c8   :  { %2129 = vmatpush1.bf16.msra.mxu1 %v1857_v28 }
 0x4c9   :  { %2317 = vmatprep.subr.bf16.mxu1 %v1614_v14 }
 0x4ca   :  { %2275 = vmatpush1.bf16.msra.mxu0 %v1859_v35 }
 0x4cb   :  { %2131 = vmatmul.mubr.bf16.vlgmr.msra.gmra.mrb[64].mxu1 %v5116_v37 }
 0x4cc   :  { %2318 = vmatpush1.bf16.msra.mxu1 %v1613_v54  ;;  %2140 = vmatprep.mubr.bf16.mxu1 %v5124_v21 }
 0x4cd   :  { %2319 = vmatprep.subr.bf16.mxu1 %v1622_v8  ;;  %2277 = vmatmul.mubr.bf16.vlgmr.msra.gmra.mrb[24].mxu0 %v5116_v37 }
 0x4ce   :  { %2286 = vmatprep.mubr.bf16.mxu0 %v5124_v21 }
 0x4d0   :  { %2320 = vmatpush1.bf16.msra.mxu1 %v1621_v32 }
 0x4d1   :  { %2321 = vmatprep.subr.bf16.mxu1 %v1630_v55 }
 0x4d3   :  { %2141 = vmatmul.mubr.bf16.gmra.mrb[68].mxu1 %v5136_v51 }
 0x4d4   :  { %2322 = vmatpush1.bf16.msra.mxu1 %v1629_v42  ;;  %2150 = vmatprep.mubr.bf16.mxu1 %v5144_v11 }
 0x4d5   :  { %2323 = vmatprep.subr.bf16.mxu1 %v1638_v3  ;;  %2287 = vmatmul.mubr.bf16.gmra.mrb[28].mxu0 %v5136_v51  ;;  %v1798_v3 = vld [vmem:[#allocation2 + $0x5f8] sm:$0xff] }
 0x4d6   :  { %2296 = vmatprep.mubr.bf16.mxu0 %v5144_v11 }
 0x4d8   :  { %2324 = vmatpush1.bf16.msra.mxu1 %v1637_v15 }
 0x4d9   :  { %2325 = vmatprep.subr.bf16.mxu1 %v1646_v1 }
 0x4db   :  { %2151 = vmatmul.mubr.bf16.gmra.mrb[72].mxu1 %v5156_v49 }
 0x4dc   :  { %2326 = vmatpush1.bf16.msra.mxu1 %v1645_v10  ;;  %2160 = vmatprep.mubr.bf16.mxu1 %v5164_v41  ;;  %v1797_v10 = vld [vmem:[#allocation2 + $0x5f0] sm:$0xff] }
 0x4dd   :  { %2327 = vmatprep.subr.bf16.mxu1 %v1654_v56  ;;  %2297 = vmatmul.mubr.bf16.gmra.mrb[32].mxu0 %v5156_v49 }
 0x4de   :  { %2306 = vmatprep.mubr.bf16.mxu0 %v5164_v41 }
 0x4e0   :  { %2328 = vmatpush1.bf16.msra.mxu1 %v1653_v36 }
 0x4e1   :  { %2329 = vmatprep.subr.bf16.mxu1 %v1662_v58  ;;  %v1806_v58 = vld [vmem:[#allocation2 + $0x638] sm:$0xff] }
 0x4e3   :  { %2161 = vmatmul.mubr.bf16.gmra.mrb[76].mxu1 %v5176_v57 }
 0x4e4   :  { %2330 = vmatpush1.bf16.msra.mxu1 %v1661_v0  ;;  %2349 = vmatprep.mubr.bf16.mxu1 %v5091_v9  ;;  %v1701_v9 = vld [vmem:[#allocation2 + $0x2f0] sm:$0xff] }
 0x4e5   :  { %2331 = vmatprep.subr.bf16.mxu1 %v1670_v52  ;;  %2307 = vmatmul.mubr.bf16.gmra.mrb[36].mxu0 %v5176_v57 }
 0x4e8   :  { %2332 = vmatpush1.bf16.msra.mxu1 %v1669_v6 }
 0x4e9   :  { %2333 = vmatprep.subr.bf16.mxu1 %v1678_v60 }
 0x4ec   :  { %2334 = vmatpush1.bf16.msra.mxu1 %v1677_v38 }
 0x4ed   :  { %2335 = vmatprep.subr.bf16.mxu1 %v1686_v44 }
 0x4f0   :  { %2336 = vmatpush1.bf16.msra.mxu1 %v1685_v30 }
 0x4f1   :  { %2337 = vmatprep.subr.bf16.mxu1 %v1694_v40 }
 0x4f4   :  { %2338 = vmatpush1.bf16.msra.mxu1 %v1693_v16  ;;  %v1805_v16 = vld [vmem:[#allocation2 + $0x630] sm:$0xff] }
 0x4f5   :  { %2339 = vmatprep.subr.bf16.mxu1 %v1702_v23 }
 0x4f8   :  { %2340 = vmatpush1.bf16.msra.mxu1 %v1701_v9 }
 0x4f9   :  { %2341 = vmatprep.subr.bf16.mxu1 %v1710_v12  ;;  %v1814_v12 = vld [vmem:[#allocation2 + $0x678] sm:$0xff] }
 0x4fc   :  { %2342 = vmatpush1.bf16.msra.mxu1 %v1709_v31 }
 0x4fd   :  { %2343 = vmatprep.subr.bf16.mxu1 %v1718_v19 }
 0x500   :  { %2344 = vmatpush1.bf16.msra.mxu1 %v1717_v63  ;;  %v1813_v63 = vld [vmem:[#allocation2 + $0x670] sm:$0xff] }
 0x501   :  { %2345 = vmatprep.subr.bf16.mxu1 %v1726_v47 }
 0x504   :  { %2346 = vmatpush1.bf16.msra.mxu1 %v1725_v18 }
 0x505   :  { %2347 = vmatprep.subr.bf16.mxu1 %v1734_v33  ;;  %v1822_v33 = vld [vmem:[#allocation2 + $0x6b8] sm:$0xff] }
 0x508   :  { %2348 = vmatpush1.bf16.msra.mxu1 %v1733_v62 }
 0x509   :  { %2390 = vmatprep.subr.bf16.mxu1 %v1742_v59 }
 0x50b   :  { %2350 = vmatmul.mubr.bf16.vlgmr.msra.gmra.mrb[80].mxu1 %v5112_v48  ;;  %v1773_v48 = vld [vmem:[#allocation2 + $0x530] sm:$0xff] }
 0x50c   :  { %2391 = vmatpush1.bf16.msra.mxu1 %v1741_v13  ;;  %2359 = vmatprep.mubr.bf16.mxu1 %v5120_v17  ;;  %v1781_v17 = vld [vmem:[#allocation2 + $0x570] sm:$0xff] }
 0x50d   :  { %2392 = vmatprep.subr.bf16.mxu1 %v1750_v45 }
 0x510   :  { %2393 = vmatpush1.bf16.msra.mxu1 %v1749_v24 }
 0x511   :  { %2394 = vmatprep.subr.bf16.mxu1 %v1758_v39 }
 0x513   :  { %2360 = vmatmul.mubr.bf16.gmra.mrb[84].mxu1 %v5132_v4  ;;  %v1790_v4 = vld [vmem:[#allocation2 + $0x5b8] sm:$0xff] }
 0x514   :  { %2395 = vmatpush1.bf16.msra.mxu1 %v1757_v46  ;;  %2369 = vmatprep.mubr.bf16.mxu1 %v5140_v22 }
 0x515   :  { %2396 = vmatprep.subr.bf16.mxu1 %v1766_v5 }
 0x518   :  { %2397 = vmatpush1.bf16.msra.mxu1 %v1765_v50 }
 0x519   :  { %2398 = vmatprep.subr.bf16.mxu1 %v1774_v2 }
 0x51b   :  { %2370 = vmatmul.mubr.bf16.gmra.mrb[88].mxu1 %v5152_v25 }
 0x51c   :  { %2399 = vmatpush1.bf16.msra.mxu1 %v1773_v48  ;;  %2379 = vmatprep.mubr.bf16.mxu1 %v5160_v61  ;;  %v1789_v61 = vld [vmem:[#allocation2 + $0x5b0] sm:$0xff] }
 0x51d   :  { %2400 = vmatprep.subr.bf16.mxu1 %v1782_v26  ;;  %v1821_v48 = vld [vmem:[#allocation2 + $0x6b0] sm:$0xff] }
 0x51e   :  { %v1913_v28 = vpop.f32.mrb[48].mxu1 }
 0x51f   :  { %v1986_v14 = vpop.f32.mrb[8].mxu0  ;;  %v1915_v22 = vpop.f32.mrb[49].mxu1 }
 0x520   :  { %v5219_v7 = vadd.f32 %v1986_v14, %v1913_v28  ;;  %v1988_v34 = vpop.f32.mrb[9].mxu0  ;;  %v1917_v8 = vpop.f32.mrb[50].mxu1  ;;  %2401 = vmatpush1.bf16.msra.mxu1 %v1781_v17  ;;  %v1830_v28 = vld [vmem:[#allocation2 + $0x6f8] sm:$0xff] }
 0x521   :  { %v5221_v54 = vadd.f32 %v1988_v34, %v1915_v22  ;;  %v1990_v35 = vpop.f32.mrb[10].mxu0  ;;  %v1919_v25 = vpop.f32.mrb[51].mxu1  ;;  %2402 = vmatprep.subr.bf16.mxu1 %v1790_v4  ;;  %v1829_v22 = vld [vmem:[#allocation2 + $0x6f0] sm:$0xff] }
 0x522   :  { %v5223_v32 = vadd.f32 %v1990_v35, %v1917_v8  ;;  %v1992_v55 = vpop.f32.mrb[11].mxu0  ;;  %v1838_v35 = vld [vmem:[#allocation2 + $0x738] sm:$0xff] }
 0x523   :  { %v5225_v42 = vadd.f32 %v1992_v55, %v1919_v25  ;;  %2380 = vmatmul.mubr.bf16.gmra.mrb[92].mxu1 %v5172_v53 }
 0x524   :  { %v2465_v15 = vadd.f32 %v5223_v32, %v5219_v7  ;;  %2403 = vmatpush1.bf16.msra.mxu1 %v1789_v61  ;;  %2422 = vmatprep.mubr.bf16.mxu1 %v5093_v20 }
 0x525   :  { %v2478_v1 = vadd.f32 %v5225_v42, %v5221_v54  ;;  %2404 = vmatprep.subr.bf16.mxu1 %v1798_v3 }
 0x526   :  { %v1923_v56 = vpop.f32.mrb[52].mxu1 }
 0x527   :  { %v1996_v36 = vpop.f32.mrb[12].mxu0  ;;  %v1925_v52 = vpop.f32.mrb[53].mxu1 }
 0x528   :  { %v5233_v0 = vadd.f32 %v1996_v36, %v1923_v56  ;;  %v1998_v6 = vpop.f32.mrb[13].mxu0  ;;  %v1927_v38 = vpop.f32.mrb[54].mxu1  ;;  %2405 = vmatpush1.bf16.msra.mxu1 %v1797_v10 }
 0x529   :  { %v5235_v60 = vadd.f32 %v1998_v6, %v1925_v52  ;;  %v2000_v44 = vpop.f32.mrb[14].mxu0  ;;  %v1929_v40 = vpop.f32.mrb[55].mxu1  ;;  %2406 = vmatprep.subr.bf16.mxu1 %v1806_v58  ;;  %v1837_v52 = vld [vmem:[#allocation2 + $0x730] sm:$0xff] }
 0x52a   :  { %v2466_v53 = vadd.f32 %v2465_v15, %v5233_v0  ;;  %v5238_v30 = vadd.f32 %v2000_v44, %v1927_v38  ;;  %v2002_v20 = vpop.f32.mrb[15].mxu0  ;;  %v1846_v44 = vld [vmem:[#allocation2 + $0x778] sm:$0xff] }
 0x52b   :  { %v2479_v23 = vadd.f32 %v2478_v1, %v5235_v60  ;;  %v5241_v9 = vadd.f32 %v2002_v20, %v1929_v40 }
 0x52c   :  { %v2467_v31 = vadd.f32 %v2466_v53, %v5238_v30  ;;  %2407 = vmatpush1.bf16.msra.mxu1 %v1805_v16  ;;  %v1845_v16 = vld [vmem:[#allocation2 + $0x770] sm:$0xff] }
 0x52d   :  { %v2480_v19 = vadd.f32 %v2479_v23, %v5241_v9  ;;  %2408 = vmatprep.subr.bf16.mxu1 %v1814_v12  ;;  %v1854_v12 = vld [vmem:[#allocation2 + $0x7b8] sm:$0xff] }
 0x52e   :  { %v1933_v47 = vpop.f32.mrb[56].mxu1 }
 0x52f   :  { %v2006_v18 = vpop.f32.mrb[16].mxu0  ;;  %v1935_v59 = vpop.f32.mrb[57].mxu1 }
 0x530   :  { %v5245_v62 = vadd.f32 %v2006_v18, %v1933_v47  ;;  %v2008_v13 = vpop.f32.mrb[17].mxu0  ;;  %v1937_v24 = vpop.f32.mrb[58].mxu1  ;;  %2409 = vmatpush1.bf16.msra.mxu1 %v1813_v63  ;;  %v1853_v47 = vld [vmem:[#allocation2 + $0x7b0] sm:$0xff] }
 0x531   :  { %v5247_v45 = vadd.f32 %v2008_v13, %v1935_v59  ;;  %v2010_v39 = vpop.f32.mrb[18].mxu0  ;;  %v1939_v50 = vpop.f32.mrb[59].mxu1  ;;  %2410 = vmatprep.subr.bf16.mxu1 %v1822_v33  ;;  %v1862_v33 = vld [vmem:[#allocation2 + $0x7f8] sm:$0xff] }
 0x532   :  { %v2468_v46 = vadd.f32 %v2467_v31, %v5245_v62  ;;  %v5250_v5 = vadd.f32 %v2010_v39, %v1937_v24  ;;  %v2012_v2 = vpop.f32.mrb[19].mxu0  ;;  %v1861_v39 = vld [vmem:[#allocation2 + $0x7f0] sm:$0xff] }
 0x533   :  { %v2481_v26 = vadd.f32 %v2480_v19, %v5247_v45  ;;  %v5253_v17 = vadd.f32 %v2012_v2, %v1939_v50 }
 0x534   :  { %v2469_v14 = vadd.f32 %v2468_v46, %v5250_v5  ;;  %2411 = vmatpush1.bf16.msra.mxu1 %v1821_v48 }
 0x535   :  { %v2482_v4 = vadd.f32 %v2481_v26, %v5253_v17  ;;  %2412 = vmatprep.subr.bf16.mxu1 %v1830_v28 }
 0x536   :  { %v1943_v34 = vpop.f32.mrb[60].mxu1 }
 0x537   :  { %v2016_v8 = vpop.f32.mrb[20].mxu0  ;;  %v1945_v55 = vpop.f32.mrb[61].mxu1 }
 0x538   :  { %v2017_v25 = vadd.f32 %v2016_v8, %v1943_v34  ;;  %v2018_v61 = vpop.f32.mrb[21].mxu0  ;;  %v1947_v15 = vpop.f32.mrb[62].mxu1  ;;  %2413 = vmatpush1.bf16.msra.mxu1 %v1829_v22 }
 0x539   :  { %v2019_v3 = vadd.f32 %v2018_v61, %v1945_v55  ;;  %v2020_v1 = vpop.f32.mrb[22].mxu0  ;;  %v1949_v36 = vpop.f32.mrb[63].mxu1  ;;  %2414 = vmatprep.subr.bf16.mxu1 %v1838_v35 }
 0x53a   :  { %v2470_v10 = vadd.f32 %v2469_v14, %v2017_v25  ;;  %v2021_v56 = vadd.f32 %v2020_v1, %v1947_v15  ;;  %v2022_v58 = vpop.f32.mrb[23].mxu0 }
 0x53b   :  { %v2483_v6 = vadd.f32 %v2482_v4, %v2019_v3  ;;  %v2023_v38 = vadd.f32 %v2022_v58, %v1949_v36 }
 0x53c   :  { %v2471_v53 = vadd.f32 %v2470_v10, %v2021_v56  ;;  %2415 = vmatpush1.bf16.msra.mxu1 %v1837_v52 }
 0x53d   :  { %v2484_v40 = vadd.f32 %v2483_v6, %v2023_v38  ;;  %2416 = vmatprep.subr.bf16.mxu1 %v1846_v44 }
 0x53e   :  { %v2472_v20 = vrot.slane %v2471_v53, 4 }
 0x53f   :  { %v2485_v23 = vrot.slane %v2484_v40, 4 }
 0x540   :  { %v2473_v31 = vadd.f32 %v2472_v20, %v2471_v53  ;;  %2417 = vmatpush1.bf16.msra.mxu1 %v1845_v16 }
 0x541   :  { %v2486_v19 = vadd.f32 %v2485_v23, %v2484_v40  ;;  %2418 = vmatprep.subr.bf16.mxu1 %v1854_v12 }
 0x542   :  { %v2474_v63 = vrot.slane %v2473_v31, 2 }
 0x543   :  { %v2487_v18 = vrot.slane %v2486_v19, 2 }
 0x544   :  { %v2475_v59 = vadd.f32 %v2474_v63, %v2473_v31  ;;  %2419 = vmatpush1.bf16.msra.mxu1 %v1853_v47 }
 0x545   :  { %v2488_v13 = vadd.f32 %v2487_v18, %v2486_v19  ;;  %2420 = vmatprep.subr.bf16.mxu1 %v1862_v33 }
 0x546   :  { %v2476_v24 = vrot.slane %v2475_v59, 1 }
 0x547   :  { %v2489_v46 = vrot.slane %v2488_v13, 1 }
 0x548   :  { %v2477_v50 = vadd.f32 %v2476_v24, %v2475_v59  ;;  %2421 = vmatpush1.bf16.msra.mxu1 %v1861_v39 }
 0x549   :  { %v2490_v2 = vadd.f32 %v2489_v46, %v2488_v13 }
 0x54a   :  { %v2569_v48 = vmul.f32 0.015625, %v2477_v50 }
 0x54b   :  { %v2570_v26 = vmul.f32 0.015625, %v2490_v2  ;;  %2423 = vmatmul.mubr.bf16.vlgmr.msra.gmra.mrb[80].mxu1 %v5116_v37 }
 0x54c   :  { %v5258_v28 = vsub.f32 %v5219_v7, %v2569_v48  ;;  %v5261_v14 = vsub.f32 %v5223_v32, %v2569_v48  ;;  %v5264_v4 = vsub.f32 %v5233_v0, %v2569_v48  ;;  %v5267_v22 = vsub.f32 %v5238_v30, %v2569_v48  ;;  %2432 = vmatprep.mubr.bf16.mxu1 %v5124_v21 }
 0x54d   :  { %v5271_v34 = vsub.f32 %v5245_v62, %v2569_v48  ;;  %v5274_v8 = vsub.f32 %v5250_v5, %v2569_v48  ;;  %v5276_v35 = vsub.f32 %v2017_v25, %v2569_v48  ;;  %v5278_v7 = vsub.f32 %v2021_v56, %v2569_v48 }
 0x54e   :  { %7041 = vst [vmem:[#allocation21_spill] sm:$0xff] %v5264_v4  ;;  %7042 = vst [vmem:[#allocation22_spill] sm:$0xff] %v5267_v22  ;;  %v2641_v32 = vmul.f32 %v5258_v28, %v5258_v28  ;;  %v2649_v0 = vmul.f32 %v5261_v14, %v5261_v14  ;;  %v2657_v37 = vmul.f32 %v5264_v4, %v5264_v4 }
 0x54f   :  { %7043 = vst [vmem:[#allocation23_spill] sm:$0xff] %v5271_v34  ;;  %7044 = vst [vmem:[#allocation24_spill] sm:$0xff] %v5274_v8  ;;  %v2665_v30 = vmul.f32 %v5267_v22, %v5267_v22  ;;  %v5290_v5 = vsub.f32 %v5221_v54, %v2570_v26  ;;  %v5293_v25 = vsub.f32 %v5225_v42, %v2570_v26 }
 0x550   :  { %7045 = vst [vmem:[#allocation25_spill] sm:$0xff] %v5276_v35  ;;  %7046 = vst [vmem:[#allocation26_spill] sm:$0xff] %v5278_v7  ;;  %v2705_v62 = vadd.f32 %v2649_v0, %v2641_v32  ;;  %v5296_v21 = vsub.f32 %v5235_v60, %v2570_v26  ;;  %v5299_v55 = vsub.f32 %v5241_v9, %v2570_v26 }
 0x551   :  { %v5302_v61 = vsub.f32 %v5247_v45, %v2570_v26  ;;  %v5305_v15 = vsub.f32 %v5253_v17, %v2570_v26  ;;  %v5307_v1 = vsub.f32 %v2019_v3, %v2570_v26  ;;  %v5309_v54 = vsub.f32 %v2023_v38, %v2570_v26 }
 0x552   :  { %7047 = vst [vmem:[#allocation27_spill] sm:$0xff] %v5296_v21  ;;  %7048 = vst [vmem:[#allocation28_spill] sm:$0xff] %v5299_v55  ;;  %v2706_v10 = vadd.f32 %v2705_v62, %v2657_v37  ;;  %v2642_v42 = vmul.f32 %v5290_v5, %v5290_v5  ;;  %v2650_v60 = vmul.f32 %v5293_v25, %v5293_v25 }
 0x553   :  { %7049 = vst [vmem:[#allocation29_spill] sm:$0xff] %v5302_v61  ;;  %7050 = vst [vmem:[#allocation30_spill] sm:$0xff] %v5305_v15  ;;  %v2673_v9 = vmul.f32 %v5271_v34, %v5271_v34  ;;  %v2658_v45 = vmul.f32 %v5296_v21, %v5296_v21  ;;  %2433 = vmatmul.mubr.bf16.gmra.mrb[84].mxu1 %v5136_v51  ;;  %v2681_v3 = vmul.f32 %v5274_v8, %v5274_v8 }
 0x554   :  { %7051 = vst [vmem:[#allocation31_spill] sm:$0xff] %v5307_v1  ;;  %7052 = vst [vmem:[#allocation32_spill] sm:$0xff] %v5309_v54  ;;  %v2707_v56 = vadd.f32 %v2706_v10, %v2665_v30  ;;  %v2718_v17 = vadd.f32 %v2650_v60, %v2642_v42  ;;  %2442 = vmatprep.mubr.bf16.mxu1 %v5144_v11  ;;  %v2666_v58 = vmul.f32 %v5299_v55, %v5299_v55 }
 0x555   :  { %v2689_v6 = vmul.f32 %v5276_v35, %v5276_v35  ;;  %v2674_v44 = vmul.f32 %v5302_v61, %v5302_v61  ;;  %v2697_v51 = vmul.f32 %v5278_v7, %v5278_v7  ;;  %v2682_v40 = vmul.f32 %v5305_v15, %v5305_v15 }
 0x556   :  { %v2708_v36 = vadd.f32 %v2707_v56, %v2673_v9  ;;  %v2719_v52 = vadd.f32 %v2718_v17, %v2658_v45  ;;  %v2690_v23 = vmul.f32 %v5307_v1, %v5307_v1  ;;  %v2698_v19 = vmul.f32 %v5309_v54, %v5309_v54 }
 0x558   :  { %v2709_v38 = vadd.f32 %v2708_v36, %v2681_v3  ;;  %v2720_v53 = vadd.f32 %v2719_v52, %v2666_v58 }
 0x55a   :  { %v2710_v11 = vadd.f32 %v2709_v38, %v2689_v6  ;;  %v2721_v20 = vadd.f32 %v2720_v53, %v2674_v44 }
 0x55b   :  { %2443 = vmatmul.mubr.bf16.gmra.mrb[88].mxu1 %v5156_v49 }
 0x55c   :  { %v2711_v16 = vadd.f32 %v2710_v11, %v2697_v51  ;;  %v2722_v12 = vadd.f32 %v2721_v20, %v2682_v40  ;;  %2452 = vmatprep.mubr.bf16.mxu1 %v5164_v41 }
 0x55e   :  { %v2712_v31 = vrot.slane %v2711_v16, 4  ;;  %v2723_v63 = vadd.f32 %v2722_v12, %v2690_v23 }
 0x560   :  { %v2713_v47 = vadd.f32 %v2712_v31, %v2711_v16  ;;  %v2724_v18 = vadd.f32 %v2723_v63, %v2698_v19 }
 0x562   :  { %v2714_v33 = vrot.slane %v2713_v47, 2  ;;  %v2725_v59 = vrot.slane %v2724_v18, 4 }
 0x563   :  { %2453 = vmatmul.mubr.bf16.gmra.mrb[92].mxu1 %v5176_v57 }
 0x564   :  { %v2715_v13 = vadd.f32 %v2714_v33, %v2713_v47  ;;  %v2726_v24 = vadd.f32 %v2725_v59, %v2724_v18 }
 0x566   :  { %v2716_v39 = vrot.slane %v2715_v13, 1  ;;  %v2727_v46 = vrot.slane %v2726_v24, 2 }
 0x568   :  { %v2717_v50 = vadd.f32 %v2716_v39, %v2715_v13  ;;  %v2728_v2 = vadd.f32 %v2727_v46, %v2726_v24 }
 0x56a   :  { %v2809_v49 = vmul.f32 0.015625, %v2717_v50  ;;  %v2729_v48 = vrot.slane %v2728_v2, 1 }
 0x56c   :  { %v2817_v41 = vadd.f32 0.8, %v2809_v49  ;;  %v2730_v26 = vadd.f32 %v2729_v48, %v2728_v2 }
 0x56e   :  { %v2810_v32 = vmul.f32 0.015625, %v2730_v26  ;;  %4205 = vrsqrt.f32 %v2817_v41 }
 0x570   :  { %v2818_v0 = vadd.f32 0.8, %v2810_v32 }
 0x572   :  { %4207 = vrsqrt.f32 %v2818_v0 }
 0x578   :  { %v5340_v37 = vpop.eup %4205 }
 0x57c   :  { %v5342_v30 = vpop.eup %4207 }
 0x59e   :  { %v5346_v57 = vpop.f32.mrb[64].mxu1 }
 0x59f   :  { %v5348_v10 = vpop.f32.mrb[65].mxu1 }
 0x5a0   :  { %v5350_v42 = vpop.f32.mrb[66].mxu1  ;;  %v5358_v45 = vpop.f32.mrb[24].mxu0 }
 0x5a1   :  { %v2491_v60 = vadd.f32 %v5350_v42, %v5346_v57  ;;  %v5354_v9 = vpop.f32.mrb[67].mxu1  ;;  %v5360_v17 = vpop.f32.mrb[25].mxu0 }
 0x5a2   :  { %v2504_v56 = vadd.f32 %v5354_v9, %v5348_v10  ;;  %v5364_v36 = vpop.f32.mrb[26].mxu0 }
 0x5a3   :  { %v2517_v6 = vadd.f32 %v5364_v36, %v5358_v45  ;;  %v5371_v38 = vpop.f32.mrb[27].mxu0 }
 0x5a4   :  { %v2530_v51 = vadd.f32 %v5371_v38, %v5360_v17 }
 0x5a6   :  { %v5362_v3 = vpop.f32.mrb[68].mxu1 }
 0x5a7   :  { %v2492_v58 = vadd.f32 %v2491_v60, %v5362_v3  ;;  %v5367_v52 = vpop.f32.mrb[69].mxu1 }
 0x5a8   :  { %v2505_v44 = vadd.f32 %v2504_v56, %v5367_v52  ;;  %v5374_v53 = vpop.f32.mrb[70].mxu1  ;;  %v5382_v16 = vpop.f32.mrb[28].mxu0 }
 0x5a9   :  { %v2493_v11 = vadd.f32 %v2492_v58, %v5374_v53  ;;  %v5379_v40 = vpop.f32.mrb[71].mxu1  ;;  %v2518_v23 = vadd.f32 %v2517_v6, %v5382_v16  ;;  %v5385_v12 = vpop.f32.mrb[29].mxu0 }
 0x5aa   :  { %v2506_v20 = vadd.f32 %v2505_v44, %v5379_v40  ;;  %v2531_v19 = vadd.f32 %v2530_v51, %v5385_v12  ;;  %v5388_v63 = vpop.f32.mrb[30].mxu0 }
 0x5ab   :  { %v2519_v33 = vadd.f32 %v2518_v23, %v5388_v63  ;;  %v5393_v59 = vpop.f32.mrb[31].mxu0 }
 0x5ac   :  { %v2532_v39 = vadd.f32 %v2531_v19, %v5393_v59 }
 0x5ae   :  { %v2152_v31 = vpop.f32.mrb[72].mxu1 }
 0x5af   :  { %v2494_v47 = vadd.f32 %v2493_v11, %v2152_v31  ;;  %v5390_v18 = vpop.f32.mrb[73].mxu1 }
 0x5b0   :  { %v2507_v13 = vadd.f32 %v2506_v20, %v5390_v18  ;;  %v2156_v24 = vpop.f32.mrb[74].mxu1  ;;  %v5400_v49 = vpop.f32.mrb[32].mxu0 }
 0x5b1   :  { %v2495_v46 = vadd.f32 %v2494_v47, %v2156_v24  ;;  %v5397_v50 = vpop.f32.mrb[75].mxu1  ;;  %v2520_v48 = vadd.f32 %v2519_v33, %v5400_v49  ;;  %v5403_v41 = vpop.f32.mrb[33].mxu0 }
 0x5b2   :  { %v2508_v2 = vadd.f32 %v2507_v13, %v5397_v50  ;;  %v2533_v32 = vadd.f32 %v2532_v39, %v5403_v41  ;;  %v5406_v0 = vpop.f32.mrb[34].mxu0 }
 0x5b3   :  { %v2521_v58 = vadd.f32 %v2520_v48, %v5406_v0  ;;  %v5409_v6 = vpop.f32.mrb[35].mxu0 }
 0x5b4   :  { %v2534_v11 = vadd.f32 %v2533_v32, %v5409_v6 }
 0x5b6   :  { %v2162_v26 = vpop.f32.mrb[76].mxu1 }
 0x5b7   :  { %v2496_v60 = vadd.f32 %v2495_v46, %v2162_v26  ;;  %v2164_v56 = vpop.f32.mrb[77].mxu1 }
 0x5b8   :  { %v2509_v44 = vadd.f32 %v2508_v2, %v2164_v56  ;;  %v2166_v51 = vpop.f32.mrb[78].mxu1  ;;  %v5412_v13 = vpop.f32.mrb[36].mxu0 }
 0x5b9   :  { %v2497_v20 = vadd.f32 %v2496_v60, %v2166_v51  ;;  %v2168_v23 = vpop.f32.mrb[79].mxu1  ;;  %v2522_v62 = vadd.f32 %v2521_v58, %v5412_v13  ;;  %v5415_v46 = vpop.f32.mrb[37].mxu0 }
 0x5ba   :  { %v2510_v19 = vadd.f32 %v2509_v44, %v2168_v23  ;;  %v2535_v48 = vadd.f32 %v2534_v11, %v5415_v46  ;;  %v5418_v7 = vpop.f32.mrb[38].mxu0 }
 0x5bb   :  { %v2498_v47 = vrot.slane %v2497_v20, 4  ;;  %v2523_v32 = vadd.f32 %v2522_v62, %v5418_v7  ;;  %v5421_v60 = vpop.f32.mrb[39].mxu0 }
 0x5bc   :  { %v2511_v33 = vrot.slane %v2510_v19, 4  ;;  %v2536_v1 = vadd.f32 %v2535_v48, %v5421_v60 }
 0x5bd   :  { %v2499_v39 = vadd.f32 %v2498_v47, %v2497_v20  ;;  %v2524_v15 = vrot.slane %v2523_v32, 4 }
 0x5be   :  { %v2512_v54 = vadd.f32 %v2511_v33, %v2510_v19  ;;  %v2537_v47 = vrot.slane %v2536_v1, 4 }
 0x5bf   :  { %v2500_v2 = vrot.slane %v2499_v39, 2  ;;  %v2525_v61 = vadd.f32 %v2524_v15, %v2523_v32 }
 0x5c0   :  { %v2513_v44 = vrot.slane %v2512_v54, 2  ;;  %v2538_v19 = vadd.f32 %v2537_v47, %v2536_v1 }
 0x5c1   :  { %v2501_v35 = vadd.f32 %v2500_v2, %v2499_v39  ;;  %v2526_v22 = vrot.slane %v2525_v61, 2 }
 0x5c2   :  { %v2514_v20 = vadd.f32 %v2513_v44, %v2512_v54  ;;  %v2539_v21 = vrot.slane %v2538_v19, 2 }
 0x5c3   :  { %v2502_v58 = vrot.slane %v2501_v35, 1 }
 0x5c4   :  { %v2515_v8 = vrot.slane %v2514_v20, 1  ;;  %v2540_v48 = vadd.f32 %v2539_v21, %v2538_v19 }
 0x5c5   :  { %v2503_v33 = vadd.f32 %v2502_v58, %v2501_v35 }
 0x5c6   :  { %v2516_v11 = vadd.f32 %v2515_v8, %v2514_v20 }
 0x5c7   :  { %v2571_v34 = vmul.f32 0.015625, %v2503_v33 }
 0x5c8   :  { %v2572_v55 = vmul.f32 0.015625, %v2516_v11 }
 0x5c9   :  { %v5425_v62 = vsub.f32 %v5346_v57, %v2571_v34  ;;  %v5428_v4 = vsub.f32 %v5350_v42, %v2571_v34  ;;  %v5431_v39 = vsub.f32 %v5362_v3, %v2571_v34  ;;  %v5434_v54 = vsub.f32 %v5374_v53, %v2571_v34 }
 0x5ca   :  { %v5436_v15 = vsub.f32 %v2152_v31, %v2571_v34  ;;  %v5438_v35 = vsub.f32 %v2156_v24, %v2571_v34  ;;  %v5440_v8 = vsub.f32 %v2162_v26, %v2571_v34  ;;  %v5442_v1 = vsub.f32 %v2166_v51, %v2571_v34 }
 0x5cb   :  { %v2643_v57 = vmul.f32 %v5425_v62, %v5425_v62  ;;  %v2651_v42 = vmul.f32 %v5428_v4, %v5428_v4  ;;  %v2659_v3 = vmul.f32 %v5431_v39, %v5431_v39  ;;  %v2667_v53 = vmul.f32 %v5434_v54, %v5434_v54 }
 0x5cc   :  { %7053 = vst [vmem:[#allocation33_spill] sm:$0xff] %v5438_v35  ;;  %7054 = vst [vmem:[#allocation34_spill] sm:$0xff] %v5440_v8  ;;  %v2527_v31 = vadd.f32 %v2526_v22, %v2525_v61  ;;  %v5453_v26 = vsub.f32 %v5348_v10, %v2572_v55  ;;  %v5456_v34 = vsub.f32 %v5354_v9, %v2572_v55 }
 0x5cd   :  { %7055 = vst [vmem:[#allocation35_spill] sm:$0xff] %v5442_v1  ;;  %v2731_v24 = vadd.f32 %v2651_v42, %v2643_v57  ;;  %v5459_v51 = vsub.f32 %v5367_v52, %v2572_v55  ;;  %v5462_v2 = vsub.f32 %v5379_v40, %v2572_v55  ;;  %v5465_v32 = vsub.f32 %v5390_v18, %v2572_v55 }
 0x5ce   :  { %v5468_v44 = vsub.f32 %v5397_v50, %v2572_v55  ;;  %v5470_v22 = vsub.f32 %v2164_v56, %v2572_v55  ;;  %v5472_v61 = vsub.f32 %v2168_v23, %v2572_v55  ;;  %v2644_v10 = vmul.f32 %v5453_v26, %v5453_v26 }
 0x5cf   :  { %7056 = vst [vmem:[#allocation36_spill] sm:$0xff] %v5465_v32  ;;  %v2732_v21 = vadd.f32 %v2731_v24, %v2659_v3  ;;  %v2652_v9 = vmul.f32 %v5456_v34, %v5456_v34  ;;  %v2675_v52 = vmul.f32 %v5436_v15, %v5436_v15  ;;  %v2660_v18 = vmul.f32 %v5459_v51, %v5459_v51 }
 0x5d0   :  { %7057 = vst [vmem:[#allocation37_spill] sm:$0xff] %v5468_v44  ;;  %7058 = vst [vmem:[#allocation38_spill] sm:$0xff] %v5470_v22  ;;  %v2528_v20 = vrot.slane %v2527_v31, 1  ;;  %v2541_v56 = vrot.slane %v2540_v48, 1  ;;  %v2683_v55 = vmul.f32 %v5438_v35, %v5438_v35  ;;  %v2668_v47 = vmul.f32 %v5462_v2, %v5462_v2 }
 0x5d1   :  { %7059 = vst [vmem:[#allocation39_spill] sm:$0xff] %v5472_v61  ;;  %v2733_v40 = vadd.f32 %v2732_v21, %v2667_v53  ;;  %v2744_v50 = vadd.f32 %v2652_v9, %v2644_v10  ;;  %v2691_v11 = vmul.f32 %v5440_v8, %v5440_v8  ;;  %v2676_v42 = vmul.f32 %v5465_v32, %v5465_v32 }
 0x5d2   :  { %v2529_v19 = vadd.f32 %v2528_v20, %v2527_v31  ;;  %v2542_v33 = vadd.f32 %v2541_v56, %v2540_v48  ;;  %v2699_v53 = vmul.f32 %v5442_v1, %v5442_v1  ;;  %v2684_v24 = vmul.f32 %v5468_v44, %v5468_v44 }
 0x5d3   :  { %v2734_v23 = vadd.f32 %v2733_v40, %v2675_v52  ;;  %v2745_v58 = vadd.f32 %v2744_v50, %v2660_v18  ;;  %v2692_v31 = vmul.f32 %v5470_v22, %v5470_v22 }
 0x5d4   :  { %v2573_v21 = vmul.f32 0.015625, %v2529_v19  ;;  %v2574_v9 = vmul.f32 0.015625, %v2542_v33 }
 0x5d5   :  { %v2735_v57 = vadd.f32 %v2734_v23, %v2683_v55  ;;  %v2746_v3 = vadd.f32 %v2745_v58, %v2668_v47 }
 0x5d6   :  { %v5497_v52 = vsub.f32 %v5358_v45, %v2573_v21  ;;  %v5500_v40 = vsub.f32 %v5364_v36, %v2573_v21  ;;  %v5503_v18 = vsub.f32 %v5382_v16, %v2573_v21  ;;  %v5506_v50 = vsub.f32 %v5388_v63, %v2573_v21 }
 0x5d7   :  { %v2736_v10 = vadd.f32 %v2735_v57, %v2691_v11  ;;  %v2747_v48 = vadd.f32 %v2746_v3, %v2676_v42  ;;  %v5509_v55 = vsub.f32 %v5400_v49, %v2573_v21  ;;  %v5512_v23 = vsub.f32 %v5406_v0, %v2573_v21 }
 0x5d8   :  { %v5515_v45 = vsub.f32 %v5412_v13, %v2573_v21  ;;  %v5518_v36 = vsub.f32 %v5418_v7, %v2573_v21  ;;  %v2645_v16 = vmul.f32 %v5497_v52, %v5497_v52  ;;  %v2653_v63 = vmul.f32 %v5500_v40, %v5500_v40 }
 0x5d9   :  { %v2737_v20 = vadd.f32 %v2736_v10, %v2699_v53  ;;  %v2748_v56 = vadd.f32 %v2747_v48, %v2684_v24  ;;  %7060 = vst [vmem:[#allocation40_spill] sm:$0xff] %v5509_v55  ;;  %7061 = vst [vmem:[#allocation41_spill] sm:$0xff] %v5512_v23  ;;  %v2700_v49 = vmul.f32 %v5472_v61, %v5472_v61 }
 0x5da   :  { %7062 = vst [vmem:[#allocation42_spill] sm:$0xff] %v5515_v45  ;;  %7063 = vst [vmem:[#allocation43_spill] sm:$0xff] %v5518_v36  ;;  %v2661_v0 = vmul.f32 %v5503_v18, %v5503_v18  ;;  %v2669_v13 = vmul.f32 %v5506_v50, %v5506_v50  ;;  %v2677_v7 = vmul.f32 %v5509_v55, %v5509_v55 }
 0x5db   :  { %v2738_v47 = vrot.slane %v2737_v20, 4  ;;  %v2749_v58 = vadd.f32 %v2748_v56, %v2692_v31  ;;  %v2757_v11 = vadd.f32 %v2653_v63, %v2645_v16  ;;  %v5533_v57 = vsub.f32 %v5360_v17, %v2574_v9 }
 0x5dc   :  { %v5536_v42 = vsub.f32 %v5371_v38, %v2574_v9  ;;  %v5539_v3 = vsub.f32 %v5385_v12, %v2574_v9  ;;  %v5542_v53 = vsub.f32 %v5393_v59, %v2574_v9  ;;  %v5545_v24 = vsub.f32 %v5403_v41, %v2574_v9 }
 0x5dd   :  { %v2739_v19 = vadd.f32 %v2738_v47, %v2737_v20  ;;  %v2750_v33 = vadd.f32 %v2749_v58, %v2700_v49  ;;  %v2758_v31 = vadd.f32 %v2757_v11, %v2661_v0  ;;  %v5548_v48 = vsub.f32 %v5409_v6, %v2574_v9 }
 0x5de   :  { %7064 = vst [vmem:[#allocation44_spill] sm:$0xff] %v5545_v24  ;;  %v5551_v17 = vsub.f32 %v5415_v46, %v2574_v9  ;;  %v5554_v38 = vsub.f32 %v5421_v60, %v2574_v9  ;;  %v2646_v12 = vmul.f32 %v5533_v57, %v5533_v57  ;;  %v2654_v59 = vmul.f32 %v5536_v42, %v5536_v42 }
 0x5df   :  { %v2740_v21 = vrot.slane %v2739_v19, 2  ;;  %v2751_v10 = vrot.slane %v2750_v33, 4  ;;  %7065 = vst [vmem:[#allocation45_spill] sm:$0xff] %v5548_v48  ;;  %v2685_v56 = vmul.f32 %v5512_v23, %v5512_v23  ;;  %v2759_v16 = vadd.f32 %v2758_v31, %v2669_v13 }
 0x5e0   :  { %7066 = vst [vmem:[#allocation46_spill] sm:$0xff] %v5551_v17  ;;  %7067 = vst [vmem:[#allocation47_spill] sm:$0xff] %v5554_v38  ;;  %v2662_v6 = vmul.f32 %v5539_v3, %v5539_v3  ;;  %v2693_v60 = vmul.f32 %v5515_v45, %v5515_v45  ;;  %v2670_v47 = vmul.f32 %v5542_v53, %v5542_v53 }
 0x5e1   :  { %v2741_v41 = vadd.f32 %v2740_v21, %v2739_v19  ;;  %v2752_v20 = vadd.f32 %v2751_v10, %v2750_v33  ;;  %v2760_v9 = vadd.f32 %v2759_v16, %v2677_v7  ;;  %v2770_v49 = vadd.f32 %v2654_v59, %v2646_v12 }
 0x5e2   :  { %v2701_v19 = vmul.f32 %v5518_v36, %v5518_v36  ;;  %v2678_v13 = vmul.f32 %v5545_v24, %v5545_v24  ;;  %v2686_v7 = vmul.f32 %v5548_v48, %v5548_v48  ;;  %v2694_v59 = vmul.f32 %v5551_v17, %v5551_v17 }
 0x5e3   :  { %v2742_v46 = vrot.slane %v2741_v41, 1  ;;  %v2753_v63 = vrot.slane %v2752_v20, 2  ;;  %v2761_v33 = vadd.f32 %v2760_v9, %v2685_v56  ;;  %v2771_v11 = vadd.f32 %v2770_v49, %v2662_v6 }
 0x5e5   :  { %v2743_v58 = vadd.f32 %v2742_v46, %v2741_v41  ;;  %v2754_v0 = vadd.f32 %v2753_v63, %v2752_v20  ;;  %v2762_v31 = vadd.f32 %v2761_v33, %v2693_v60  ;;  %v2772_v16 = vadd.f32 %v2771_v11, %v2670_v47 }
 0x5e6   :  { %v2702_v46 = vmul.f32 %v5554_v38, %v5554_v38 }
 0x5e7   :  { %v2811_v21 = vmul.f32 0.015625, %v2743_v58  ;;  %v2755_v10 = vrot.slane %v2754_v0, 1  ;;  %v2763_v12 = vadd.f32 %v2762_v31, %v2701_v19  ;;  %v2773_v41 = vadd.f32 %v2772_v16, %v2678_v13 }
 0x5e9   :  { %v2819_v61 = vadd.f32 0.8, %v2811_v21  ;;  %v2756_v1 = vadd.f32 %v2755_v10, %v2754_v0  ;;  %v2764_v56 = vrot.slane %v2763_v12, 4  ;;  %v2774_v6 = vadd.f32 %v2773_v41, %v2686_v7 }
 0x5eb   :  { %v2812_v20 = vmul.f32 0.015625, %v2756_v1  ;;  %4209 = vrsqrt.f32 %v2819_v61  ;;  %v2765_v60 = vadd.f32 %v2764_v56, %v2763_v12  ;;  %v2775_v9 = vadd.f32 %v2774_v6, %v2694_v59 }
 0x5ec   :  { %v7068_v61 = vcombine.low %v5340_v37, %v5342_v30 }
 0x5ed   :  { %v2820_v63 = vadd.f32 0.8, %v2812_v20  ;;  %v2766_v49 = vrot.slane %v2765_v60, 2  ;;  %v2776_v47 = vadd.f32 %v2775_v9, %v2702_v46 }
 0x5ee   :  { %v5582_v7 = vrot.slane %v7068_v61, %v4507_v29 }
 0x5ef   :  { %4211 = vrsqrt.f32 %v2820_v63  ;;  %v2767_v58 = vadd.f32 %v2766_v49, %v2765_v60  ;;  %v2777_v0 = vrot.slane %v2776_v47, 4 }
 0x5f1   :  { %v2768_v19 = vrot.slane %v2767_v58, 1  ;;  %v2778_v33 = vadd.f32 %v2777_v0, %v2776_v47 }
 0x5f3   :  { %v2769_v11 = vadd.f32 %v2768_v19, %v2767_v58  ;;  %v2779_v21 = vrot.slane %v2778_v33, 2 }
 0x5f5   :  { %v4210_v13 = vpop.eup %4209  ;;  %v2813_v1 = vmul.f32 0.015625, %v2769_v11  ;;  %v2780_v10 = vadd.f32 %v2779_v21, %v2778_v33 }
 0x5f7   :  { %v2781_v38 = vrot.slane %v2780_v10, 1  ;;  %v2821_v59 = vadd.f32 0.8, %v2813_v1 }
 0x5f9   :  { %v4212_v31 = vpop.eup %4211  ;;  %v2782_v41 = vadd.f32 %v2781_v38, %v2780_v10  ;;  %4213 = vrsqrt.f32 %v2821_v59 }
 0x5fa   :  { %v2842_v16 = vcombine.low %v4210_v13, %v4212_v31 }
 0x5fb   :  { %v2814_v56 = vmul.f32 0.015625, %v2782_v41 }
 0x5fc   :  { %v5585_v12 = vrot.slane %v2842_v16, %v4507_v29 }
 0x5fd   :  { %v2822_v46 = vadd.f32 0.8, %v2814_v56 }
 0x5ff   :  { %4215 = vrsqrt.f32 %v2822_v46 }
 0x603   :  { %v5589_v6 = vpop.eup %4213 }
 0x609   :  { %v5591_v63 = vpop.eup %4215 }
 0x61e   :  { %v2424_v30 = vpop.f32.mrb[80].mxu1 }
 0x61f   :  { %v2426_v60 = vpop.f32.mrb[81].mxu1 }
 0x620   :  { %v2428_v9 = vpop.f32.mrb[82].mxu1 }
 0x621   :  { %v2543_v49 = vadd.f32 %v2428_v9, %v2424_v30  ;;  %v2430_v47 = vpop.f32.mrb[83].mxu1 }
 0x622   :  { %v2556_v38 = vadd.f32 %v2430_v47, %v2426_v60 }
 0x626   :  { %v2434_v58 = vpop.f32.mrb[84].mxu1 }
 0x627   :  { %v2544_v0 = vadd.f32 %v2543_v49, %v2434_v58  ;;  %v2436_v19 = vpop.f32.mrb[85].mxu1 }
 0x628   :  { %v2557_v33 = vadd.f32 %v2556_v38, %v2436_v19  ;;  %v2438_v11 = vpop.f32.mrb[86].mxu1 }
 0x629   :  { %v2545_v21 = vadd.f32 %v2544_v0, %v2438_v11  ;;  %v2440_v13 = vpop.f32.mrb[87].mxu1 }
 0x62a   :  { %v2558_v1 = vadd.f32 %v2557_v33, %v2440_v13 }
 0x62e   :  { %v2444_v10 = vpop.f32.mrb[88].mxu1 }
 0x62f   :  { %v2546_v31 = vadd.f32 %v2545_v21, %v2444_v10  ;;  %v2446_v16 = vpop.f32.mrb[89].mxu1 }
 0x630   :  { %v2559_v61 = vadd.f32 %v2558_v1, %v2446_v16  ;;  %v2448_v59 = vpop.f32.mrb[90].mxu1 }
 0x631   :  { %v2547_v41 = vadd.f32 %v2546_v31, %v2448_v59  ;;  %v2450_v56 = vpop.f32.mrb[91].mxu1 }
 0x632   :  { %v2560_v46 = vadd.f32 %v2559_v61, %v2450_v56 }
 0x636   :  { %v2454_v20 = vpop.f32.mrb[92].mxu1 }
 0x637   :  { %v2548_v37 = vadd.f32 %v2547_v41, %v2454_v20  ;;  %v2456_v36 = vpop.f32.mrb[93].mxu1 }
 0x638   :  { %v2561_v17 = vadd.f32 %v2560_v46, %v2456_v36  ;;  %v2458_v45 = vpop.f32.mrb[94].mxu1 }
 0x639   :  { %v2549_v49 = vadd.f32 %v2548_v37, %v2458_v45  ;;  %v2460_v22 = vpop.f32.mrb[95].mxu1 }
 0x63a   :  { %v2562_v38 = vadd.f32 %v2561_v17, %v2460_v22 }
 0x63b   :  { %v2550_v8 = vrot.slane %v2549_v49, 4 }
 0x63c   :  { %v2563_v0 = vrot.slane %v2562_v38, 4 }
 0x63d   :  { %v2551_v48 = vadd.f32 %v2550_v8, %v2549_v49 }
 0x63e   :  { %v2564_v33 = vadd.f32 %v2563_v0, %v2562_v38 }
 0x63f   :  { %v2552_v23 = vrot.slane %v2551_v48, 2 }
 0x640   :  { %v2565_v21 = vrot.slane %v2564_v33, 2 }
 0x641   :  { %v2553_v44 = vadd.f32 %v2552_v23, %v2551_v48 }
 0x642   :  { %v2566_v1 = vadd.f32 %v2565_v21, %v2564_v33 }
 0x643   :  { %v2554_v35 = vrot.slane %v2553_v44, 1 }
 0x644   :  { %v2567_v31 = vrot.slane %v2566_v1, 1 }
 0x645   :  { %v2555_v24 = vadd.f32 %v2554_v35, %v2553_v44 }
 0x646   :  { %v2568_v61 = vadd.f32 %v2567_v31, %v2566_v1 }
 0x647   :  { %v2575_v55 = vmul.f32 0.015625, %v2555_v24 }
 0x648   :  { %v2576_v41 = vmul.f32 0.015625, %v2568_v61 }
 0x649   :  { %v5595_v32 = vsub.f32 %v2424_v30, %v2575_v55  ;;  %v5597_v46 = vsub.f32 %v2428_v9, %v2575_v55  ;;  %v5599_v37 = vsub.f32 %v2434_v58, %v2575_v55  ;;  %v5601_v17 = vsub.f32 %v2438_v11, %v2575_v55 }
 0x64a   :  { %v5603_v8 = vsub.f32 %v2444_v10, %v2575_v55  ;;  %v5605_v49 = vsub.f32 %v2448_v59, %v2575_v55  ;;  %v5607_v23 = vsub.f32 %v2454_v20, %v2575_v55  ;;  %v5609_v48 = vsub.f32 %v2458_v45, %v2575_v55 }
 0x64b   :  { %v2647_v35 = vmul.f32 %v5595_v32, %v5595_v32  ;;  %v2655_v44 = vmul.f32 %v5597_v46, %v5597_v46  ;;  %v2663_v24 = vmul.f32 %v5599_v37, %v5599_v37  ;;  %v2671_v30 = vmul.f32 %v5601_v17, %v5601_v17 }
 0x64c   :  { %7069 = vst [vmem:[#allocation48_spill] sm:$0xff] %v5609_v48  ;;  %v5619_v58 = vsub.f32 %v2426_v60, %v2576_v41  ;;  %v5621_v11 = vsub.f32 %v2430_v47, %v2576_v41  ;;  %v5623_v20 = vsub.f32 %v2436_v19, %v2576_v41  ;;  %v5625_v55 = vsub.f32 %v2440_v13, %v2576_v41 }
 0x64d   :  { %v2783_v9 = vadd.f32 %v2655_v44, %v2647_v35  ;;  %v5627_v45 = vsub.f32 %v2446_v16, %v2576_v41  ;;  %v5629_v10 = vsub.f32 %v2450_v56, %v2576_v41  ;;  %v5631_v59 = vsub.f32 %v2456_v36, %v2576_v41 }
 0x64e   :  { %v5633_v0 = vsub.f32 %v2460_v22, %v2576_v41  ;;  %v2648_v33 = vmul.f32 %v5619_v58, %v5619_v58  ;;  %v2656_v60 = vmul.f32 %v5621_v11, %v5621_v11  ;;  %v2679_v47 = vmul.f32 %v5603_v8, %v5603_v8 }
 0x64f   :  { %7070 = vst [vmem:[#allocation49_spill] sm:$0xff] %v5631_v59  ;;  %v2784_v38 = vadd.f32 %v2783_v9, %v2663_v24  ;;  %v2664_v13 = vmul.f32 %v5623_v20, %v5623_v20  ;;  %v2687_v36 = vmul.f32 %v5605_v49, %v5605_v49  ;;  %v2672_v22 = vmul.f32 %v5625_v55, %v5625_v55 }
 0x650   :  { %7071 = vst [vmem:[#allocation50_spill] sm:$0xff] %v5633_v0  ;;  %v2796_v16 = vadd.f32 %v2656_v60, %v2648_v33  ;;  %v2695_v1 = vmul.f32 %v5607_v23, %v5607_v23  ;;  %v2680_v61 = vmul.f32 %v5627_v45, %v5627_v45  ;;  %v2703_v35 = vmul.f32 %v5609_v48, %v5609_v48 }
 0x651   :  { %v2785_v19 = vadd.f32 %v2784_v38, %v2671_v30  ;;  %v2688_v24 = vmul.f32 %v5629_v10, %v5629_v10  ;;  %v2696_v38 = vmul.f32 %v5631_v59, %v5631_v59 }
 0x652   :  { %v2797_v21 = vadd.f32 %v2796_v16, %v2664_v13 }
 0x653   :  { %v2786_v56 = vadd.f32 %v2785_v19, %v2679_v47  ;;  %v2704_v47 = vmul.f32 %v5633_v0, %v5633_v0 }
 0x654   :  { %v2798_v41 = vadd.f32 %v2797_v21, %v2672_v22 }
 0x655   :  { %v2787_v31 = vadd.f32 %v2786_v56, %v2687_v36 }
 0x656   :  { %v2799_v30 = vadd.f32 %v2798_v41, %v2680_v61 }
 0x657   :  { %v2788_v44 = vadd.f32 %v2787_v31, %v2695_v1 }
 0x658   :  { %v2800_v33 = vadd.f32 %v2799_v30, %v2688_v24 }
 0x659   :  { %v2789_v9 = vadd.f32 %v2788_v44, %v2703_v35 }
 0x65a   :  { %v2801_v19 = vadd.f32 %v2800_v33, %v2696_v38  ;;  %v7072_v33 = vcombine.low %v5589_v6, %v5591_v63  ;;  %v6987_v6 = vsub.s32 5, %v4504_v27  ;;  %v6986_v63 = vsub.s32 6, %v4504_v27 }
 0x65b   :  { %v2790_v60 = vrot.slane %v2789_v9, 4 }
 0x65c   :  { %v2802_v16 = vadd.f32 %v2801_v19, %v2704_v47 }
 0x65d   :  { %v2791_v13 = vadd.f32 %v2790_v60, %v2789_v9  ;;  %v2865_v60 = vrot.slane %v7072_v33, %v4507_v29 }
 0x65e   :  { %v2803_v56 = vrot.slane %v2802_v16, 4 }
 0x65f   :  { %v2792_v36 = vrot.slane %v2791_v13, 2 }
 0x660   :  { %v2804_v21 = vadd.f32 %v2803_v56, %v2802_v16  ;;  %v2463_v16 = vld [vmem:[%s6945_s4 + $0xd] sm:$0xff]  ;;  %v6985_v56 = vsub.s32 7, %v4504_v27 }
 0x661   :  { %v2793_v22 = vadd.f32 %v2792_v36, %v2791_v13  ;;  %v6988_v36 = vsub.s32 4, %v4504_v27 }
 0x662   :  { %v2805_v31 = vrot.slane %v2804_v21, 2 }
 0x663   :  { %v2794_v1 = vrot.slane %v2793_v22, 1 }
 0x664   :  { %v2806_v61 = vadd.f32 %v2805_v31, %v2804_v21  ;;  %v7076_v31 = vld [vmem:[#allocation20_spill] sm:$0xff] }
 0x665   :  { %v2795_v48 = vadd.f32 %v2794_v1, %v2793_v22 }
 0x666   :  { %v2807_v35 = vrot.slane %v2806_v61, 1 }
 0x667   :  { %v2815_v41 = vmul.f32 0.015625, %v2795_v48  ;;  %v7073_v48 = vcombine.low %v5582_v7, %v5585_v12  ;;  %v7074_v7 = vld [vmem:[#allocation18_spill] sm:$0xff] }
 0x668   :  { %v2808_v59 = vadd.f32 %v2807_v35, %v2806_v61 }
 0x669   :  { %v2823_v44 = vadd.f32 0.8, %v2815_v41  ;;  %v2881_v13 = vrot.slane %v7073_v48, %v4507_v29 }
 0x66a   :  { %v2816_v24 = vmul.f32 0.015625, %v2808_v59 }
 0x66b   :  { %4217 = vrsqrt.f32 %v2823_v44 }
 0x66c   :  { %v2824_v30 = vadd.f32 0.8, %v2816_v24 }
 0x66e   :  { %4219 = vrsqrt.f32 %v2824_v30 }
 0x675   :  { %v4218_v0 = vpop.eup %4217 }
 0x678   :  { %v4220_v38 = vpop.eup %4219 }
 0x679   :  { %v2844_v9 = vcombine.low %v4218_v0, %v4220_v38 }
 0x67b   :  { %v2872_v47 = vrot.slane %v2844_v9, %v4507_v29 }
 0x67d   :  { %v2874_v19 = vcombine.low %v2865_v60, %v2872_v47  ;;  %v7077_v47 = vld [vmem:[#allocation21_spill] sm:$0xff] }
 0x67f   :  { %v2888_v59 = vrot.slane %v2874_v19, %v4507_v29  ;;  %v7075_v29 = vld [vmem:[#allocation19_spill] sm:$0xff] }
 0x680   :  { %v7078_v19 = vld [vmem:[#allocation27_spill] sm:$0xff] }
 0x681   :  { %v2889_v0 = vcombine.low %v2881_v13, %v2888_v59  ;;  %v7079_v59 = vld [vmem:[#allocation22_spill] sm:$0xff] }
 0x683   :  { %v2891_v22 = vmul.f32 %v2889_v0, %v2463_v16  ;;  %v7080_v16 = vld [vmem:[#allocation28_spill] sm:$0xff] }
 0x685   :  { %v5677_v21 = vrot.slane %v2891_v22, %v4515_v43  ;;  %v5680_v12 = vrot.slane %v2891_v22, %v7074_v7  ;;  %v5683_v1 = vrot.slane %v2891_v22, %v7075_v29  ;;  %v5686_v61 = vrot.slane %v2891_v22, %v7076_v31 }
 0x686   :  { %v5690_v41 = vrot.slane %v2891_v22, %v6988_v36  ;;  %v5694_v35 = vrot.slane %v2891_v22, %v6987_v6  ;;  %v5698_v44 = vrot.slane %v2891_v22, %v6986_v63  ;;  %v5702_v24 = vrot.slane %v2891_v22, %v6985_v56  ;;  %v7085_v56 = vld [vmem:[#allocation44_spill] sm:$0xff]  ;;  %v7090_v6 = vld [vmem:[#allocation30_spill] sm:$0xff]  ;;  %v7091_v36 = vld [vmem:[#allocation33_spill] sm:$0xff] }
 0x687   :  { %v5706_v30 = vmul.f32 %v5677_v21, %v5258_v28  ;;  %v5710_v38 = vmul.f32 %v5680_v12, %v5290_v5  ;;  %v5714_v9 = vmul.f32 %v5683_v1, %v5425_v62  ;;  %v5718_v33 = vmul.f32 %v5686_v61, %v5453_v26  ;;  %v7089_v63 = vld [vmem:[#allocation24_spill] sm:$0xff] }
 0x688   :  { %v5722_v60 = vmul.f32 %v5690_v41, %v5497_v52  ;;  %v5726_v28 = vmul.f32 %v5694_v35, %v5533_v57  ;;  %v5730_v5 = vmul.f32 %v5698_v44, %v5595_v32  ;;  %v5734_v62 = vmul.f32 %v5702_v24, %v5619_v58 }
 0x689   :  { %v5738_v26 = vmul.f32 %v5677_v21, %v5261_v14  ;;  %v5742_v52 = vmul.f32 %v5680_v12, %v5293_v25  ;;  %v5746_v57 = vmul.f32 %v5683_v1, %v5428_v4  ;;  %v5750_v32 = vmul.f32 %v5686_v61, %v5456_v34 }
 0x68a   :  { %v5754_v58 = vmul.f32 %v5690_v41, %v5500_v40  ;;  %v5758_v14 = vmul.f32 %v5694_v35, %v5536_v42  ;;  %v5762_v25 = vmul.f32 %v5698_v44, %v5597_v46  ;;  %v5766_v4 = vmul.f32 %v5702_v24, %v5621_v11 }
 0x68b   :  { %v5770_v34 = vmul.f32 %v5677_v21, %v7077_v47  ;;  %v5774_v40 = vmul.f32 %v5680_v12, %v7078_v19  ;;  %v5778_v42 = vmul.f32 %v5683_v1, %v5431_v39  ;;  %v5782_v46 = vmul.f32 %v5686_v61, %v5459_v51  ;;  %v7081_v47 = vld [vmem:[#allocation23_spill] sm:$0xff]  ;;  %v7082_v19 = vld [vmem:[#allocation29_spill] sm:$0xff] }
 0x68c   :  { %v5786_v11 = vmul.f32 %v5690_v41, %v5503_v18  ;;  %v5790_v48 = vmul.f32 %v5694_v35, %v5539_v3  ;;  %v5794_v13 = vmul.f32 %v5698_v44, %v5599_v37  ;;  %v5798_v39 = vmul.f32 %v5702_v24, %v5623_v20 }
 0x68d   :  { %v5802_v51 = vmul.f32 %v5677_v21, %v7079_v59  ;;  %v5806_v18 = vmul.f32 %v5680_v12, %v7080_v16  ;;  %v5810_v3 = vmul.f32 %v5683_v1, %v5434_v54  ;;  %v5814_v37 = vmul.f32 %v5686_v61, %v5462_v2  ;;  %v7083_v59 = vld [vmem:[#allocation36_spill] sm:$0xff] }
 0x68e   :  { %v5818_v20 = vmul.f32 %v5690_v41, %v5506_v50  ;;  %v5822_v0 = vmul.f32 %v5694_v35, %v5542_v53  ;;  %v5826_v22 = vmul.f32 %v5698_v44, %v5601_v17  ;;  %v5830_v54 = vmul.f32 %v5702_v24, %v5625_v55  ;;  %v7084_v16 = vld [vmem:[#allocation40_spill] sm:$0xff] }
 0x68f   :  { %v5834_v2 = vmul.f32 %v5677_v21, %v7081_v47  ;;  %v5838_v50 = vmul.f32 %v5680_v12, %v7082_v19  ;;  %v5842_v53 = vmul.f32 %v5683_v1, %v5436_v15  ;;  %v5846_v17 = vmul.f32 %v5686_v61, %v7083_v59 }
 0x690   :  { %v5850_v55 = vmul.f32 %v5690_v41, %v7084_v16  ;;  %v5854_v47 = vmul.f32 %v5694_v35, %v7085_v56  ;;  %v5858_v19 = vmul.f32 %v5698_v44, %v5603_v8  ;;  %v5862_v15 = vmul.f32 %v5702_v24, %v5627_v45 }
 0x691   :  { %v5866_v59 = vmul.f32 %v5677_v21, %v7089_v63  ;;  %v5870_v16 = vmul.f32 %v5680_v12, %v7090_v6  ;;  %v5874_v56 = vmul.f32 %v5683_v1, %v7091_v36  ;;  %v5890_v6 = vmul.f32 %v5698_v44, %v5605_v49 }
 0x692   :  { %7086 = vst [vmem:[#allocation19_spill] sm:$0xff] %v5854_v47  ;;  %7087 = vst [vmem:[#allocation20_spill] sm:$0xff] %v5858_v19  ;;  %v7093_v47 = vld [vmem:[#allocation37_spill] sm:$0xff]  ;;  %v5894_v36 = vmul.f32 %v5702_v24, %v5629_v10 }
 0x693   :  { %7088 = vst [vmem:[#allocation21_spill] sm:$0xff] %v5862_v15  ;;  %7092 = vst [vmem:[#allocation27_spill] sm:$0xff] %v5874_v56  ;;  %v5878_v8 = vmul.f32 %v5686_v61, %v7093_v47  ;;  %v7095_v19 = vld [vmem:[#allocation41_spill] sm:$0xff] }
 0x694   :  { %v5882_v45 = vmul.f32 %v5690_v41, %v7095_v19  ;;  %v7097_v15 = vld [vmem:[#allocation45_spill] sm:$0xff]  ;;  %7099 = vst [vmem:[#allocation29_spill] sm:$0xff] %v5890_v6  ;;  %7100 = vst [vmem:[#allocation36_spill] sm:$0xff] %v5894_v36  ;;  %v7108_v6 = vld [vmem:[#allocation42_spill] sm:$0xff] }
 0x695   :  { %7094 = vst [vmem:[#allocation22_spill] sm:$0xff] %v5878_v8  ;;  %v5886_v63 = vmul.f32 %v5694_v35, %v7097_v15  ;;  %v7101_v56 = vld [vmem:[#allocation25_spill] sm:$0xff]  ;;  %v7102_v8 = vld [vmem:[#allocation31_spill] sm:$0xff]  ;;  %v5914_v10 = vmul.f32 %v5690_v41, %v7108_v6  ;;  %v7110_v36 = vld [vmem:[#allocation46_spill] sm:$0xff] }
 0x696   :  { %7096 = vst [vmem:[#allocation28_spill] sm:$0xff] %v5882_v45  ;;  %v5898_v47 = vmul.f32 %v5677_v21, %v7101_v56  ;;  %v5902_v19 = vmul.f32 %v5680_v12, %v7102_v8  ;;  %v7104_v45 = vld [vmem:[#allocation34_spill] sm:$0xff]  ;;  %v5918_v56 = vmul.f32 %v5694_v35, %v7110_v36  ;;  %v5922_v8 = vmul.f32 %v5698_v44, %v5607_v23 }
 0x697   :  { %7098 = vst [vmem:[#allocation23_spill] sm:$0xff] %v5886_v63  ;;  %v5906_v15 = vmul.f32 %v5683_v1, %v7104_v45  ;;  %v7106_v63 = vld [vmem:[#allocation38_spill] sm:$0xff]  ;;  %7109 = vst [vmem:[#allocation30_spill] sm:$0xff] %v5914_v10  ;;  %v7117_v10 = vld [vmem:[#allocation35_spill] sm:$0xff] }
 0x698   :  { %7103 = vst [vmem:[#allocation40_spill] sm:$0xff] %v5902_v19  ;;  %v5910_v49 = vmul.f32 %v5686_v61, %v7106_v63  ;;  %7111 = vst [vmem:[#allocation33_spill] sm:$0xff] %v5918_v56  ;;  %v7113_v19 = vld [vmem:[#allocation49_spill] sm:$0xff]  ;;  %v5938_v36 = vmul.f32 %v5683_v1, %v7117_v10  ;;  %v7118_v56 = vld [vmem:[#allocation39_spill] sm:$0xff] }
 0x699   :  { %7105 = vst [vmem:[#allocation44_spill] sm:$0xff] %v5906_v15  ;;  %7112 = vst [vmem:[#allocation37_spill] sm:$0xff] %v5922_v8  ;;  %v5926_v45 = vmul.f32 %v5702_v24, %v7113_v19  ;;  %v7115_v15 = vld [vmem:[#allocation26_spill] sm:$0xff]  ;;  %v5942_v23 = vmul.f32 %v5686_v61, %v7118_v56  ;;  %v7119_v8 = vld [vmem:[#allocation43_spill] sm:$0xff]  ;;  %v7123_v56 = vsub.s32 4, %v4504_v27 }
 0x69a   :  { %7107 = vst [vmem:[#allocation24_spill] sm:$0xff] %v5910_v49  ;;  %v5930_v63 = vmul.f32 %v5677_v21, %v7115_v15  ;;  %v7116_v49 = vld [vmem:[#allocation32_spill] sm:$0xff]  ;;  %v5946_v19 = vmul.f32 %v5690_v41, %v7119_v8  ;;  %v7124_v8 = vsub.s32 5, %v4504_v27 }
 0x69b   :  { %7114 = vst [vmem:[#allocation41_spill] sm:$0xff] %v5926_v45  ;;  %v5934_v6 = vmul.f32 %v5680_v12, %v7116_v49  ;;  %v7120_v45 = vld [vmem:[#allocation47_spill] sm:$0xff]  ;;  %v7121_v15 = vld [vmem:[#allocation48_spill] sm:$0xff]  ;;  %v7122_v49 = vld [vmem:[#allocation50_spill] sm:$0xff] }
 0x69c   :  { %v5950_v21 = vmul.f32 %v5694_v35, %v7120_v45  ;;  %v5954_v12 = vmul.f32 %v5698_v44, %v7121_v15  ;;  %v5958_v1 = vmul.f32 %v5702_v24, %v7122_v49  ;;  %v2464_v61 = vld [vmem:[%s6945_s4 + $0x15] sm:$0xff]  ;;  %v7125_v15 = vsub.s32 6, %v4504_v27 }
 0x69d   :  { %v5964_v10 = vrot.slane %v2464_v61, %v4515_v43  ;;  %v5967_v41 = vrot.slane %v2464_v61, %v7074_v7  ;;  %v5970_v35 = vrot.slane %v2464_v61, %v7075_v29  ;;  %v5973_v44 = vrot.slane %v2464_v61, %v7076_v31 }
 0x69e   :  { %v5977_v24 = vrot.slane %v2464_v61, %v7123_v56  ;;  %v5981_v45 = vrot.slane %v2464_v61, %v7124_v8  ;;  %v5985_v49 = vrot.slane %v2464_v61, %v7125_v15  ;;  %v7126_v7 = vsub.s32 7, %v4504_v27  ;;  %v7132_v15 = vld [vmem:[#allocation21_spill] sm:$0xff] }
 0x69f   :  { %v5993_v29 = vadd.f32 %v5964_v10, %v5706_v30  ;;  %v5997_v31 = vadd.f32 %v5967_v41, %v5710_v38  ;;  %v6001_v56 = vadd.f32 %v5970_v35, %v5714_v9  ;;  %v6005_v8 = vadd.f32 %v5973_v44, %v5718_v33 }
 0x6a0   :  { %v5989_v43 = vrot.slane %v2464_v61, %v7126_v7  ;;  %v6009_v27 = vadd.f32 %v5977_v24, %v5722_v60  ;;  %v6013_v7 = vadd.f32 %v5981_v45, %v5726_v28  ;;  %v6017_v30 = vadd.f32 %v5985_v49, %v5730_v5  ;;  %v7130_v61 = vld [vmem:[#allocation20_spill] sm:$0xff] }
 0x6a1   :  { %v6025_v9 = vadd.f32 %v5964_v10, %v5738_v26  ;;  %v6029_v33 = vadd.f32 %v5967_v41, %v5742_v52  ;;  %v6033_v60 = vadd.f32 %v5970_v35, %v5746_v57  ;;  %v6037_v28 = vadd.f32 %v5973_v44, %v5750_v32 }
 0x6a2   :  { %v6021_v38 = vadd.f32 %v5989_v43, %v5734_v62  ;;  %v6041_v5 = vadd.f32 %v5977_v24, %v5754_v58  ;;  %v6045_v62 = vadd.f32 %v5981_v45, %v5758_v14  ;;  %v6049_v26 = vadd.f32 %v5985_v49, %v5762_v25 }
 0x6a3   :  { %v6053_v52 = vadd.f32 %v5989_v43, %v5766_v4  ;;  %v6057_v57 = vadd.f32 %v5964_v10, %v5770_v34  ;;  %v6061_v32 = vadd.f32 %v5967_v41, %v5774_v40  ;;  %v6065_v58 = vadd.f32 %v5970_v35, %v5778_v42 }
 0x6a4   :  { %v6069_v14 = vadd.f32 %v5973_v44, %v5782_v46  ;;  %v6073_v25 = vadd.f32 %v5977_v24, %v5786_v11  ;;  %v6077_v4 = vadd.f32 %v5981_v45, %v5790_v48  ;;  %v6081_v34 = vadd.f32 %v5985_v49, %v5794_v13 }
 0x6a5   :  { %v6085_v40 = vadd.f32 %v5989_v43, %v5798_v39  ;;  %v6089_v42 = vadd.f32 %v5964_v10, %v5802_v51  ;;  %v6093_v46 = vadd.f32 %v5967_v41, %v5806_v18  ;;  %v6097_v11 = vadd.f32 %v5970_v35, %v5810_v3 }
 0x6a6   :  { %v6101_v48 = vadd.f32 %v5973_v44, %v5814_v37  ;;  %v6105_v13 = vadd.f32 %v5977_v24, %v5818_v20  ;;  %v6109_v39 = vadd.f32 %v5981_v45, %v5822_v0  ;;  %v6113_v51 = vadd.f32 %v5985_v49, %v5826_v22 }
 0x6a7   :  { %v6117_v18 = vadd.f32 %v5989_v43, %v5830_v54  ;;  %v6121_v3 = vadd.f32 %v5964_v10, %v5834_v2  ;;  %v6125_v37 = vadd.f32 %v5967_v41, %v5838_v50  ;;  %v6129_v20 = vadd.f32 %v5970_v35, %v5842_v53  ;;  %v7128_v54 = vld [vmem:[#allocation19_spill] sm:$0xff] }
 0x6a8   :  { %v6133_v0 = vadd.f32 %v5973_v44, %v5846_v17  ;;  %v6137_v22 = vadd.f32 %v5977_v24, %v5850_v55  ;;  %v6141_v2 = vadd.f32 %v5981_v45, %v7128_v54  ;;  %v6145_v50 = vadd.f32 %v5985_v49, %v7130_v61 }
 0x6a9   :  { %v6149_v53 = vadd.f32 %v5989_v43, %v7132_v15  ;;  %v6153_v17 = vadd.f32 %v5964_v10, %v5866_v59  ;;  %v6157_v55 = vadd.f32 %v5967_v41, %v5870_v16  ;;  %vm3102_vm2 = vcmp.gt.f32.partialorder %v5993_v29, 0.0 }
 0x6aa   :  { %7127 = vst [vmem:[#allocation45_spill] sm:$0xff] %v6137_v22  ;;  %7129 = vst [vmem:[#allocation25_spill] sm:$0xff] %v6141_v2  ;;  %v7136_v22 = vld [vmem:[#allocation27_spill] sm:$0xff]  ;;  %v7137_v2 = vld [vmem:[#allocation22_spill] sm:$0xff]  ;;  %vm3103_vm4 = vcmp.gt.f32.partialorder %v5997_v31, 0.0  ;;  %vm3104_vm5 = vcmp.gt.f32.partialorder %v6001_v56, 0.0 }
 0x6ab   :  { %7131 = vst [vmem:[#allocation31_spill] sm:$0xff] %v6145_v50  ;;  %7133 = vst [vmem:[#allocation34_spill] sm:$0xff] %v6149_v53  ;;  %v6161_v54 = vadd.f32 %v5970_v35, %v7136_v22  ;;  %v6165_v61 = vadd.f32 %v5973_v44, %v7137_v2  ;;  %v7139_v50 = vld [vmem:[#allocation28_spill] sm:$0xff]  ;;  %v7141_v53 = vld [vmem:[#allocation23_spill] sm:$0xff]  ;;  %v6185_v2 = vadd.f32 %v5964_v10, %v5898_v47  ;;  %vm3105_vm6 = vcmp.gt.f32.partialorder %v6005_v8, 0.0 }
 0x6ac   :  { %7134 = vst [vmem:[#allocation38_spill] sm:$0xff] %v6153_v17  ;;  %7135 = vst [vmem:[#allocation42_spill] sm:$0xff] %v6157_v55  ;;  %v6169_v15 = vadd.f32 %v5977_v24, %v7139_v50  ;;  %v6173_v59 = vadd.f32 %v5981_v45, %v7141_v53  ;;  %v7143_v17 = vld [vmem:[#allocation29_spill] sm:$0xff]  ;;  %v7145_v55 = vld [vmem:[#allocation36_spill] sm:$0xff]  ;;  %vm3106_vm9 = vcmp.gt.f32.partialorder %v6009_v27, 0.0  ;;  %vm3107_vm10 = vcmp.gt.f32.partialorder %v6013_v7, 0.0 }
 0x6ad   :  { %7138 = vst [vmem:[#allocation46_spill] sm:$0xff] %v6165_v61  ;;  %v6177_v16 = vadd.f32 %v5985_v49, %v7143_v17  ;;  %v6181_v22 = vadd.f32 %v5989_v43, %v7145_v55  ;;  %7147 = vst [vmem:[#allocation39_spill] sm:$0xff] %v6185_v2  ;;  %v7148_v61 = vld [vmem:[#allocation40_spill] sm:$0xff]  ;;  %v7155_v2 = vld [vmem:[#allocation37_spill] sm:$0xff]  ;;  %vm3108_vm15 = vcmp.gt.f32.partialorder %v6017_v30, 0.0  ;;  %vm3109_vm0 = vcmp.gt.f32.partialorder %v6021_v38, 0.0 }
 0x6ae   :  { %7140 = vst [vmem:[#allocation49_spill] sm:$0xff] %v6169_v15  ;;  %7142 = vst [vmem:[#allocation26_spill] sm:$0xff] %v6173_v59  ;;  %v6189_v50 = vadd.f32 %v5967_v41, %v7148_v61  ;;  %v7150_v15 = vld [vmem:[#allocation44_spill] sm:$0xff]  ;;  %v6209_v61 = vadd.f32 %v5985_v49, %v7155_v2  ;;  %v6229_v2 = vadd.f32 %v5973_v44, %v5942_v23  ;;  %vm3110_vm1 = vcmp.gt.f32.partialorder %v6025_v9, 0.0 }
 0x6af   :  { %7144 = vst [vmem:[#allocation32_spill] sm:$0xff] %v6177_v16  ;;  %7146 = vst [vmem:[#allocation35_spill] sm:$0xff] %v6181_v22  ;;  %v6193_v53 = vadd.f32 %v5970_v35, %v7150_v15  ;;  %v7151_v59 = vld [vmem:[#allocation24_spill] sm:$0xff]  ;;  %v7152_v16 = vld [vmem:[#allocation30_spill] sm:$0xff]  ;;  %vm3111_vm11 = vcmp.gt.f32.partialorder %v6029_v33, 0.0  ;;  %vm3112_vm12 = vcmp.gt.f32.partialorder %v6033_v60, 0.0 }
 0x6b0   :  { %7149 = vst [vmem:[#allocation43_spill] sm:$0xff] %v6189_v50  ;;  %v6197_v17 = vadd.f32 %v5973_v44, %v7151_v59  ;;  %v6201_v55 = vadd.f32 %v5977_v24, %v7152_v16  ;;  %v7153_v22 = vld [vmem:[#allocation33_spill] sm:$0xff]  ;;  %7156 = vst [vmem:[#allocation48_spill] sm:$0xff] %v6209_v61  ;;  %v6217_v59 = vadd.f32 %v5964_v10, %v5930_v63  ;;  %v3167_v23 = vmul.f32 0.2, %v5997_v31 }
 0x6b1   :  { %v6205_v47 = vadd.f32 %v5981_v45, %v7153_v22  ;;  %v7157_v50 = vld [vmem:[#allocation41_spill] sm:$0xff]  ;;  %v6221_v16 = vadd.f32 %v5967_v41, %v5934_v6  ;;  %v6225_v22 = vadd.f32 %v5970_v35, %v5938_v36  ;;  %7161 = vst [vmem:[#allocation21_spill] sm:$0xff] %v6229_v2  ;;  %v6237_v63 = vadd.f32 %v5981_v45, %v5950_v21 }
 0x6b2   :  { %v6213_v15 = vadd.f32 %v5989_v43, %v7157_v50  ;;  %7159 = vst [vmem:[#allocation19_spill] sm:$0xff] %v6217_v59  ;;  %v6233_v50 = vadd.f32 %v5977_v24, %v5946_v19  ;;  %v6250_v6 = vadd.f32 %v5985_v49, %v5954_v12  ;;  %v3166_v36 = vmul.f32 0.2, %v5993_v29 }
 0x6b3   :  { %7154 = vst [vmem:[#allocation47_spill] sm:$0xff] %v6205_v47  ;;  %7160 = vst [vmem:[#allocation20_spill] sm:$0xff] %v6221_v16  ;;  %v3168_v19 = vmul.f32 0.2, %v6001_v56  ;;  %v6258_v21 = vadd.f32 %v5989_v43, %v5958_v1  ;;  %v3169_v10 = vmul.f32 0.2, %v6005_v8 }
 0x6b4   :  { %7158 = vst [vmem:[#allocation50_spill] sm:$0xff] %v6213_v15  ;;  %7162 = vst [vmem:[#allocation27_spill] sm:$0xff] %v6233_v50  ;;  %v3170_v41 = vmul.f32 0.2, %v6009_v27  ;;  %v3171_v12 = vmul.f32 0.2, %v6013_v7  ;;  %v6271_v43 = vsel %vm3102_vm2, %v5993_v29, %v3166_v36 }
 0x6b5   :  { %7163 = vst [vmem:[#allocation22_spill] sm:$0xff] %v6237_v63  ;;  %7164 = vst [vmem:[#allocation28_spill] sm:$0xff] %v6250_v6  ;;  %vm3113_vm8 = vcmp.gt.f32.partialorder %v6037_v28, 0.0  ;;  %v3172_v35 = vmul.f32 0.2, %v6017_v30  ;;  %vm3114_vm3 = vcmp.gt.f32.partialorder %v6041_v5, 0.0  ;;  %v6312_v63 = vsel %vm3105_vm6, %v6005_v8, %v3169_v10 }
 0x6b6   :  { %7165 = vst [vmem:[#allocation23_spill] sm:$0xff] %v6258_v21  ;;  %v3173_v44 = vmul.f32 0.2, %v6021_v38  ;;  %v3174_v24 = vmul.f32 0.2, %v6025_v9  ;;  %7166 = vst [vmem:[#allocation29_spill] sm:$0xff] %v6271_v43  ;;  %v6282_v21 = vsel %vm3103_vm4, %v5997_v31, %v3167_v23  ;;  %v6297_v43 = vsel %vm3104_vm5, %v6001_v56, %v3168_v19 }
 0x6b7   :  { %v3175_v1 = vmul.f32 0.2, %v6029_v33  ;;  %v3176_v45 = vmul.f32 0.2, %v6033_v60  ;;  %v6277_v49 = vmul.f32 0.2, %v6037_v28  ;;  %v6327_v50 = vsel %vm3106_vm9, %v6009_v27, %v3170_v41 }
 0x6b8   :  { %7167 = vst [vmem:[#allocation36_spill] sm:$0xff] %v6282_v21  ;;  %vm3115_vm13 = vcmp.gt.f32.partialorder %v6045_v62, 0.0  ;;  %v6286_v6 = vmul.f32 0.2, %v6041_v5  ;;  %v6289_v29 = vmul.f32 0.2, %v6045_v62 }
 0x6b9   :  { %v6292_v36 = vmul.f32 0.2, %v6049_v26  ;;  %7168 = vst [vmem:[#allocation40_spill] sm:$0xff] %v6297_v43  ;;  %vm3116_vm14 = vcmp.gt.f32.partialorder %v6049_v26, 0.0  ;;  %v6301_v31 = vmul.f32 0.2, %v6053_v52 }
 0x6ba   :  { %v6304_v23 = vmul.f32 0.2, %v6057_v57  ;;  %v6307_v21 = vmul.f32 0.2, %v6061_v32  ;;  %7169 = vst [vmem:[#allocation44_spill] sm:$0xff] %v6312_v63  ;;  %vm3117_vm7 = vcmp.gt.f32.partialorder %v6053_v52, 0.0 }
 0x6bb   :  { %v6316_v56 = vmul.f32 0.2, %v6065_v58  ;;  %v6319_v19 = vmul.f32 0.2, %v6069_v14  ;;  %v6322_v43 = vmul.f32 0.2, %v6073_v25 }
 0x6bc   :  { %7171 = vst [vmem:[#allocation30_spill] sm:$0xff] %v6327_v50  ;;  %vm3118_vm2 = vcmp.gt.f32.partialorder %v6057_v57, 0.0  ;;  %v6331_v8 = vmul.f32 0.2, %v6077_v4  ;;  %v6334_v10 = vmul.f32 0.2, %v6081_v34 }
 0x6bd   :  { %7170 = vst [vmem:[#allocation24_spill] sm:$0xff] %v6322_v43  ;;  %v6337_v63 = vmul.f32 0.2, %v6085_v40  ;;  %v6342_v43 = vsel %vm3107_vm10, %v6013_v7, %v3171_v12  ;;  %vm3119_vm4 = vcmp.gt.f32.partialorder %v6061_v32, 0.0  ;;  %v6346_v27 = vmul.f32 0.2, %v6089_v42 }
 0x6be   :  { %7173 = vst [vmem:[#allocation37_spill] sm:$0xff] %v6342_v43  ;;  %v6349_v41 = vmul.f32 0.2, %v6093_v46  ;;  %v6352_v50 = vmul.f32 0.2, %v6097_v11  ;;  %vm3120_vm5 = vcmp.gt.f32.partialorder %v6065_v58, 0.0 }
 0x6bf   :  { %7172 = vst [vmem:[#allocation33_spill] sm:$0xff] %v6337_v63  ;;  %v6357_v63 = vsel %vm3108_vm15, %v6017_v30, %v3172_v35  ;;  %v6361_v7 = vmul.f32 0.2, %v6101_v48  ;;  %v6364_v12 = vmul.f32 0.2, %v6105_v13  ;;  %vm3121_vm6 = vcmp.gt.f32.partialorder %v6069_v14, 0.0 }
 0x6c0   :  { %7174 = vst [vmem:[#allocation41_spill] sm:$0xff] %v6352_v50  ;;  %7175 = vst [vmem:[#allocation51_spill] sm:$0xff] %v6357_v63  ;;  %v6367_v43 = vmul.f32 0.2, %v6109_v39  ;;  %v6372_v50 = vsel %vm3109_vm0, %v6021_v38, %v3173_v44  ;;  %v6378_v30 = vmul.f32 0.2, %v6113_v51  ;;  %v6389_v38 = vsel %vm3110_vm1, %v6025_v9, %v3174_v24 }
 0x6c1   :  { %7176 = vst [vmem:[#allocation52_spill] sm:$0xff] %v6372_v50  ;;  %v6381_v35 = vmul.f32 0.2, %v6117_v18  ;;  %v6384_v63 = vmul.f32 0.2, %v6121_v3  ;;  %7180 = vst [vmem:[#allocation56_spill] sm:$0xff] %v6389_v38  ;;  %v6407_v9 = vsel %vm3111_vm11, %v6029_v33, %v3175_v1  ;;  %v6425_v33 = vsel %vm3112_vm12, %v6033_v60, %v3176_v45 }
 0x6c2   :  { %7177 = vst [vmem:[#allocation53_spill] sm:$0xff] %v6378_v30  ;;  %vm3124_vm15 = vcmp.gt.f32.partialorder %v6081_v34, 0.0  ;;  %v6396_v44 = vmul.f32 0.2, %v6125_v37  ;;  %v6399_v50 = vmul.f32 0.2, %v6129_v20  ;;  %v6444_v60 = vsel %vm3113_vm8, %v6037_v28, %v6277_v49 }
 0x6c3   :  { %7178 = vst [vmem:[#allocation54_spill] sm:$0xff] %v6381_v35  ;;  %7179 = vst [vmem:[#allocation55_spill] sm:$0xff] %v6384_v63  ;;  %v6402_v63 = vmul.f32 0.2, %v6133_v0  ;;  %vm3128_vm1 = vcmp.gt.f32.partialorder %v6097_v11, 0.0  ;;  %v7185_v24 = vld [vmem:[#allocation45_spill] sm:$0xff]  ;;  %v6463_v28 = vsel %vm3114_vm3, %v6041_v5, %v6286_v6  ;;  %v6482_v5 = vsel %vm3115_vm13, %v6045_v62, %v6289_v29 }
 0x6c4   :  { %7181 = vst [vmem:[#allocation57_spill] sm:$0xff] %v6396_v44  ;;  %7182 = vst [vmem:[#allocation58_spill] sm:$0xff] %v6399_v50  ;;  %v6414_v38 = vmul.f32 0.2, %v7185_v24  ;;  %v7187_v50 = vld [vmem:[#allocation25_spill] sm:$0xff]  ;;  %vm3132_vm11 = vcmp.gt.f32.partialorder %v6113_v51, 0.0  ;;  %v6501_v62 = vsel %vm3116_vm14, %v6049_v26, %v6292_v36  ;;  %v6520_v26 = vsel %vm3117_vm7, %v6053_v52, %v6301_v31 }
 0x6c5   :  { %7183 = vst [vmem:[#allocation59_spill] sm:$0xff] %v6402_v63  ;;  %7184 = vst [vmem:[#allocation60_spill] sm:$0xff] %v6407_v9  ;;  %v6417_v44 = vmul.f32 0.2, %v7187_v50  ;;  %v7189_v63 = vld [vmem:[#allocation31_spill] sm:$0xff]  ;;  %v7192_v1 = vld [vmem:[#allocation34_spill] sm:$0xff]  ;;  %v6533_v52 = vsel %vm3118_vm2, %v6057_v57, %v6304_v23  ;;  %v6546_v57 = vsel %vm3119_vm4, %v6061_v32, %v6307_v21  ;;  %v6559_v32 = vsel %vm3120_vm5, %v6065_v58, %v6316_v56 }
 0x6c6   :  { %7186 = vst [vmem:[#allocation45_spill] sm:$0xff] %v6414_v38  ;;  %v6420_v35 = vmul.f32 0.2, %v7189_v63  ;;  %7191 = vst [vmem:[#allocation62_spill] sm:$0xff] %v6425_v33  ;;  %v6432_v9 = vmul.f32 0.2, %v7192_v1  ;;  %v6586_v56 = vsel %vm3124_vm15, %v6081_v34, %v6334_v10 }
 0x6c7   :  { %7188 = vst [vmem:[#allocation61_spill] sm:$0xff] %v6417_v44  ;;  %v7194_v44 = vld [vmem:[#allocation38_spill] sm:$0xff]  ;;  %7198 = vst [vmem:[#allocation63_spill] sm:$0xff] %v6444_v60  ;;  %vm3136_vm12 = vcmp.gt.f32.partialorder %v6129_v20, 0.0  ;;  %v6451_v45 = vmul.f32 0.2, %v6161_v54 }
 0x6c8   :  { %7190 = vst [vmem:[#allocation31_spill] sm:$0xff] %v6420_v35  ;;  %7193 = vst [vmem:[#allocation34_spill] sm:$0xff] %v6432_v9  ;;  %v6435_v38 = vmul.f32 0.2, %v7194_v44  ;;  %v7196_v35 = vld [vmem:[#allocation42_spill] sm:$0xff]  ;;  %vm3140_vm8 = vcmp.gt.f32.partialorder %v7189_v63, 0.0 }
 0x6c9   :  { %v6438_v30 = vmul.f32 0.2, %v7196_v35  ;;  %7199 = vst [vmem:[#allocation64_spill] sm:$0xff] %v6451_v45  ;;  %v7200_v33 = vld [vmem:[#allocation46_spill] sm:$0xff]  ;;  %7204 = vst [vmem:[#allocation65_spill] sm:$0xff] %v6463_v28  ;;  %vm3144_vm3 = vcmp.gt.f32.partialorder %v6161_v54, 0.0 }
 0x6ca   :  { %7195 = vst [vmem:[#allocation38_spill] sm:$0xff] %v6435_v38  ;;  %v6454_v38 = vmul.f32 0.2, %v7200_v33  ;;  %v7205_v49 = vld [vmem:[#allocation26_spill] sm:$0xff]  ;;  %7211 = vst [vmem:[#allocation66_spill] sm:$0xff] %v6482_v5  ;;  %v7212_v6 = vld [vmem:[#allocation39_spill] sm:$0xff] }
 0x6cb   :  { %7197 = vst [vmem:[#allocation42_spill] sm:$0xff] %v6438_v30  ;;  %v7202_v30 = vld [vmem:[#allocation49_spill] sm:$0xff]  ;;  %v6470_v60 = vmul.f32 0.2, %v7205_v49  ;;  %v6489_v28 = vmul.f32 0.2, %v7212_v6 }
 0x6cc   :  { %7201 = vst [vmem:[#allocation46_spill] sm:$0xff] %v6454_v38  ;;  %v6457_v9 = vmul.f32 0.2, %v7202_v30  ;;  %v7207_v38 = vld [vmem:[#allocation32_spill] sm:$0xff]  ;;  %v6508_v29 = vmul.f32 0.2, %v6197_v17 }
 0x6cd   :  { %7206 = vst [vmem:[#allocation26_spill] sm:$0xff] %v6470_v60  ;;  %v6473_v45 = vmul.f32 0.2, %v7207_v38  ;;  %vm3148_vm13 = vcmp.gt.f32.partialorder %v7207_v38, 0.0  ;;  %v6511_v5 = vmul.f32 0.2, %v6201_v55 }
 0x6ce   :  { %7203 = vst [vmem:[#allocation49_spill] sm:$0xff] %v6457_v9  ;;  %v7209_v9 = vld [vmem:[#allocation35_spill] sm:$0xff]  ;;  %7217 = vst [vmem:[#allocation68_spill] sm:$0xff] %v6520_v26  ;;  %vm3152_vm14 = vcmp.gt.f32.partialorder %v6193_v53, 0.0  ;;  %v3220_v36 = vmul.f32 0.2, %v6209_v61 }
 0x6cf   :  { %7208 = vst [vmem:[#allocation32_spill] sm:$0xff] %v6473_v45  ;;  %v6476_v50 = vmul.f32 0.2, %v7209_v9  ;;  %v7213_v45 = vld [vmem:[#allocation43_spill] sm:$0xff]  ;;  %7218 = vst [vmem:[#allocation69_spill] sm:$0xff] %v6533_v52  ;;  %vm3156_vm7 = vcmp.gt.f32.partialorder %v6209_v61, 0.0 }
 0x6d0   :  { %v6492_v60 = vmul.f32 0.2, %v7213_v45  ;;  %7215 = vst [vmem:[#allocation43_spill] sm:$0xff] %v6501_v62  ;;  %v3221_v62 = vmul.f32 0.2, %v6213_v15  ;;  %7219 = vst [vmem:[#allocation70_spill] sm:$0xff] %v6546_v57 }
 0x6d1   :  { %7210 = vst [vmem:[#allocation35_spill] sm:$0xff] %v6476_v50  ;;  %v6495_v50 = vmul.f32 0.2, %v6193_v53  ;;  %v3223_v31 = vmul.f32 0.2, %v6221_v16  ;;  %vm3160_vm2 = vcmp.gt.f32.partialorder %v6225_v22, 0.0 }
 0x6d2   :  { %v3224_v26 = vmul.f32 0.2, %v6225_v22  ;;  %v7220_v23 = vld [vmem:[#allocation27_spill] sm:$0xff]  ;;  %v7221_v52 = vld [vmem:[#allocation22_spill] sm:$0xff]  ;;  %v7222_v15 = vld [vmem:[#allocation28_spill] sm:$0xff]  ;;  %vm7225_vm0 = vcmp.gt.f32.partialorder %v6073_v25, 0.0 }
 0x6d3   :  { %7214 = vst [vmem:[#allocation39_spill] sm:$0xff] %v6495_v50  ;;  %v6514_v50 = vmul.f32 0.2, %v6205_v47  ;;  %v3225_v47 = vmul.f32 0.2, %v6229_v2  ;;  %vm3162_vm9 = vcmp.gt.f32.partialorder %v7220_v23, 0.0 }
 0x6d4   :  { %v3226_v16 = vmul.f32 0.2, %v7220_v23  ;;  %v3228_v61 = vmul.f32 0.2, %v7222_v15  ;;  %vm3164_vm4 = vcmp.gt.f32.partialorder %v7222_v15, 0.0  ;;  %v7223_v21 = vld [vmem:[#allocation23_spill] sm:$0xff]  ;;  %v6568_v23 = vsel %vm3121_vm6, %v6069_v14, %v6319_v19 }
 0x6d5   :  { %7216 = vst [vmem:[#allocation67_spill] sm:$0xff] %v6514_v50  ;;  %v3222_v50 = vmul.f32 0.2, %v6217_v59  ;;  %v3227_v59 = vmul.f32 0.2, %v7221_v52  ;;  %vm3165_vm10 = vcmp.gt.f32.partialorder %v7223_v21, 0.0 }
 0x6d6   :  { %v3229_v57 = vmul.f32 0.2, %v7223_v21  ;;  %v7224_v52 = vld [vmem:[#allocation24_spill] sm:$0xff]  ;;  %vm7226_vm5 = vcmp.gt.f32.partialorder %v6077_v4, 0.0  ;;  %v7227_v14 = vld [vmem:[#allocation33_spill] sm:$0xff]  ;;  %vm7228_vm6 = vcmp.gt.f32.partialorder %v6085_v40, 0.0 }
 0x6d7   :  { %v6574_v2 = vsel %vm7225_vm0, %v6073_v25, %v7224_v52  ;;  %v6580_v58 = vsel %vm7226_vm5, %v6077_v4, %v6331_v8  ;;  %v6592_v19 = vsel %vm7228_vm6, %v6085_v40, %v7227_v14  ;;  %vm7229_vm0 = vcmp.gt.f32.partialorder %v6089_v42, 0.0  ;;  %v7231_v34 = vld [vmem:[#allocation41_spill] sm:$0xff] }
 0x6d8   :  { %v6598_v25 = vsel %vm7229_vm0, %v6089_v42, %v6346_v27  ;;  %vm7230_vm5 = vcmp.gt.f32.partialorder %v6093_v46, 0.0  ;;  %v6610_v8 = vsel %vm3128_vm1, %v6097_v11, %v7231_v34  ;;  %vm7232_vm15 = vcmp.gt.f32.partialorder %v6101_v48, 0.0  ;;  %v7235_v11 = vld [vmem:[#allocation53_spill] sm:$0xff] }
 0x6d9   :  { %v6604_v4 = vsel %vm7230_vm5, %v6093_v46, %v6349_v41  ;;  %v6616_v40 = vsel %vm7232_vm15, %v6101_v48, %v6361_v7  ;;  %vm7233_vm6 = vcmp.gt.f32.partialorder %v6105_v13, 0.0  ;;  %vm7234_vm0 = vcmp.gt.f32.partialorder %v6109_v39, 0.0  ;;  %v7236_v48 = vld [vmem:[#allocation54_spill] sm:$0xff]  ;;  %v7248_v14 = vld [vmem:[#allocation25_spill] sm:$0xff] }
 0x6da   :  { %v6622_v42 = vsel %vm7233_vm6, %v6105_v13, %v6364_v12  ;;  %v6628_v46 = vsel %vm7234_vm0, %v6109_v39, %v6367_v43  ;;  %v6634_v10 = vsel %vm3132_vm11, %v6113_v51, %v7235_v11  ;;  %vm7237_vm1 = vcmp.gt.f32.partialorder %v6117_v18, 0.0  ;;  %v7238_v13 = vld [vmem:[#allocation55_spill] sm:$0xff]  ;;  %v7240_v39 = vld [vmem:[#allocation57_spill] sm:$0xff]  ;;  %v7242_v51 = vld [vmem:[#allocation58_spill] sm:$0xff] }
 0x6db   :  { %v6640_v27 = vsel %vm7237_vm1, %v6117_v18, %v7236_v48  ;;  %vm7239_vm5 = vcmp.gt.f32.partialorder %v6121_v3, 0.0  ;;  %vm7241_vm15 = vcmp.gt.f32.partialorder %v6125_v37, 0.0  ;;  %v6658_v7 = vsel %vm3136_vm12, %v6129_v20, %v7242_v51  ;;  %v7243_v18 = vld [vmem:[#allocation59_spill] sm:$0xff] }
 0x6dc   :  { %v6646_v41 = vsel %vm7239_vm5, %v6121_v3, %v7238_v13  ;;  %v6652_v43 = vsel %vm7241_vm15, %v6125_v37, %v7240_v39  ;;  %vm7244_vm11 = vcmp.gt.f32.partialorder %v6133_v0, 0.0  ;;  %v7245_v3 = vld [vmem:[#allocation45_spill] sm:$0xff]  ;;  %vm7246_vm6 = vcmp.gt.f32.partialorder %v7185_v24, 0.0  ;;  %v7250_v20 = vld [vmem:[#allocation31_spill] sm:$0xff]  ;;  %v7255_v39 = vld [vmem:[#allocation42_spill] sm:$0xff] }
 0x6dd   :  { %v6664_v12 = vsel %vm7244_vm11, %v6133_v0, %v7243_v18  ;;  %v6670_v52 = vsel %vm7246_vm6, %v7185_v24, %v7245_v3  ;;  %v7247_v37 = vld [vmem:[#allocation61_spill] sm:$0xff]  ;;  %vm7249_vm0 = vcmp.gt.f32.partialorder %v7248_v14, 0.0  ;;  %v6682_v11 = vsel %vm3140_vm8, %v7189_v63, %v7250_v20  ;;  %v7251_v0 = vld [vmem:[#allocation34_spill] sm:$0xff]  ;;  %v7257_v63 = vld [vmem:[#allocation64_spill] sm:$0xff] }
 0x6de   :  { %v6676_v34 = vsel %vm7249_vm0, %v7248_v14, %v7247_v37  ;;  %vm7252_vm12 = vcmp.gt.f32.partialorder %v7192_v1, 0.0  ;;  %v7253_v24 = vld [vmem:[#allocation38_spill] sm:$0xff]  ;;  %vm7254_vm1 = vcmp.gt.f32.partialorder %v7194_v44, 0.0  ;;  %vm7256_vm5 = vcmp.gt.f32.partialorder %v7196_v35, 0.0 }
 0x6df   :  { %v6688_v48 = vsel %vm7252_vm12, %v7192_v1, %v7251_v0  ;;  %v6694_v13 = vsel %vm7254_vm1, %v7194_v44, %v7253_v24  ;;  %v6700_v51 = vsel %vm7256_vm5, %v7196_v35, %v7255_v39  ;;  %v6706_v18 = vsel %vm3144_vm3, %v6161_v54, %v7257_v63  ;;  %v7258_v1 = vld [vmem:[#allocation46_spill] sm:$0xff]  ;;  %v7260_v44 = vld [vmem:[#allocation49_spill] sm:$0xff]  ;;  %v7264_v54 = vld [vmem:[#allocation32_spill] sm:$0xff] }
 0x6e0   :  { %vm7259_vm8 = vcmp.gt.f32.partialorder %v7200_v33, 0.0  ;;  %vm7261_vm15 = vcmp.gt.f32.partialorder %v7202_v30, 0.0  ;;  %v7262_v35 = vld [vmem:[#allocation26_spill] sm:$0xff]  ;;  %vm7263_vm11 = vcmp.gt.f32.partialorder %v7205_v49, 0.0  ;;  %v6730_v20 = vsel %vm3148_vm13, %v7207_v38, %v7264_v54  ;;  %v7269_v38 = vld [vmem:[#allocation39_spill] sm:$0xff] }
 0x6e1   :  { %v6712_v3 = vsel %vm7259_vm8, %v7200_v33, %v7258_v1  ;;  %v6718_v37 = vsel %vm7261_vm15, %v7202_v30, %v7260_v44  ;;  %v6724_v14 = vsel %vm7263_vm11, %v7205_v49, %v7262_v35  ;;  %v7265_v33 = vld [vmem:[#allocation35_spill] sm:$0xff]  ;;  %vm7266_vm3 = vcmp.gt.f32.partialorder %v7209_v9, 0.0  ;;  %v7276_v63 = vld [vmem:[#allocation50_spill] sm:$0xff]  ;;  %v7282_v44 = vld [vmem:[#allocation21_spill] sm:$0xff] }
 0x6e2   :  { %v6736_v0 = vsel %vm7266_vm3, %v7209_v9, %v7265_v33  ;;  %vm7267_vm6 = vcmp.gt.f32.partialorder %v7212_v6, 0.0  ;;  %vm7268_vm0 = vcmp.gt.f32.partialorder %v7213_v45, 0.0  ;;  %v6754_v24 = vsel %vm3152_vm14, %v6193_v53, %v7269_v38  ;;  %v7275_v53 = vld [vmem:[#allocation48_spill] sm:$0xff]  ;;  %v7284_v35 = vld [vmem:[#allocation27_spill] sm:$0xff]  ;;  %v7285_v54 = vld [vmem:[#allocation22_spill] sm:$0xff] }
 0x6e3   :  { %v6742_v30 = vsel %vm7267_vm6, %v7212_v6, %v6489_v28  ;;  %v6748_v49 = vsel %vm7268_vm0, %v7213_v45, %v6492_v60  ;;  %vm7270_vm13 = vcmp.gt.f32.partialorder %v6197_v17, 0.0  ;;  %vm7271_vm12 = vcmp.gt.f32.partialorder %v6201_v55, 0.0  ;;  %v7272_v60 = vld [vmem:[#allocation67_spill] sm:$0xff] }
 0x6e4   :  { %v6760_v9 = vsel %vm7270_vm13, %v6197_v17, %v6508_v29  ;;  %v6766_v28 = vsel %vm7271_vm12, %v6201_v55, %v6511_v5  ;;  %v7273_v45 = vld [vmem:[#allocation47_spill] sm:$0xff]  ;;  %v6777_v39 = vsel %vm3156_vm7, %v7275_v53, %v3220_v36  ;;  %vm7277_vm14 = vcmp.gt.f32.partialorder %v7276_v63, 0.0  ;;  %v7280_v5 = vld [vmem:[#allocation20_spill] sm:$0xff] }
 0x6e5   :  { %vm7274_vm1 = vcmp.gt.f32.partialorder %v7273_v45, 0.0  ;;  %v6782_v17 = vsel %vm7277_vm14, %v7276_v63, %v3221_v62  ;;  %v7278_v29 = vld [vmem:[#allocation19_spill] sm:$0xff]  ;;  %vm7281_vm8 = vcmp.gt.f32.partialorder %v7280_v5, 0.0  ;;  %v6797_v36 = vsel %vm3160_vm2, %v6225_v22, %v3224_v26 }
 0x6e6   :  { %v6772_v6 = vsel %vm7274_vm1, %v7273_v45, %v7272_v60  ;;  %vm7279_vm5 = vcmp.gt.f32.partialorder %v7278_v29, 0.0  ;;  %v6792_v1 = vsel %vm7281_vm8, %v7280_v5, %v3223_v31  ;;  %vm7283_vm7 = vcmp.gt.f32.partialorder %v7282_v44, 0.0 }
 0x6e7   :  { %v6787_v55 = vsel %vm7279_vm5, %v7278_v29, %v3222_v50  ;;  %v6802_v62 = vsel %vm7283_vm7, %v7282_v44, %v3225_v47  ;;  %v6807_v50 = vsel %vm3162_vm9, %v7284_v35, %v3226_v16  ;;  %vm7286_vm15 = vcmp.gt.f32.partialorder %v7285_v54, 0.0 }
 0x6e8   :  { %v6812_v31 = vsel %vm7286_vm15, %v7285_v54, %v3227_v59  ;;  %v6817_v22 = vsel %vm3164_vm4, %v7222_v15, %v3228_v61  ;;  %v6822_v47 = vsel %vm3165_vm10, %v7223_v21, %v3229_v57 }
 0x6e9   :  { %4303 = dma.done.wait [#allocation4 + $0x1], 16384 }
 0x6ea   :  { %4304 = vsyncadd [#allocation4 + $0x1], 4294950912  ;;  %v7287_v26 = vld [vmem:[#allocation36_spill] sm:$0xff]  ;;  %v3299_v38 = vld [vmem:[#allocation3 + $0x8] sm:$0xff] }
 0x6eb   :  { %v7288_v16 = vld [vmem:[#allocation60_spill] sm:$0xff]  ;;  %v3298_v60 = vld [vmem:[#allocation3] sm:$0xff]  ;;  %3470 = vmatprep.subr.bf16.mxu0 %v3299_v38  ;;  %v3300_v45 = vld [vmem:[#allocation3 + $0x10] sm:$0xff] }
 0x6ec   :  { %v3427_v33 = vpack.c.bf16 %v7288_v16, %v7287_v26  ;;  %v3301_v59 = vld [vmem:[#allocation3 + $0x18] sm:$0xff]  ;;  %3471 = vmatpush1.bf16.msra.mxu0 %v3298_v60  ;;  %v3303_v61 = vld [vmem:[#allocation3 + $0x28] sm:$0xff]  ;;  %v3302_v15 = vld [vmem:[#allocation3 + $0x20] sm:$0xff] }
 0x6ed   :  { %3472 = vmatprep.subr.bf16.mxu0 %v3301_v59  ;;  %v3305_v53 = vld [vmem:[#allocation3 + $0x38] sm:$0xff]  ;;  %v3304_v57 = vld [vmem:[#allocation3 + $0x30] sm:$0xff]  ;;  %v3307_v21 = vld [vmem:[#allocation3 + $0x48] sm:$0xff] }
 0x6ee   :  { %3502 = vmatprep.mubr.bf16.mxu0 %v3427_v33  ;;  %v3306_v63 = vld [vmem:[#allocation3 + $0x40] sm:$0xff]  ;;  %v3309_v29 = vld [vmem:[#allocation3 + $0x58] sm:$0xff]  ;;  %v3308_v5 = vld [vmem:[#allocation3 + $0x50] sm:$0xff] }
 0x6ef   :  { %v3311_v44 = vld [vmem:[#allocation3 + $0x68] sm:$0xff]  ;;  %v3310_v35 = vld [vmem:[#allocation3 + $0x60] sm:$0xff]  ;;  %v3313_v54 = vld [vmem:[#allocation3 + $0x78] sm:$0xff] }
 0x6f0   :  { %3473 = vmatpush1.bf16.msra.mxu0 %v3300_v45  ;;  %v3312_v26 = vld [vmem:[#allocation3 + $0x70] sm:$0xff]  ;;  %v3315_v16 = vld [vmem:[#allocation3 + $0x88] sm:$0xff]  ;;  %v3314_v33 = vld [vmem:[#allocation3 + $0x80] sm:$0xff] }
 0x6f1   :  { %3474 = vmatprep.subr.bf16.mxu0 %v3303_v61  ;;  %v3317_v38 = vld [vmem:[#allocation3 + $0x98] sm:$0xff]  ;;  %v3316_v60 = vld [vmem:[#allocation3 + $0x90] sm:$0xff]  ;;  %v3319_v59 = vld [vmem:[#allocation3 + $0xa8] sm:$0xff] }
 0x6f2   :  { %v3318_v45 = vld [vmem:[#allocation3 + $0xa0] sm:$0xff]  ;;  %v3321_v61 = vld [vmem:[#allocation3 + $0xb8] sm:$0xff] }
 0x6f4   :  { %3475 = vmatpush1.bf16.msra.mxu0 %v3302_v15  ;;  %v3320_v15 = vld [vmem:[#allocation3 + $0xb0] sm:$0xff] }
 0x6f5   :  { %3476 = vmatprep.subr.bf16.mxu0 %v3305_v53  ;;  %v3323_v53 = vld [vmem:[#allocation3 + $0xc8] sm:$0xff] }
 0x6f8   :  { %3477 = vmatpush1.bf16.msra.mxu0 %v3304_v57  ;;  %v3322_v57 = vld [vmem:[#allocation3 + $0xc0] sm:$0xff] }
 0x6f9   :  { %3478 = vmatprep.subr.bf16.mxu0 %v3307_v21  ;;  %v3325_v21 = vld [vmem:[#allocation3 + $0xd8] sm:$0xff] }
 0x6fc   :  { %3479 = vmatpush1.bf16.msra.mxu0 %v3306_v63  ;;  %v3324_v63 = vld [vmem:[#allocation3 + $0xd0] sm:$0xff] }
 0x6fd   :  { %3480 = vmatprep.subr.bf16.mxu0 %v3309_v29  ;;  %v3327_v29 = vld [vmem:[#allocation3 + $0xe8] sm:$0xff] }
 0x700   :  { %3481 = vmatpush1.bf16.msra.mxu0 %v3308_v5  ;;  %v3326_v5 = vld [vmem:[#allocation3 + $0xe0] sm:$0xff] }
 0x701   :  { %3482 = vmatprep.subr.bf16.mxu0 %v3311_v44  ;;  %v3329_v44 = vld [vmem:[#allocation3 + $0xf8] sm:$0xff] }
 0x704   :  { %3483 = vmatpush1.bf16.msra.mxu0 %v3310_v35  ;;  %v3328_v35 = vld [vmem:[#allocation3 + $0xf0] sm:$0xff] }
 0x705   :  { %3484 = vmatprep.subr.bf16.mxu0 %v3313_v54  ;;  %v3331_v54 = vld [vmem:[#allocation3 + $0x108] sm:$0xff] }
 0x708   :  { %3485 = vmatpush1.bf16.msra.mxu0 %v3312_v26  ;;  %v7289_v26 = vld [vmem:[#allocation29_spill] sm:$0xff] }
 0x709   :  { %3486 = vmatprep.subr.bf16.mxu0 %v3315_v16  ;;  %v7290_v16 = vld [vmem:[#allocation56_spill] sm:$0xff] }
 0x70c   :  { %3487 = vmatpush1.bf16.msra.mxu0 %v3314_v33  ;;  %v3426_v33 = vpack.c.bf16 %v7290_v16, %v7289_v26  ;;  %v3450_v26 = vpack.c.bf16 %v6787_v55, %v6742_v30  ;;  %v7293_v16 = vld [vmem:[#allocation44_spill] sm:$0xff]  ;;  %v3348_v30 = vld [vmem:[#allocation3 + $0x190] sm:$0xff]  ;;  %v3351_v55 = vld [vmem:[#allocation3 + $0x1a8] sm:$0xff] }
 0x70d   :  { %3488 = vmatprep.subr.bf16.mxu0 %v3317_v38  ;;  %v7291_v38 = vld [vmem:[#allocation70_spill] sm:$0xff] }
 0x710   :  { %3489 = vmatpush1.bf16.msra.mxu0 %v3316_v60  ;;  %v3435_v60 = vpack.c.bf16 %v6604_v4, %v7291_v38  ;;  %v3336_v4 = vld [vmem:[#allocation3 + $0x130] sm:$0xff]  ;;  %v3345_v38 = vld [vmem:[#allocation3 + $0x178] sm:$0xff] }
 0x711   :  { %3490 = vmatprep.subr.bf16.mxu0 %v3319_v59  ;;  %v3330_v59 = vld [vmem:[#allocation3 + $0x100] sm:$0xff] }
 0x714   :  { %3491 = vmatpush1.bf16.msra.mxu0 %v3318_v45  ;;  %v3333_v45 = vld [vmem:[#allocation3 + $0x118] sm:$0xff] }
 0x715   :  { %3492 = vmatprep.subr.bf16.mxu0 %v3321_v61  ;;  %v3332_v61 = vld [vmem:[#allocation3 + $0x110] sm:$0xff] }
 0x718   :  { %3493 = vmatpush1.bf16.msra.mxu0 %v3320_v15  ;;  %v3335_v15 = vld [vmem:[#allocation3 + $0x128] sm:$0xff] }
 0x719   :  { %3494 = vmatprep.subr.bf16.mxu0 %v3323_v53  ;;  %v7292_v53 = vld [vmem:[#allocation69_spill] sm:$0xff] }
 0x71c   :  { %3495 = vmatpush1.bf16.msra.mxu0 %v3322_v57  ;;  %v3434_v57 = vpack.c.bf16 %v6598_v25, %v7292_v53  ;;  %v3451_v25 = vpack.c.bf16 %v6792_v1, %v6748_v49  ;;  %v3344_v49 = vld [vmem:[#allocation3 + $0x170] sm:$0xff]  ;;  %v3347_v1 = vld [vmem:[#allocation3 + $0x188] sm:$0xff] }
 0x71d   :  { %3496 = vmatprep.subr.bf16.mxu0 %v3325_v21  ;;  %v3443_v21 = vpack.c.bf16 %v6700_v51, %v6652_v43  ;;  %v3340_v43 = vld [vmem:[#allocation3 + $0x150] sm:$0xff]  ;;  %v3343_v51 = vld [vmem:[#allocation3 + $0x168] sm:$0xff] }
 0x71e   :  { %v3355_v53 = vld [vmem:[#allocation3 + $0x1c8] sm:$0xff] }
 0x720   :  { %3497 = vmatpush1.bf16.msra.mxu0 %v3324_v63  ;;  %v3334_v63 = vld [vmem:[#allocation3 + $0x120] sm:$0xff] }
 0x721   :  { %3498 = vmatprep.subr.bf16.mxu0 %v3327_v29  ;;  %v3337_v29 = vld [vmem:[#allocation3 + $0x138] sm:$0xff] }
 0x724   :  { %3499 = vmatpush1.bf16.msra.mxu0 %v3326_v5  ;;  %v3339_v5 = vld [vmem:[#allocation3 + $0x148] sm:$0xff] }
 0x725   :  { %3500 = vmatprep.subr.bf16.mxu0 %v3329_v44  ;;  %v3442_v44 = vpack.c.bf16 %v6694_v13, %v6646_v41  ;;  %v3342_v13 = vld [vmem:[#allocation3 + $0x160] sm:$0xff] }
 0x728   :  { %3501 = vmatpush1.bf16.msra.mxu0 %v3328_v35  ;;  %v3338_v35 = vld [vmem:[#allocation3 + $0x140] sm:$0xff] }
 0x729   :  { %3543 = vmatprep.subr.bf16.mxu0 %v3331_v54  ;;  %v3341_v54 = vld [vmem:[#allocation3 + $0x158] sm:$0xff] }
 0x72b   :  { %3503 = vmatmul.mubr.bf16.vlgmr.msra.gmra.mrb[40].mxu0 %v3426_v33  ;;  %v7294_v33 = vld [vmem:[#allocation63_spill] sm:$0xff] }
 0x72c   :  { %3544 = vmatpush1.bf16.msra.mxu0 %v3330_v59  ;;  %3512 = vmatprep.mubr.bf16.mxu0 %v3435_v60  ;;  %v3429_v41 = vpack.c.bf16 %v7294_v33, %v7293_v16  ;;  %v3346_v60 = vld [vmem:[#allocation3 + $0x180] sm:$0xff]  ;;  %v3349_v59 = vld [vmem:[#allocation3 + $0x198] sm:$0xff]  ;;  %v3364_v33 = vld [vmem:[#allocation3 + $0x210] sm:$0xff] }
 0x72d   :  { %3545 = vmatprep.subr.bf16.mxu0 %v3333_v45  ;;  %v3350_v45 = vld [vmem:[#allocation3 + $0x1a0] sm:$0xff]  ;;  %v3365_v16 = vld [vmem:[#allocation3 + $0x218] sm:$0xff] }
 0x730   :  { %3546 = vmatpush1.bf16.msra.mxu0 %v3332_v61  ;;  %v3353_v61 = vld [vmem:[#allocation3 + $0x1b8] sm:$0xff] }
 0x731   :  { %3547 = vmatprep.subr.bf16.mxu0 %v3335_v15  ;;  %v3352_v15 = vld [vmem:[#allocation3 + $0x1b0] sm:$0xff] }
 0x733   :  { %3513 = vmatmul.mubr.bf16.gmra.mrb[44].mxu0 %v3434_v57  ;;  %v3354_v57 = vld [vmem:[#allocation3 + $0x1c0] sm:$0xff] }
 0x734   :  { %3548 = vmatpush1.bf16.msra.mxu0 %v3334_v63  ;;  %3522 = vmatprep.mubr.bf16.mxu0 %v3443_v21  ;;  %v3357_v21 = vld [vmem:[#allocation3 + $0x1d8] sm:$0xff]  ;;  %v3356_v63 = vld [vmem:[#allocation3 + $0x1d0] sm:$0xff] }
 0x735   :  { %3549 = vmatprep.subr.bf16.mxu0 %v3337_v29  ;;  %v3359_v29 = vld [vmem:[#allocation3 + $0x1e8] sm:$0xff] }
 0x738   :  { %3550 = vmatpush1.bf16.msra.mxu0 %v3336_v4  ;;  %v3358_v4 = vld [vmem:[#allocation3 + $0x1e0] sm:$0xff] }
 0x739   :  { %3551 = vmatprep.subr.bf16.mxu0 %v3339_v5  ;;  %v3361_v5 = vld [vmem:[#allocation3 + $0x1f8] sm:$0xff] }
 0x73b   :  { %3523 = vmatmul.mubr.bf16.gmra.mrb[48].mxu0 %v3442_v44  ;;  %v3360_v44 = vld [vmem:[#allocation3 + $0x1f0] sm:$0xff] }
 0x73c   :  { %3552 = vmatpush1.bf16.msra.mxu0 %v3338_v35  ;;  %3532 = vmatprep.mubr.bf16.mxu0 %v3451_v25  ;;  %v3363_v25 = vld [vmem:[#allocation3 + $0x208] sm:$0xff]  ;;  %v7295_v35 = vld [vmem:[#allocation40_spill] sm:$0xff] }
 0x73d   :  { %3553 = vmatprep.subr.bf16.mxu0 %v3341_v54  ;;  %v7296_v54 = vld [vmem:[#allocation62_spill] sm:$0xff] }
 0x740   :  { %3554 = vmatpush1.bf16.msra.mxu0 %v3340_v43  ;;  %v3428_v43 = vpack.c.bf16 %v7296_v54, %v7295_v35  ;;  %v3390_v35 = vld [vmem:[#allocation3 + $0x2e0] sm:$0xff]  ;;  %v3393_v54 = vld [vmem:[#allocation3 + $0x2f8] sm:$0xff] }
 0x741   :  { %3555 = vmatprep.subr.bf16.mxu0 %v3343_v51  ;;  %v3437_v51 = vpack.c.bf16 %v6616_v40, %v6568_v23  ;;  %v3368_v23 = vld [vmem:[#allocation3 + $0x230] sm:$0xff]  ;;  %v3371_v40 = vld [vmem:[#allocation3 + $0x248] sm:$0xff] }
 0x743   :  { %3533 = vmatmul.mubr.bf16.gmra.mrb[52].mxu0 %v3450_v26  ;;  %v3362_v26 = vld [vmem:[#allocation3 + $0x200] sm:$0xff] }
 0x744   :  { %3556 = vmatpush1.bf16.msra.mxu0 %v3342_v13  ;;  %3575 = vmatprep.mubr.bf16.mxu0 %v3429_v41  ;;  %v3367_v41 = vld [vmem:[#allocation3 + $0x228] sm:$0xff]  ;;  %v3436_v13 = vpack.c.bf16 %v6610_v8, %v6559_v32  ;;  %v3453_v32 = vpack.c.bf16 %v6802_v62, %v6760_v9  ;;  %v3370_v8 = vld [vmem:[#allocation3 + $0x240] sm:$0xff]  ;;  %v3376_v9 = vld [vmem:[#allocation3 + $0x270] sm:$0xff] }
 0x745   :  { %3557 = vmatprep.subr.bf16.mxu0 %v3345_v38  ;;  %v3445_v38 = vpack.c.bf16 %v6712_v3, %v6664_v12  ;;  %v3372_v12 = vld [vmem:[#allocation3 + $0x250] sm:$0xff]  ;;  %v3375_v3 = vld [vmem:[#allocation3 + $0x268] sm:$0xff] }
 0x746   :  { %v3379_v62 = vld [vmem:[#allocation3 + $0x288] sm:$0xff] }
 0x748   :  { %3558 = vmatpush1.bf16.msra.mxu0 %v3344_v49  ;;  %v3366_v49 = vld [vmem:[#allocation3 + $0x220] sm:$0xff] }
 0x749   :  { %3559 = vmatprep.subr.bf16.mxu0 %v3347_v1  ;;  %v3369_v1 = vld [vmem:[#allocation3 + $0x238] sm:$0xff] }
 0x74c   :  { %3560 = vmatpush1.bf16.msra.mxu0 %v3346_v60  ;;  %v3444_v60 = vpack.c.bf16 %v6706_v18, %v6658_v7  ;;  %v3374_v18 = vld [vmem:[#allocation3 + $0x260] sm:$0xff] }
 0x74d   :  { %3561 = vmatprep.subr.bf16.mxu0 %v3349_v59  ;;  %v3373_v59 = vld [vmem:[#allocation3 + $0x258] sm:$0xff] }
 0x750   :  { %3562 = vmatpush1.bf16.msra.mxu0 %v3348_v30  ;;  %v3452_v30 = vpack.c.bf16 %v6797_v36, %v6754_v24  ;;  %v3380_v24 = vld [vmem:[#allocation3 + $0x290] sm:$0xff]  ;;  %v3383_v36 = vld [vmem:[#allocation3 + $0x2a8] sm:$0xff] }
 0x751   :  { %3563 = vmatprep.subr.bf16.mxu0 %v3351_v55  ;;  %v7297_v55 = vld [vmem:[#allocation37_spill] sm:$0xff] }
 0x754   :  { %3564 = vmatpush1.bf16.msra.mxu0 %v3350_v45  ;;  %v7298_v45 = vld [vmem:[#allocation66_spill] sm:$0xff] }
 0x755   :  { %3565 = vmatprep.subr.bf16.mxu0 %v3353_v61  ;;  %v3431_v7 = vpack.c.bf16 %v7298_v45, %v7297_v55  ;;  %v3377_v61 = vld [vmem:[#allocation3 + $0x278] sm:$0xff]  ;;  %v3410_v45 = vld [vmem:[#allocation3 + $0x380] sm:$0xff] }
 0x756   :  { %v3409_v55 = vld [vmem:[#allocation3 + $0x378] sm:$0xff] }
 0x758   :  { %3566 = vmatpush1.bf16.msra.mxu0 %v3352_v15  ;;  %v3378_v15 = vld [vmem:[#allocation3 + $0x280] sm:$0xff] }
 0x759   :  { %3567 = vmatprep.subr.bf16.mxu0 %v3355_v53  ;;  %v3381_v53 = vld [vmem:[#allocation3 + $0x298] sm:$0xff] }
 0x75c   :  { %3568 = vmatpush1.bf16.msra.mxu0 %v3354_v57  ;;  %v3382_v57 = vld [vmem:[#allocation3 + $0x2a0] sm:$0xff] }
 0x75d   :  { %3569 = vmatprep.subr.bf16.mxu0 %v3357_v21  ;;  %v3385_v21 = vld [vmem:[#allocation3 + $0x2b8] sm:$0xff] }
 0x760   :  { %3570 = vmatpush1.bf16.msra.mxu0 %v3356_v63  ;;  %v3384_v63 = vld [vmem:[#allocation3 + $0x2b0] sm:$0xff] }
 0x761   :  { %3571 = vmatprep.subr.bf16.mxu0 %v3359_v29  ;;  %v3387_v29 = vld [vmem:[#allocation3 + $0x2c8] sm:$0xff] }
 0x764   :  { %3572 = vmatpush1.bf16.msra.mxu0 %v3358_v4  ;;  %v3386_v4 = vld [vmem:[#allocation3 + $0x2c0] sm:$0xff] }
 0x765   :  { %3573 = vmatprep.subr.bf16.mxu0 %v3361_v5  ;;  %v3389_v5 = vld [vmem:[#allocation3 + $0x2d8] sm:$0xff] }
 0x768   :  { %3574 = vmatpush1.bf16.msra.mxu0 %v3360_v44  ;;  %v3388_v44 = vld [vmem:[#allocation3 + $0x2d0] sm:$0xff] }
 0x769   :  { %3616 = vmatprep.subr.bf16.mxu0 %v3363_v25  ;;  %v3391_v25 = vld [vmem:[#allocation3 + $0x2e8] sm:$0xff] }
 0x76b   :  { %3576 = vmatmul.mubr.bf16.vlgmr.msra.gmra.mrb[40].mxu0 %v3428_v43  ;;  %v3392_v43 = vld [vmem:[#allocation3 + $0x2f0] sm:$0xff] }
 0x76c   :  { %3617 = vmatpush1.bf16.msra.mxu0 %v3362_v26  ;;  %3585 = vmatprep.mubr.bf16.mxu0 %v3437_v51  ;;  %v3395_v51 = vld [vmem:[#allocation3 + $0x308] sm:$0xff] }
 0x76d   :  { %3618 = vmatprep.subr.bf16.mxu0 %v3365_v16  ;;  %v7299_v26 = vld [vmem:[#allocation30_spill] sm:$0xff]  ;;  %v7300_v16 = vld [vmem:[#allocation65_spill] sm:$0xff] }
 0x770   :  { %3619 = vmatpush1.bf16.msra.mxu0 %v3364_v33  ;;  %v3430_v33 = vpack.c.bf16 %v7300_v16, %v7299_v26 }
 0x771   :  { %3620 = vmatprep.subr.bf16.mxu0 %v3367_v41  ;;  %v3439_v41 = vpack.c.bf16 %v6628_v46, %v6580_v58  ;;  %v3400_v58 = vld [vmem:[#allocation3 + $0x330] sm:$0xff]  ;;  %v3403_v46 = vld [vmem:[#allocation3 + $0x348] sm:$0xff] }
 0x773   :  { %3586 = vmatmul.mubr.bf16.gmra.mrb[44].mxu0 %v3436_v13  ;;  %v3394_v13 = vld [vmem:[#allocation3 + $0x300] sm:$0xff] }
 0x774   :  { %3621 = vmatpush1.bf16.msra.mxu0 %v3366_v49  ;;  %3595 = vmatprep.mubr.bf16.mxu0 %v3445_v38  ;;  %v3397_v38 = vld [vmem:[#allocation3 + $0x318] sm:$0xff]  ;;  %v3396_v49 = vld [vmem:[#allocation3 + $0x310] sm:$0xff] }
 0x775   :  { %3622 = vmatprep.subr.bf16.mxu0 %v3369_v1  ;;  %v3399_v1 = vld [vmem:[#allocation3 + $0x328] sm:$0xff] }
 0x778   :  { %3623 = vmatpush1.bf16.msra.mxu0 %v3368_v23  ;;  %v3438_v23 = vpack.c.bf16 %v6622_v42, %v6574_v2  ;;  %v3455_v2 = vpack.c.bf16 %v6812_v31, %v6772_v6  ;;  %v3402_v42 = vld [vmem:[#allocation3 + $0x340] sm:$0xff]  ;;  %v3408_v6 = vld [vmem:[#allocation3 + $0x370] sm:$0xff]  ;;  %v3411_v31 = vld [vmem:[#allocation3 + $0x388] sm:$0xff] }
 0x779   :  { %3624 = vmatprep.subr.bf16.mxu0 %v3371_v40  ;;  %v3447_v40 = vpack.c.bf16 %v6724_v14, %v6676_v34  ;;  %v3404_v34 = vld [vmem:[#allocation3 + $0x350] sm:$0xff]  ;;  %v3407_v14 = vld [vmem:[#allocation3 + $0x368] sm:$0xff] }
 0x77b   :  { %3596 = vmatmul.mubr.bf16.gmra.mrb[48].mxu0 %v3444_v60  ;;  %v3398_v60 = vld [vmem:[#allocation3 + $0x320] sm:$0xff] }
 0x77c   :  { %3625 = vmatpush1.bf16.msra.mxu0 %v3370_v8  ;;  %3605 = vmatprep.mubr.bf16.mxu0 %v3453_v32  ;;  %v3401_v32 = vld [vmem:[#allocation3 + $0x338] sm:$0xff]  ;;  %v3446_v8 = vpack.c.bf16 %v6718_v37, %v6670_v52  ;;  %v3406_v37 = vld [vmem:[#allocation3 + $0x360] sm:$0xff] }
 0x77d   :  { %3626 = vmatprep.subr.bf16.mxu0 %v3373_v59  ;;  %v3405_v59 = vld [vmem:[#allocation3 + $0x358] sm:$0xff] }
 0x780   :  { %3627 = vmatpush1.bf16.msra.mxu0 %v3372_v12  ;;  %v3454_v12 = vpack.c.bf16 %v6807_v50, %v6766_v28  ;;  %v3412_v28 = vld [vmem:[#allocation3 + $0x390] sm:$0xff]  ;;  %v3415_v50 = vld [vmem:[#allocation3 + $0x3a8] sm:$0xff] }
 0x781   :  { %3628 = vmatprep.subr.bf16.mxu0 %v3375_v3  ;;  %v7301_v3 = vld [vmem:[#allocation52_spill] sm:$0xff] }
 0x783   :  { %3606 = vmatmul.mubr.bf16.gmra.mrb[52].mxu0 %v3452_v30  ;;  %v7302_v30 = vld [vmem:[#allocation68_spill] sm:$0xff] }
 0x784   :  { %3629 = vmatpush1.bf16.msra.mxu0 %v3374_v18  ;;  %3648 = vmatprep.mubr.bf16.mxu0 %v3431_v7  ;;  %v3433_v52 = vpack.c.bf16 %v7302_v30, %v7301_v3  ;;  %v3413_v7 = vld [vmem:[#allocation3 + $0x398] sm:$0xff]  ;;  %v3414_v18 = vld [vmem:[#allocation3 + $0x3a0] sm:$0xff] }
 0x785   :  { %3630 = vmatprep.subr.bf16.mxu0 %v3377_v61  ;;  %v3417_v61 = vld [vmem:[#allocation3 + $0x3b8] sm:$0xff] }
 0x788   :  { %3631 = vmatpush1.bf16.msra.mxu0 %v3376_v9  ;;  %v3416_v9 = vld [vmem:[#allocation3 + $0x3b0] sm:$0xff] }
 0x789   :  { %3632 = vmatprep.subr.bf16.mxu0 %v3379_v62  ;;  %v3419_v62 = vld [vmem:[#allocation3 + $0x3c8] sm:$0xff] }
 0x78c   :  { %3633 = vmatpush1.bf16.msra.mxu0 %v3378_v15  ;;  %v3418_v15 = vld [vmem:[#allocation3 + $0x3c0] sm:$0xff] }
 0x78d   :  { %3634 = vmatprep.subr.bf16.mxu0 %v3381_v53  ;;  %v3421_v53 = vld [vmem:[#allocation3 + $0x3d8] sm:$0xff] }
 0x790   :  { %3635 = vmatpush1.bf16.msra.mxu0 %v3380_v24  ;;  %v3420_v24 = vld [vmem:[#allocation3 + $0x3d0] sm:$0xff] }
 0x791   :  { %3636 = vmatprep.subr.bf16.mxu0 %v3383_v36  ;;  %v3423_v36 = vld [vmem:[#allocation3 + $0x3e8] sm:$0xff] }
 0x794   :  { %3637 = vmatpush1.bf16.msra.mxu0 %v3382_v57  ;;  %v3422_v57 = vld [vmem:[#allocation3 + $0x3e0] sm:$0xff] }
 0x795   :  { %3638 = vmatprep.subr.bf16.mxu0 %v3385_v21  ;;  %v3425_v21 = vld [vmem:[#allocation3 + $0x3f8] sm:$0xff] }
 0x798   :  { %3639 = vmatpush1.bf16.msra.mxu0 %v3384_v63  ;;  %v3424_v63 = vld [vmem:[#allocation3 + $0x3f0] sm:$0xff] }
 0x799   :  { %3640 = vmatprep.subr.bf16.mxu0 %v3387_v29  ;;  %v7303_v29 = vld [vmem:[#allocation51_spill] sm:$0xff] }
 0x79c   :  { %3641 = vmatpush1.bf16.msra.mxu0 %v3386_v4  ;;  %v7304_v4 = vld [vmem:[#allocation43_spill] sm:$0xff] }
 0x79d   :  { %3642 = vmatprep.subr.bf16.mxu0 %v3389_v5  ;;  %v3432_v5 = vpack.c.bf16 %v7304_v4, %v7303_v29 }
 0x7a0   :  { %3643 = vmatpush1.bf16.msra.mxu0 %v3388_v44  ;;  %v3441_v44 = vpack.c.bf16 %v6640_v27, %v6592_v19  ;;  %v3456_v19 = vpack.c.bf16 %v6817_v22, %v6777_v39 }
 0x7a1   :  { %3644 = vmatprep.subr.bf16.mxu0 %v3391_v25  ;;  %v3440_v25 = vpack.c.bf16 %v6634_v10, %v6586_v56  ;;  %v3458_v56 = vld [vmem:[%s6945_s4 + $0x1d] sm:$0x3]  ;;  %v7305_v10 = vld [vmem:[#allocation17_spill] sm:$0xff] }
 0x7a2   :  { %v3463_v27 = vrot.slane %v3458_v56, %v7305_v10 }
 0x7a4   :  { %3645 = vmatpush1.bf16.msra.mxu0 %v3390_v35  ;;  %v3449_v35 = vpack.c.bf16 %v6736_v0, %v6688_v48  ;;  %v7306_v48 = vld [vmem:[#allocation18_spill] sm:$0xff] }
 0x7a5   :  { %3646 = vmatprep.subr.bf16.mxu0 %v3393_v54  ;;  %v3448_v54 = vpack.c.bf16 %v6730_v20, %v6682_v11  ;;  %v3467_v0 = vrot.slane %v3458_v56, %v7306_v48 }
 0x7a8   :  { %3647 = vmatpush1.bf16.msra.mxu0 %v3392_v43  ;;  %v3457_v43 = vpack.c.bf16 %v6822_v47, %v6782_v17 }
 0x7a9   :  { %3689 = vmatprep.subr.bf16.mxu0 %v3395_v51 }
 0x7ab   :  { %3649 = vmatmul.mubr.bf16.vlgmr.msra.gmra.mrb[40].mxu0 %v3430_v33 }
 0x7ac   :  { %3690 = vmatpush1.bf16.msra.mxu0 %v3394_v13  ;;  %3658 = vmatprep.mubr.bf16.mxu0 %v3439_v41 }
 0x7ad   :  { %3691 = vmatprep.subr.bf16.mxu0 %v3397_v38 }
 0x7b0   :  { %3692 = vmatpush1.bf16.msra.mxu0 %v3396_v49 }
 0x7b1   :  { %3693 = vmatprep.subr.bf16.mxu0 %v3399_v1 }
 0x7b3   :  { %3659 = vmatmul.mubr.bf16.gmra.mrb[44].mxu0 %v3438_v23 }
 0x7b4   :  { %3694 = vmatpush1.bf16.msra.mxu0 %v3398_v60  ;;  %3668 = vmatprep.mubr.bf16.mxu0 %v3447_v40 }
 0x7b5   :  { %3695 = vmatprep.subr.bf16.mxu0 %v3401_v32 }
 0x7b8   :  { %3696 = vmatpush1.bf16.msra.mxu0 %v3400_v58 }
 0x7b9   :  { %3697 = vmatprep.subr.bf16.mxu0 %v3403_v46 }
 0x7bb   :  { %3669 = vmatmul.mubr.bf16.gmra.mrb[48].mxu0 %v3446_v8 }
 0x7bc   :  { %3698 = vmatpush1.bf16.msra.mxu0 %v3402_v42  ;;  %3678 = vmatprep.mubr.bf16.mxu0 %v3455_v2 }
 0x7bd   :  { %3699 = vmatprep.subr.bf16.mxu0 %v3405_v59 }
 0x7c0   :  { %3700 = vmatpush1.bf16.msra.mxu0 %v3404_v34 }
 0x7c1   :  { %3701 = vmatprep.subr.bf16.mxu0 %v3407_v14 }
 0x7c3   :  { %3679 = vmatmul.mubr.bf16.gmra.mrb[52].mxu0 %v3454_v12 }
 0x7c4   :  { %3702 = vmatpush1.bf16.msra.mxu0 %v3406_v37  ;;  %3721 = vmatprep.mubr.bf16.mxu0 %v3433_v52 }
 0x7c5   :  { %3703 = vmatprep.subr.bf16.mxu0 %v3409_v55 }
 0x7c8   :  { %3704 = vmatpush1.bf16.msra.mxu0 %v3408_v6 }
 0x7c9   :  { %3705 = vmatprep.subr.bf16.mxu0 %v3411_v31 }
 0x7cc   :  { %3706 = vmatpush1.bf16.msra.mxu0 %v3410_v45 }
 0x7cd   :  { %3707 = vmatprep.subr.bf16.mxu0 %v3413_v7 }
 0x7d0   :  { %3708 = vmatpush1.bf16.msra.mxu0 %v3412_v28 }
 0x7d1   :  { %3709 = vmatprep.subr.bf16.mxu0 %v3415_v50 }
 0x7d4   :  { %3710 = vmatpush1.bf16.msra.mxu0 %v3414_v18 }
 0x7d5   :  { %3711 = vmatprep.subr.bf16.mxu0 %v3417_v61 }
 0x7d8   :  { %3712 = vmatpush1.bf16.msra.mxu0 %v3416_v9 }
 0x7d9   :  { %3713 = vmatprep.subr.bf16.mxu0 %v3419_v62 }
 0x7dc   :  { %3714 = vmatpush1.bf16.msra.mxu0 %v3418_v15 }
 0x7dd   :  { %3715 = vmatprep.subr.bf16.mxu0 %v3421_v53 }
 0x7e0   :  { %3716 = vmatpush1.bf16.msra.mxu0 %v3420_v24 }
 0x7e1   :  { %3717 = vmatprep.subr.bf16.mxu0 %v3423_v36 }
 0x7e4   :  { %3718 = vmatpush1.bf16.msra.mxu0 %v3422_v57 }
 0x7e5   :  { %3719 = vmatprep.subr.bf16.mxu0 %v3425_v21 }
 0x7e8   :  { %3720 = vmatpush1.bf16.msra.mxu0 %v3424_v63 }
 0x7eb   :  { %3722 = vmatmul.mubr.bf16.vlgmr.msra.gmra.mrb[40].mxu0 %v3432_v5 }
 0x7ec   :  { %3731 = vmatprep.mubr.bf16.mxu0 %v3441_v44 }
 0x7f3   :  { %3732 = vmatmul.mubr.bf16.gmra.mrb[44].mxu0 %v3440_v25 }
 0x7f4   :  { %3741 = vmatprep.mubr.bf16.mxu0 %v3449_v35 }
 0x7fb   :  { %3742 = vmatmul.mubr.bf16.gmra.mrb[48].mxu0 %v3448_v54 }
 0x7fc   :  { %3751 = vmatprep.mubr.bf16.mxu0 %v3457_v43 }
 0x803   :  { %3752 = vmatmul.mubr.bf16.gmra.mrb[52].mxu0 %v3456_v19 }
 0x8be   :  { %v3723_v51 = vpop.f32.mrb[40].mxu0 }
 0x8bf   :  { %v3940_v26 = vadd.f32 %v3723_v51, %v3463_v27  ;;  %v3725_v11 = vpop.f32.mrb[41].mxu0 }
 0x8c0   :  { %v3941_v20 = vadd.f32 %v3725_v11, %v3467_v0  ;;  %v3727_v16 = vpop.f32.mrb[42].mxu0 }
 0x8c1   :  { %4221 = vtanh.f32 %v3940_v26  ;;  %v3942_v17 = vadd.f32 %v3727_v16, %v3463_v27  ;;  %v3729_v47 = vpop.f32.mrb[43].mxu0 }
 0x8c2   :  { %4223 = vtanh.f32 %v3941_v20  ;;  %v3943_v33 = vadd.f32 %v3729_v47, %v3467_v0 }
 0x8c3   :  { %4225 = vtanh.f32 %v3942_v17 }
 0x8c4   :  { %4227 = vtanh.f32 %v3943_v33 }
 0x8c6   :  { %v3733_v39 = vpop.f32.mrb[44].mxu0 }
 0x8c7   :  { %v3944_v22 = vadd.f32 %v3733_v39, %v3463_v27  ;;  %v3735_v41 = vpop.f32.mrb[45].mxu0 }
 0x8c8   :  { %v3945_v13 = vadd.f32 %v3735_v41, %v3467_v0  ;;  %v3737_v38 = vpop.f32.mrb[46].mxu0 }
 0x8c9   :  { %4229 = vtanh.f32 %v3944_v22  ;;  %v3946_v49 = vadd.f32 %v3737_v38, %v3463_v27  ;;  %v3739_v1 = vpop.f32.mrb[47].mxu0 }
 0x8ca   :  { %4231 = vtanh.f32 %v3945_v13  ;;  %v3947_v23 = vadd.f32 %v3739_v1, %v3467_v0 }
 0x8cb   :  { %v4222_v40 = vpop.eup %4221  ;;  %4233 = vtanh.f32 %v3946_v49 }
 0x8cc   :  { %v4224_v60 = vpop.eup %4223  ;;  %3778 = vst [vmem:[%s6948_s7] sm:$0xff] %v4222_v40  ;;  %4235 = vtanh.f32 %v3947_v23 }
 0x8cd   :  { %v4226_v32 = vpop.eup %4225  ;;  %3779 = vst [vmem:[%s6948_s7 + $0x8] sm:$0xff] %v4224_v60 }
 0x8ce   :  { %v4228_v58 = vpop.eup %4227  ;;  %3780 = vst [vmem:[%s6948_s7 + $0x10] sm:$0xff] %v4226_v32  ;;  %v3743_v46 = vpop.f32.mrb[48].mxu0 }
 0x8cf   :  { %3781 = vst [vmem:[%s6948_s7 + $0x18] sm:$0xff] %v4228_v58  ;;  %v3948_v8 = vadd.f32 %v3743_v46, %v3463_v27  ;;  %v3745_v2 = vpop.f32.mrb[49].mxu0 }
 0x8d0   :  { %v3949_v42 = vadd.f32 %v3745_v2, %v3467_v0  ;;  %v3747_v59 = vpop.f32.mrb[50].mxu0 }
 0x8d1   :  { %4237 = vtanh.f32 %v3948_v8  ;;  %v3950_v34 = vadd.f32 %v3747_v59, %v3463_v27  ;;  %v3749_v14 = vpop.f32.mrb[51].mxu0 }
 0x8d2   :  { %4239 = vtanh.f32 %v3949_v42  ;;  %v3951_v12 = vadd.f32 %v3749_v14, %v3467_v0 }
 0x8d3   :  { %v4230_v3 = vpop.eup %4229  ;;  %4241 = vtanh.f32 %v3950_v34 }
 0x8d4   :  { %v4232_v30 = vpop.eup %4231  ;;  %3782 = vst [vmem:[%s6948_s7 + $0x20] sm:$0xff] %v4230_v3  ;;  %4243 = vtanh.f32 %v3951_v12 }
 0x8d5   :  { %v4234_v52 = vpop.eup %4233  ;;  %3783 = vst [vmem:[%s6948_s7 + $0x28] sm:$0xff] %v4232_v30 }
 0x8d6   :  { %v4236_v37 = vpop.eup %4235  ;;  %3784 = vst [vmem:[%s6948_s7 + $0x30] sm:$0xff] %v4234_v52  ;;  %v3753_v55 = vpop.f32.mrb[52].mxu0 }
 0x8d7   :  { %3785 = vst [vmem:[%s6948_s7 + $0x38] sm:$0xff] %v4236_v37  ;;  %v3952_v6 = vadd.f32 %v3753_v55, %v3463_v27  ;;  %v3755_v31 = vpop.f32.mrb[53].mxu0 }
 0x8d8   :  { %v3953_v45 = vadd.f32 %v3755_v31, %v3467_v0  ;;  %v3757_v7 = vpop.f32.mrb[54].mxu0 }
 0x8d9   :  { %4245 = vtanh.f32 %v3952_v6  ;;  %v3954_v28 = vadd.f32 %v3757_v7, %v3463_v27  ;;  %v3759_v50 = vpop.f32.mrb[55].mxu0 }
 0x8da   :  { %4247 = vtanh.f32 %v3953_v45  ;;  %v3955_v18 = vadd.f32 %v3759_v50, %v3467_v0 }
 0x8db   :  { %v4238_v61 = vpop.eup %4237  ;;  %4249 = vtanh.f32 %v3954_v28 }
 0x8dc   :  { %v4240_v9 = vpop.eup %4239  ;;  %3786 = vst [vmem:[%s6948_s7 + $0x40] sm:$0xff] %v4238_v61  ;;  %4251 = vtanh.f32 %v3955_v18 }
 0x8dd   :  { %v4242_v62 = vpop.eup %4241  ;;  %3787 = vst [vmem:[%s6948_s7 + $0x48] sm:$0xff] %v4240_v9 }
 0x8de   :  { %v4244_v15 = vpop.eup %4243  ;;  %3788 = vst [vmem:[%s6948_s7 + $0x50] sm:$0xff] %v4242_v62 }
 0x8df   :  { %3789 = vst [vmem:[%s6948_s7 + $0x58] sm:$0xff] %v4244_v15 }
 0x8e3   :  { %v4246_v53 = vpop.eup %4245 }
 0x8e4   :  { %v4248_v24 = vpop.eup %4247  ;;  %3790 = vst [vmem:[%s6948_s7 + $0x60] sm:$0xff] %v4246_v53 }
 0x8e5   :  { %v4250_v36 = vpop.eup %4249  ;;  %3791 = vst [vmem:[%s6948_s7 + $0x68] sm:$0xff] %v4248_v24 }
 0x8e6   :  { %v4252_v57 = vpop.eup %4251  ;;  %3792 = vst [vmem:[%s6948_s7 + $0x70] sm:$0xff] %v4250_v36 }
 0x8e7   :  { %3793 = vst [vmem:[%s6948_s7 + $0x78] sm:$0xff] %v4252_v57 }
 0x8e8   :  { %3798 = vsyncpa [#allocation6], 1 }
 0x8e9   :  { %3799 = vsyncpa [#allocation8], 1 }
 0x8ea   :  { %3800 = vsyncmov [#allocation4] }
 0x8ed   :  { %s3801_s10 = vpop.sfrf %3800 }
 0x8ee   :  { %p3904_p2 = scmp.ne.s32.totalorder %s3801_s10, 0 }
 0x8f0   :  { %3805 = shalt.err (%p3904_p2)  }
 0x8f1   :  { %3807 = vsyncmov [#allocation4 + $0x1] }
 0x8f4   :  { %s3808_s3 = vpop.sfrf %3807 }
 0x8f5   :  { %p3905_p3 = scmp.ne.s32.totalorder %s3808_s3, 0 }
 0x8f7   :  { %3812 = shalt.err (%p3905_p3)  }

</bundles_post_ra>
